<compile_context>
chip_gen: v5e
topology: v5e:2x2
jax: 0.10.0
libtpu: 0.0.40
codegen_flags: <defaults>
</compile_context>

<pallas_src>
import functools

import jax
import jax.numpy as jnp
from jax.experimental import pallas as pl
from jax.experimental.pallas import tpu as pltpu


# ----------------------------------------------------------------------------
# Fused pair kernel:  conv3x1(d) -> +bias -> ReLU -> conv1x3(d) -> BN(folded)
#                     -> [+residual] -> ReLU          (one image per grid step)
# ----------------------------------------------------------------------------

def _make_pair_kernel(H, W, C, d, with_residual):
    M = H * W  # flattened spatial size of one image

    def dir_conv(z32, w_ref, pos, off, limit):
        """3-tap dilated conv along one spatial axis of the flattened (M, C) tile.

        pos   : per-element position along that axis (same units as `off`)
        off   : dilation offset in flattened rows (d*W for the H axis, d for W)
        limit : axis extent in the same units
        Shifts use pltpu.roll (XLU), zero padding is a VPU mask, the three
        matmuls run on the MXU with bf16 inputs / f32 accumulation.
        """
        acc = jnp.dot(z32.astype(jnp.bfloat16), w_ref[1],
                      preferred_element_type=jnp.float32)
        # tap 0: reads position (pos - off); valid where pos >= off
        zt = pltpu.roll(z32, shift=off % M, axis=0)
        zt = jnp.where(pos >= off, zt, 0.0)
        acc = acc + jnp.dot(zt.astype(jnp.bfloat16), w_ref[0],
                            preferred_element_type=jnp.float32)
        # tap 2: reads position (pos + off); valid where pos + off < limit
        zt = pltpu.roll(z32, shift=(-off) % M, axis=0)
        zt = jnp.where(pos + off < limit, zt, 0.0)
        acc = acc + jnp.dot(zt.astype(jnp.bfloat16), w_ref[2],
                            preferred_element_type=jnp.float32)
        return acc

    def kernel(*refs):
        if with_residual:
            x_ref, wh_ref, b1_ref, ww_ref, t2_ref, res_ref, o_ref = refs
        else:
            x_ref, wh_ref, b1_ref, ww_ref, t2_ref, o_ref = refs

        x32 = x_ref[...].reshape(M, C).astype(jnp.float32)

        # Padding-mask positions (no integer div/mod needed):
        #   H-axis validity "h >= d"  <=>  flattened row >= d*W   (row-major)
        #   W-axis validity uses the column index directly.
        row_pos = jax.lax.broadcasted_iota(jnp.int32, (M, C), 0)
        w_pos = jax.lax.broadcasted_iota(jnp.int32, (H, W, C), 1).reshape(M, C)

        # conv3x1 (dilation d along H) + bias + ReLU; intermediate stays on-chip
        acc1 = dir_conv(x32, wh_ref, row_pos, d * W, M)
        z32 = jnp.maximum(acc1 + b1_ref[...], 0.0)

        # conv1x3 (dilation d along W); BN scale folded into ww, bias+shift in t2
        acc2 = dir_conv(z32, ww_ref, w_pos, d, W)
        y = acc2 + t2_ref[...]
        if with_residual:
            y = y + res_ref[...].reshape(M, C).astype(jnp.float32)
        o_ref[...] = jnp.maximum(y, 0.0).astype(o_ref.dtype).reshape(H, W, C)

    return kernel


def _fused_pair(x, wh, b1, ww, t2, res=None, *, dilation):
    """One (3x1 conv, ReLU, 1x3 conv, BN, [+res], ReLU) pair as a single pallas_call."""
    N, H, W, C = x.shape
    kernel = _make_pair_kernel(H, W, C, dilation, res is not None)

    img_spec = pl.BlockSpec((None, H, W, C), lambda n: (n, 0, 0, 0))
    in_specs = [
        img_spec,                                      # x (one image per step)
        pl.BlockSpec((3, C, C), lambda n: (0, 0, 0)),  # 3x1 taps (Cin, Cout), resident
        pl.BlockSpec((1, C), lambda n: (0, 0)),        # 3x1 conv bias
        pl.BlockSpec((3, C, C), lambda n: (0, 0, 0)),  # 1x3 taps, BN-scaled, resident
        pl.BlockSpec((1, C), lambda n: (0, 0)),        # folded bias*scale + shift
    ]
    args = [x, wh, b1, ww, t2]
    if res is not None:
        in_specs.append(img_spec)                      # residual (block input)
        args.append(res)

    return pl.pallas_call(
        kernel,
        grid=(N,),
        in_specs=in_specs,
        out_specs=img_spec,
        out_shape=jax.ShapeDtypeStruct((N, H, W, C), jnp.bfloat16),
        compiler_params=pltpu.CompilerParams(
            dimension_semantics=("parallel",),          # shard batch across TCs
            vmem_limit_bytes=48 * 1024 * 1024,          # headroom under v7x 64 MiB
        ),
    )(*args)


# ----------------------------------------------------------------------------
# Whole-module forward (jitted end to end)
# ----------------------------------------------------------------------------

@functools.partial(jax.jit, static_argnames=("dilated",))
def non_bottleneck_1d_forward(prep, x, dilated):
    """x: (N, H, W, C) bf16 NHWC.  Eval-mode forward of the PyTorch module."""
    y = _fused_pair(x, prep["wh1"], prep["b1"], prep["ww1"], prep["t1"],
                    dilation=1)
    # Dropout2d is identity in eval mode (see TODO at top for training mode).
    y = _fused_pair(y, prep["wh2"], prep["b2"], prep["ww2"], prep["t2"],
                    res=x, dilation=dilated)
    return y


# ----------------------------------------------------------------------------
# One-time parameter preparation (weight relayout + bias/BN folding)
# ----------------------------------------------------------------------------

def bn_affine(bn):
    scale = bn["gamma"] * jax.lax.rsqrt(bn["var"] + bn["eps"])
    shift = bn["beta"] - bn["mean"] * scale
    return scale, shift


def prepare_params(p):
    """PyTorch conv weight (Cout,Cin,kh,kw) -> per-tap (3,Cin,Cout) bf16 matrices;
    conv bias + BatchNorm affine folded so the kernel epilogue is a single add."""
    s1, t1 = bn_affine(p["bn1"])
    s2, t2 = bn_affine(p["bn2"])

    def h_taps(w):   # (Cout, Cin, 3, 1) -> (3, Cin, Cout), tap k <-> H offset (k-1)*d
        return jnp.transpose(w[:, :, :, 0], (2, 1, 0))

    def w_taps(w):   # (Cout, Cin, 1, 3) -> (3, Cin, Cout), tap k <-> W offset (k-1)*d
        return jnp.transpose(w[:, :, 0, :], (2, 1, 0))

    return {
        "wh1": h_taps(p["conv3x1_1"]["w"]).astype(jnp.bfloat16),
        "b1": p["conv3x1_1"]["b"].reshape(1, -1),
        "ww1": (w_taps(p["conv1x3_1"]["w"]) * s1[None, None, :]).astype(jnp.bfloat16),
        "t1": (p["conv1x3_1"]["b"] * s1 + t1).reshape(1, -1),
        "wh2": h_taps(p["conv3x1_2"]["w"]).astype(jnp.bfloat16),
        "b2": p["conv3x1_2"]["b"].reshape(1, -1),
        "ww2": (w_taps(p["conv1x3_2"]["w"]) * s2[None, None, :]).astype(jnp.bfloat16),
        "t2": (p["conv1x3_2"]["b"] * s2 + t2).reshape(1, -1),
    }


# ----------------------------------------------------------------------------
# Deterministic parameter init (matches the PyTorch module's tensor shapes)
# ----------------------------------------------------------------------------

def init_non_bottleneck_1d(key, chann):
    def conv_init(k, cout, cin, kh, kw):
        k1, k2 = jax.random.split(k)
        bound = (cin * kh * kw) ** -0.5
        return {"w": jax.random.uniform(k1, (cout, cin, kh, kw), jnp.float32,
                                        -bound, bound),
                "b": jax.random.uniform(k2, (cout,), jnp.float32, -bound, bound)}

    def bn_init(k, c):
        k1, k2, k3, k4 = jax.random.split(k, 4)
        return {"gamma": 1.0 + 0.2 * jax.random.normal(k1, (c,), jnp.float32),
                "beta": 0.1 * jax.random.normal(k2, (c,), jnp.float32),
                "mean": 0.1 * jax.random.normal(k3, (c,), jnp.float32),
                "var": jax.random.uniform(k4, (c,), jnp.float32, 0.5, 1.5),
                "eps": 1e-3}

    ks = jax.random.split(key, 6)
    return {"conv3x1_1": conv_init(ks[0], chann, chann, 3, 1),
            "conv1x3_1": conv_init(ks[1], chann, chann, 1, 3),
            "bn1": bn_init(ks[2], chann),
            "conv3x1_2": conv_init(ks[3], chann, chann, 3, 1),
            "conv1x3_2": conv_init(ks[4], chann, chann, 1, 3),
            "bn2": bn_init(ks[5], chann)}


# ----------------------------------------------------------------------------
# Pure-JAX f32 reference (same math as the PyTorch module, eval mode, NHWC)
# ----------------------------------------------------------------------------

def _conv_ref(x, w, b, dil, pad):
    y = jax.lax.conv_general_dilated(
        x, jnp.transpose(w, (2, 3, 1, 0)),
        window_strides=(1, 1),
        padding=((pad[0], pad[0]), (pad[1], pad[1])),
        rhs_dilation=dil,
        dimension_numbers=("NHWC", "HWIO", "NHWC"))
    return y + b.reshape(1, 1, 1, -1)


def reference_forward(p, x, dilated):
    s1, t1 = bn_affine(p["bn1"])
    s2, t2 = bn_affine(p["bn2"])
    y = jax.nn.relu(_conv_ref(x, p["conv3x1_1"]["w"], p["conv3x1_1"]["b"],
                              (1, 1), (1, 0)))
    y = _conv_ref(y, p["conv1x3_1"]["w"], p["conv1x3_1"]["b"], (1, 1), (0, 1))
    y = jax.nn.relu(y * s1 + t1)
    y = jax.nn.relu(_conv_ref(y, p["conv3x1_2"]["w"], p["conv3x1_2"]["b"],
                              (dilated, 1), (dilated, 0)))
    y = _conv_ref(y, p["conv1x3_2"]["w"], p["conv1x3_2"]["b"],
                  (1, dilated), (0, dilated))
    y = y * s2 + t2                      # dropout: identity in eval mode
    return jax.nn.relu(y + x)


# ----------------------------------------------------------------------------
# Main
# ----------------------------------------------------------------------------

if __name__ == "__main__":
    key = jax.random.PRNGKey(0)
    kp, kx = jax.random.split(key)

    # Small but TPU-friendly config: chann=128 keeps the channel (lane) dim
    # dense (>=128 -> unmasked full-lane stores); dilated=2 matches ERFNet use.
    N, H, W = 2, 16, 16
    chann, dilated, dropprob = 128, 2, 0.3   # dropprob unused in eval mode

    params = init_non_bottleneck_1d(kp, chann)
    prep = prepare_params(params)            # one-time relayout + BN folding

    # PyTorch-convention NCHW input -> NHWC, bf16 activations.
    x_nchw = jax.random.normal(kx, (N, chann, H, W), jnp.float32)
    x_nhwc = jnp.transpose(x_nchw, (0, 2, 3, 1))
    x_bf16 = x_nhwc.astype(jnp.bfloat16)

    out = non_bottleneck_1d_forward(prep, x_bf16, dilated=dilated)
    out = jax.block_until_ready(out)
    assert out.shape == (N, H, W, chann), out.shape

    # Correctness check against the f32 reference (bf16 matmuls -> loose tol).
    ref = reference_forward(params, x_bf16.astype(jnp.float32), dilated)
    err = jnp.max(jnp.abs(out.astype(jnp.float32) - ref) / (jnp.abs(ref) + 1.0))
    assert float(err) < 0.08, f"max scaled err {float(err)}"

    print("KERNEL_OK")
</pallas_src>

<mosaic_0001>
module attributes {stable_mosaic.version = 11 : i64} {
  func.func @kernel(%arg0: i32, %arg1: memref<1x16x16x128xbf16, #tpu.memory_space<vmem>>, %arg2: memref<3x128x128xbf16, #tpu.memory_space<vmem>>, %arg3: memref<1x128xf32, #tpu.memory_space<vmem>>, %arg4: memref<3x128x128xbf16, #tpu.memory_space<vmem>>, %arg5: memref<1x128xf32, #tpu.memory_space<vmem>>, %arg6: memref<1x16x16x128xbf16, #tpu.memory_space<vmem>>, %arg7: memref<1x16x16x128xbf16, #tpu.memory_space<vmem>>) attributes {dimension_semantics = [#tpu.dimension_semantics<parallel>], iteration_bounds = array<i64: 2>, scalar_prefetch = 0 : i64, scratch_operands = 0 : i64, tpu.core_type = #tpu.core_type<tc>, window_params = [{transform_indices = @transform_0, window_bounds = array<i64: 1, 16, 16, 128>}, {pipeline_mode = #tpu.pipeline_mode<synchronous>, transform_indices = @transform_1, window_bounds = array<i64: 3, 128, 128>}, {pipeline_mode = #tpu.pipeline_mode<synchronous>, transform_indices = @transform_2, window_bounds = array<i64: 1, 128>}, {pipeline_mode = #tpu.pipeline_mode<synchronous>, transform_indices = @transform_3, window_bounds = array<i64: 3, 128, 128>}, {pipeline_mode = #tpu.pipeline_mode<synchronous>, transform_indices = @transform_4, window_bounds = array<i64: 1, 128>}, {transform_indices = @transform_5, window_bounds = array<i64: 1, 16, 16, 128>}, {transform_indices = @transform_6, window_bounds = array<i64: 1, 16, 16, 128>}]} {
    %c0 = arith.constant 0 : index
    %c0_0 = arith.constant 0 : index
    %c0_1 = arith.constant 0 : index
    %c0_2 = arith.constant 0 : index
    %0 = vector.load %arg1[%c0, %c0_0, %c0_1, %c0_2] : memref<1x16x16x128xbf16, #tpu.memory_space<vmem>>, vector<1x16x16x128xbf16>
    %1 = vector.shape_cast %0 : vector<1x16x16x128xbf16> to vector<16x16x128xbf16>
    %2 = vector.shape_cast %1 : vector<16x16x128xbf16> to vector<256x128xbf16>
    %3 = arith.extf %2 : vector<256x128xbf16> to vector<256x128xf32>
    %4 = tpu.iota {dimensions = array<i32: 0>} : vector<256x128xi32>
    %5 = tpu.iota {dimensions = array<i32: 1>} : vector<16x16x128xi32>
    %6 = vector.shape_cast %5 : vector<16x16x128xi32> to vector<256x128xi32>
    %7 = arith.truncf %3 : vector<256x128xf32> to vector<256x128xbf16>
    %c1 = arith.constant 1 : index
    %c0_3 = arith.constant 0 : index
    %c0_4 = arith.constant 0 : index
    %8 = vector.load %arg2[%c1, %c0_3, %c0_4] : memref<3x128x128xbf16, #tpu.memory_space<vmem>>, vector<1x128x128xbf16>
    %9 = vector.shape_cast %8 : vector<1x128x128xbf16> to vector<128x128xbf16>
    %cst = arith.constant dense<0.000000e+00> : vector<256x128xf32>
    %10 = tpu.matmul %7, %9, %cst {dimension_numbers = #tpu.dot_dimension_numbers<[1], [0], [0], [1], [0, 0, 1, 1], [], []>} : vector<256x128xbf16>, vector<128x128xbf16>, vector<256x128xf32> -> vector<256x128xf32>
    %c32_i32 = arith.constant 32 : i32
    %11 = tpu.dynamic_rotate %3 by %c32_i32 dim 0 : vector<256x128xf32>, i32 -> vector<256x128xf32>
    %c32_i32_5 = arith.constant 32 : i32
    %12 = vector.broadcast %c32_i32_5 : i32 to vector<256x128xi32>
    %13 = arith.cmpi sge, %4, %12 : vector<256x128xi32>
    %cst_6 = arith.constant 0.000000e+00 : f32
    %14 = vector.broadcast %cst_6 : f32 to vector<256x128xf32>
    %15 = arith.select %13, %11, %14 : vector<256x128xi1>, vector<256x128xf32>
    %16 = arith.truncf %15 : vector<256x128xf32> to vector<256x128xbf16>
    %c0_7 = arith.constant 0 : index
    %c0_8 = arith.constant 0 : index
    %c0_9 = arith.constant 0 : index
    %17 = vector.load %arg2[%c0_7, %c0_8, %c0_9] : memref<3x128x128xbf16, #tpu.memory_space<vmem>>, vector<1x128x128xbf16>
    %18 = vector.shape_cast %17 : vector<1x128x128xbf16> to vector<128x128xbf16>
    %cst_10 = arith.constant dense<0.000000e+00> : vector<256x128xf32>
    %19 = tpu.matmul %16, %18, %cst_10 {dimension_numbers = #tpu.dot_dimension_numbers<[1], [0], [0], [1], [0, 0, 1, 1], [], []>} : vector<256x128xbf16>, vector<128x128xbf16>, vector<256x128xf32> -> vector<256x128xf32>
    %20 = arith.addf %10, %19 : vector<256x128xf32>
    %c224_i32 = arith.constant 224 : i32
    %21 = tpu.dynamic_rotate %3 by %c224_i32 dim 0 : vector<256x128xf32>, i32 -> vector<256x128xf32>
    %c32_i32_11 = arith.constant 32 : i32
    %22 = vector.broadcast %c32_i32_11 : i32 to vector<256x128xi32>
    %23 = arith.addi %4, %22 : vector<256x128xi32>
    %c256_i32 = arith.constant 256 : i32
    %24 = vector.broadcast %c256_i32 : i32 to vector<256x128xi32>
    %25 = arith.cmpi slt, %23, %24 : vector<256x128xi32>
    %cst_12 = arith.constant 0.000000e+00 : f32
    %26 = vector.broadcast %cst_12 : f32 to vector<256x128xf32>
    %27 = arith.select %25, %21, %26 : vector<256x128xi1>, vector<256x128xf32>
    %28 = arith.truncf %27 : vector<256x128xf32> to vector<256x128xbf16>
    %c2 = arith.constant 2 : index
    %c0_13 = arith.constant 0 : index
    %c0_14 = arith.constant 0 : index
    %29 = vector.load %arg2[%c2, %c0_13, %c0_14] : memref<3x128x128xbf16, #tpu.memory_space<vmem>>, vector<1x128x128xbf16>
    %30 = vector.shape_cast %29 : vector<1x128x128xbf16> to vector<128x128xbf16>
    %cst_15 = arith.constant dense<0.000000e+00> : vector<256x128xf32>
    %31 = tpu.matmul %28, %30, %cst_15 {dimension_numbers = #tpu.dot_dimension_numbers<[1], [0], [0], [1], [0, 0, 1, 1], [], []>} : vector<256x128xbf16>, vector<128x128xbf16>, vector<256x128xf32> -> vector<256x128xf32>
    %32 = arith.addf %20, %31 : vector<256x128xf32>
    %c0_16 = arith.constant 0 : index
    %c0_17 = arith.constant 0 : index
    %33 = vector.load %arg3[%c0_16, %c0_17] : memref<1x128xf32, #tpu.memory_space<vmem>>, vector<1x128xf32>
    %34 = vector.broadcast %33 : vector<1x128xf32> to vector<256x128xf32>
    %35 = arith.addf %32, %34 : vector<256x128xf32>
    %cst_18 = arith.constant 0.000000e+00 : f32
    %36 = vector.broadcast %cst_18 : f32 to vector<256x128xf32>
    %37 = arith.maximumf %35, %36 : vector<256x128xf32>
    %38 = arith.truncf %37 : vector<256x128xf32> to vector<256x128xbf16>
    %c1_19 = arith.constant 1 : index
    %c0_20 = arith.constant 0 : index
    %c0_21 = arith.constant 0 : index
    %39 = vector.load %arg4[%c1_19, %c0_20, %c0_21] : memref<3x128x128xbf16, #tpu.memory_space<vmem>>, vector<1x128x128xbf16>
    %40 = vector.shape_cast %39 : vector<1x128x128xbf16> to vector<128x128xbf16>
    %cst_22 = arith.constant dense<0.000000e+00> : vector<256x128xf32>
    %41 = tpu.matmul %38, %40, %cst_22 {dimension_numbers = #tpu.dot_dimension_numbers<[1], [0], [0], [1], [0, 0, 1, 1], [], []>} : vector<256x128xbf16>, vector<128x128xbf16>, vector<256x128xf32> -> vector<256x128xf32>
    %c2_i32 = arith.constant 2 : i32
    %42 = tpu.dynamic_rotate %37 by %c2_i32 dim 0 : vector<256x128xf32>, i32 -> vector<256x128xf32>
    %c2_i32_23 = arith.constant 2 : i32
    %43 = vector.broadcast %c2_i32_23 : i32 to vector<256x128xi32>
    %44 = arith.cmpi sge, %6, %43 : vector<256x128xi32>
    %cst_24 = arith.constant 0.000000e+00 : f32
    %45 = vector.broadcast %cst_24 : f32 to vector<256x128xf32>
    %46 = arith.select %44, %42, %45 : vector<256x128xi1>, vector<256x128xf32>
    %47 = arith.truncf %46 : vector<256x128xf32> to vector<256x128xbf16>
    %c0_25 = arith.constant 0 : index
    %c0_26 = arith.constant 0 : index
    %c0_27 = arith.constant 0 : index
    %48 = vector.load %arg4[%c0_25, %c0_26, %c0_27] : memref<3x128x128xbf16, #tpu.memory_space<vmem>>, vector<1x128x128xbf16>
    %49 = vector.shape_cast %48 : vector<1x128x128xbf16> to vector<128x128xbf16>
    %cst_28 = arith.constant dense<0.000000e+00> : vector<256x128xf32>
    %50 = tpu.matmul %47, %49, %cst_28 {dimension_numbers = #tpu.dot_dimension_numbers<[1], [0], [0], [1], [0, 0, 1, 1], [], []>} : vector<256x128xbf16>, vector<128x128xbf16>, vector<256x128xf32> -> vector<256x128xf32>
    %51 = arith.addf %41, %50 : vector<256x128xf32>
    %c254_i32 = arith.constant 254 : i32
    %52 = tpu.dynamic_rotate %37 by %c254_i32 dim 0 : vector<256x128xf32>, i32 -> vector<256x128xf32>
    %c2_i32_29 = arith.constant 2 : i32
    %53 = vector.broadcast %c2_i32_29 : i32 to vector<256x128xi32>
    %54 = arith.addi %6, %53 : vector<256x128xi32>
    %c16_i32 = arith.constant 16 : i32
    %55 = vector.broadcast %c16_i32 : i32 to vector<256x128xi32>
    %56 = arith.cmpi slt, %54, %55 : vector<256x128xi32>
    %cst_30 = arith.constant 0.000000e+00 : f32
    %57 = vector.broadcast %cst_30 : f32 to vector<256x128xf32>
    %58 = arith.select %56, %52, %57 : vector<256x128xi1>, vector<256x128xf32>
    %59 = arith.truncf %58 : vector<256x128xf32> to vector<256x128xbf16>
    %c2_31 = arith.constant 2 : index
    %c0_32 = arith.constant 0 : index
    %c0_33 = arith.constant 0 : index
    %60 = vector.load %arg4[%c2_31, %c0_32, %c0_33] : memref<3x128x128xbf16, #tpu.memory_space<vmem>>, vector<1x128x128xbf16>
    %61 = vector.shape_cast %60 : vector<1x128x128xbf16> to vector<128x128xbf16>
    %cst_34 = arith.constant dense<0.000000e+00> : vector<256x128xf32>
    %62 = tpu.matmul %59, %61, %cst_34 {dimension_numbers = #tpu.dot_dimension_numbers<[1], [0], [0], [1], [0, 0, 1, 1], [], []>} : vector<256x128xbf16>, vector<128x128xbf16>, vector<256x128xf32> -> vector<256x128xf32>
    %63 = arith.addf %51, %62 : vector<256x128xf32>
    %c0_35 = arith.constant 0 : index
    %c0_36 = arith.constant 0 : index
    %64 = vector.load %arg5[%c0_35, %c0_36] : memref<1x128xf32, #tpu.memory_space<vmem>>, vector<1x128xf32>
    %65 = vector.broadcast %64 : vector<1x128xf32> to vector<256x128xf32>
    %66 = arith.addf %63, %65 : vector<256x128xf32>
    %c0_37 = arith.constant 0 : index
    %c0_38 = arith.constant 0 : index
    %c0_39 = arith.constant 0 : index
    %c0_40 = arith.constant 0 : index
    %67 = vector.load %arg6[%c0_37, %c0_38, %c0_39, %c0_40] : memref<1x16x16x128xbf16, #tpu.memory_space<vmem>>, vector<1x16x16x128xbf16>
    %68 = vector.shape_cast %67 : vector<1x16x16x128xbf16> to vector<16x16x128xbf16>
    %69 = vector.shape_cast %68 : vector<16x16x128xbf16> to vector<256x128xbf16>
    %70 = arith.extf %69 : vector<256x128xbf16> to vector<256x128xf32>
    %71 = arith.addf %66, %70 : vector<256x128xf32>
    %cst_41 = arith.constant 0.000000e+00 : f32
    %72 = vector.broadcast %cst_41 : f32 to vector<256x128xf32>
    %73 = arith.maximumf %71, %72 : vector<256x128xf32>
    %74 = arith.truncf %73 : vector<256x128xf32> to vector<256x128xbf16>
    %75 = vector.shape_cast %74 : vector<256x128xbf16> to vector<16x16x128xbf16>
    %c0_42 = arith.constant 0 : index
    %c0_43 = arith.constant 0 : index
    %c0_44 = arith.constant 0 : index
    %c0_45 = arith.constant 0 : index
    %76 = vector.load %arg7[%c0_42, %c0_43, %c0_44, %c0_45] : memref<1x16x16x128xbf16, #tpu.memory_space<vmem>>, vector<1x16x16x128xbf16>
    %77 = vector.shape_cast %76 : vector<1x16x16x128xbf16> to vector<16x16x128xbf16>
    %78 = vector.shape_cast %75 : vector<16x16x128xbf16> to vector<1x16x16x128xbf16>
    tpu.vector_store %arg7[%c0_42, %c0_43, %c0_44, %c0_45], %78 {strides = array<i32>} : memref<1x16x16x128xbf16, #tpu.memory_space<vmem>>, vector<1x16x16x128xbf16>,
    return
  }
  func.func @transform_0(%arg0: i32) -> (i32, i32, i32, i32) {
    %c0_i32 = arith.constant 0 : i32
    %c0_i32_0 = arith.constant 0 : i32
    %c0_i32_1 = arith.constant 0 : i32
    %c0_i32_2 = arith.constant 0 : i32
    return %arg0, %c0_i32, %c0_i32_0, %c0_i32_1 : i32, i32, i32, i32
  }
  func.func @transform_1(%arg0: i32) -> (i32, i32, i32) {
    %c0_i32 = arith.constant 0 : i32
    %c0_i32_0 = arith.constant 0 : i32
    %c0_i32_1 = arith.constant 0 : i32
    %c0_i32_2 = arith.constant 0 : i32
    return %c0_i32, %c0_i32_0, %c0_i32_1 : i32, i32, i32
  }
  func.func @transform_2(%arg0: i32) -> (i32, i32) {
    %c0_i32 = arith.constant 0 : i32
    %c0_i32_0 = arith.constant 0 : i32
    %c0_i32_1 = arith.constant 0 : i32
    return %c0_i32, %c0_i32_0 : i32, i32
  }
  func.func @transform_3(%arg0: i32) -> (i32, i32, i32) {
    %c0_i32 = arith.constant 0 : i32
    %c0_i32_0 = arith.constant 0 : i32
    %c0_i32_1 = arith.constant 0 : i32
    %c0_i32_2 = arith.constant 0 : i32
    return %c0_i32, %c0_i32_0, %c0_i32_1 : i32, i32, i32
  }
  func.func @transform_4(%arg0: i32) -> (i32, i32) {
    %c0_i32 = arith.constant 0 : i32
    %c0_i32_0 = arith.constant 0 : i32
    %c0_i32_1 = arith.constant 0 : i32
    return %c0_i32, %c0_i32_0 : i32, i32
  }
  func.func @transform_5(%arg0: i32) -> (i32, i32, i32, i32) {
    %c0_i32 = arith.constant 0 : i32
    %c0_i32_0 = arith.constant 0 : i32
    %c0_i32_1 = arith.constant 0 : i32
    %c0_i32_2 = arith.constant 0 : i32
    return %arg0, %c0_i32, %c0_i32_0, %c0_i32_1 : i32, i32, i32, i32
  }
  func.func @transform_6(%arg0: i32) -> (i32, i32, i32, i32) {
    %c0_i32 = arith.constant 0 : i32
    %c0_i32_0 = arith.constant 0 : i32
    %c0_i32_1 = arith.constant 0 : i32
    %c0_i32_2 = arith.constant 0 : i32
    return %arg0, %c0_i32, %c0_i32_0, %c0_i32_1 : i32, i32, i32, i32
  }
}

module attributes {stable_mosaic.version = 11 : i64} {
  func.func @kernel(%arg0: i32, %arg1: memref<1x16x16x128xbf16, #tpu.memory_space<vmem>>, %arg2: memref<3x128x128xbf16, #tpu.memory_space<vmem>>, %arg3: memref<1x128xf32, #tpu.memory_space<vmem>>, %arg4: memref<3x128x128xbf16, #tpu.memory_space<vmem>>, %arg5: memref<1x128xf32, #tpu.memory_space<vmem>>, %arg6: memref<1x16x16x128xbf16, #tpu.memory_space<vmem>>) attributes {dimension_semantics = [#tpu.dimension_semantics<parallel>], iteration_bounds = array<i64: 2>, scalar_prefetch = 0 : i64, scratch_operands = 0 : i64, tpu.core_type = #tpu.core_type<tc>, window_params = [{transform_indices = @transform_0, window_bounds = array<i64: 1, 16, 16, 128>}, {pipeline_mode = #tpu.pipeline_mode<synchronous>, transform_indices = @transform_1, window_bounds = array<i64: 3, 128, 128>}, {pipeline_mode = #tpu.pipeline_mode<synchronous>, transform_indices = @transform_2, window_bounds = array<i64: 1, 128>}, {pipeline_mode = #tpu.pipeline_mode<synchronous>, transform_indices = @transform_3, window_bounds = array<i64: 3, 128, 128>}, {pipeline_mode = #tpu.pipeline_mode<synchronous>, transform_indices = @transform_4, window_bounds = array<i64: 1, 128>}, {transform_indices = @transform_5, window_bounds = array<i64: 1, 16, 16, 128>}]} {
    %c0 = arith.constant 0 : index
    %c0_0 = arith.constant 0 : index
    %c0_1 = arith.constant 0 : index
    %c0_2 = arith.constant 0 : index
    %0 = vector.load %arg1[%c0, %c0_0, %c0_1, %c0_2] : memref<1x16x16x128xbf16, #tpu.memory_space<vmem>>, vector<1x16x16x128xbf16>
    %1 = vector.shape_cast %0 : vector<1x16x16x128xbf16> to vector<16x16x128xbf16>
    %2 = vector.shape_cast %1 : vector<16x16x128xbf16> to vector<256x128xbf16>
    %3 = arith.extf %2 : vector<256x128xbf16> to vector<256x128xf32>
    %4 = tpu.iota {dimensions = array<i32: 0>} : vector<256x128xi32>
    %5 = tpu.iota {dimensions = array<i32: 1>} : vector<16x16x128xi32>
    %6 = vector.shape_cast %5 : vector<16x16x128xi32> to vector<256x128xi32>
    %7 = arith.truncf %3 : vector<256x128xf32> to vector<256x128xbf16>
    %c1 = arith.constant 1 : index
    %c0_3 = arith.constant 0 : index
    %c0_4 = arith.constant 0 : index
    %8 = vector.load %arg2[%c1, %c0_3, %c0_4] : memref<3x128x128xbf16, #tpu.memory_space<vmem>>, vector<1x128x128xbf16>
    %9 = vector.shape_cast %8 : vector<1x128x128xbf16> to vector<128x128xbf16>
    %cst = arith.constant dense<0.000000e+00> : vector<256x128xf32>
    %10 = tpu.matmul %7, %9, %cst {dimension_numbers = #tpu.dot_dimension_numbers<[1], [0], [0], [1], [0, 0, 1, 1], [], []>} : vector<256x128xbf16>, vector<128x128xbf16>, vector<256x128xf32> -> vector<256x128xf32>
    %c16_i32 = arith.constant 16 : i32
    %11 = tpu.dynamic_rotate %3 by %c16_i32 dim 0 : vector<256x128xf32>, i32 -> vector<256x128xf32>
    %c16_i32_5 = arith.constant 16 : i32
    %12 = vector.broadcast %c16_i32_5 : i32 to vector<256x128xi32>
    %13 = arith.cmpi sge, %4, %12 : vector<256x128xi32>
    %cst_6 = arith.constant 0.000000e+00 : f32
    %14 = vector.broadcast %cst_6 : f32 to vector<256x128xf32>
    %15 = arith.select %13, %11, %14 : vector<256x128xi1>, vector<256x128xf32>
    %16 = arith.truncf %15 : vector<256x128xf32> to vector<256x128xbf16>
    %c0_7 = arith.constant 0 : index
    %c0_8 = arith.constant 0 : index
    %c0_9 = arith.constant 0 : index
    %17 = vector.load %arg2[%c0_7, %c0_8, %c0_9] : memref<3x128x128xbf16, #tpu.memory_space<vmem>>, vector<1x128x128xbf16>
    %18 = vector.shape_cast %17 : vector<1x128x128xbf16> to vector<128x128xbf16>
    %cst_10 = arith.constant dense<0.000000e+00> : vector<256x128xf32>
    %19 = tpu.matmul %16, %18, %cst_10 {dimension_numbers = #tpu.dot_dimension_numbers<[1], [0], [0], [1], [0, 0, 1, 1], [], []>} : vector<256x128xbf16>, vector<128x128xbf16>, vector<256x128xf32> -> vector<256x128xf32>
    %20 = arith.addf %10, %19 : vector<256x128xf32>
    %c240_i32 = arith.constant 240 : i32
    %21 = tpu.dynamic_rotate %3 by %c240_i32 dim 0 : vector<256x128xf32>, i32 -> vector<256x128xf32>
    %c16_i32_11 = arith.constant 16 : i32
    %22 = vector.broadcast %c16_i32_11 : i32 to vector<256x128xi32>
    %23 = arith.addi %4, %22 : vector<256x128xi32>
    %c256_i32 = arith.constant 256 : i32
    %24 = vector.broadcast %c256_i32 : i32 to vector<256x128xi32>
    %25 = arith.cmpi slt, %23, %24 : vector<256x128xi32>
    %cst_12 = arith.constant 0.000000e+00 : f32
    %26 = vector.broadcast %cst_12 : f32 to vector<256x128xf32>
    %27 = arith.select %25, %21, %26 : vector<256x128xi1>, vector<256x128xf32>
    %28 = arith.truncf %27 : vector<256x128xf32> to vector<256x128xbf16>
    %c2 = arith.constant 2 : index
    %c0_13 = arith.constant 0 : index
    %c0_14 = arith.constant 0 : index
    %29 = vector.load %arg2[%c2, %c0_13, %c0_14] : memref<3x128x128xbf16, #tpu.memory_space<vmem>>, vector<1x128x128xbf16>
    %30 = vector.shape_cast %29 : vector<1x128x128xbf16> to vector<128x128xbf16>
    %cst_15 = arith.constant dense<0.000000e+00> : vector<256x128xf32>
    %31 = tpu.matmul %28, %30, %cst_15 {dimension_numbers = #tpu.dot_dimension_numbers<[1], [0], [0], [1], [0, 0, 1, 1], [], []>} : vector<256x128xbf16>, vector<128x128xbf16>, vector<256x128xf32> -> vector<256x128xf32>
    %32 = arith.addf %20, %31 : vector<256x128xf32>
    %c0_16 = arith.constant 0 : index
    %c0_17 = arith.constant 0 : index
    %33 = vector.load %arg3[%c0_16, %c0_17] : memref<1x128xf32, #tpu.memory_space<vmem>>, vector<1x128xf32>
    %34 = vector.broadcast %33 : vector<1x128xf32> to vector<256x128xf32>
    %35 = arith.addf %32, %34 : vector<256x128xf32>
    %cst_18 = arith.constant 0.000000e+00 : f32
    %36 = vector.broadcast %cst_18 : f32 to vector<256x128xf32>
    %37 = arith.maximumf %35, %36 : vector<256x128xf32>
    %38 = arith.truncf %37 : vector<256x128xf32> to vector<256x128xbf16>
    %c1_19 = arith.constant 1 : index
    %c0_20 = arith.constant 0 : index
    %c0_21 = arith.constant 0 : index
    %39 = vector.load %arg4[%c1_19, %c0_20, %c0_21] : memref<3x128x128xbf16, #tpu.memory_space<vmem>>, vector<1x128x128xbf16>
    %40 = vector.shape_cast %39 : vector<1x128x128xbf16> to vector<128x128xbf16>
    %cst_22 = arith.constant dense<0.000000e+00> : vector<256x128xf32>
    %41 = tpu.matmul %38, %40, %cst_22 {dimension_numbers = #tpu.dot_dimension_numbers<[1], [0], [0], [1], [0, 0, 1, 1], [], []>} : vector<256x128xbf16>, vector<128x128xbf16>, vector<256x128xf32> -> vector<256x128xf32>
    %c1_i32 = arith.constant 1 : i32
    %42 = tpu.dynamic_rotate %37 by %c1_i32 dim 0 : vector<256x128xf32>, i32 -> vector<256x128xf32>
    %c1_i32_23 = arith.constant 1 : i32
    %43 = vector.broadcast %c1_i32_23 : i32 to vector<256x128xi32>
    %44 = arith.cmpi sge, %6, %43 : vector<256x128xi32>
    %cst_24 = arith.constant 0.000000e+00 : f32
    %45 = vector.broadcast %cst_24 : f32 to vector<256x128xf32>
    %46 = arith.select %44, %42, %45 : vector<256x128xi1>, vector<256x128xf32>
    %47 = arith.truncf %46 : vector<256x128xf32> to vector<256x128xbf16>
    %c0_25 = arith.constant 0 : index
    %c0_26 = arith.constant 0 : index
    %c0_27 = arith.constant 0 : index
    %48 = vector.load %arg4[%c0_25, %c0_26, %c0_27] : memref<3x128x128xbf16, #tpu.memory_space<vmem>>, vector<1x128x128xbf16>
    %49 = vector.shape_cast %48 : vector<1x128x128xbf16> to vector<128x128xbf16>
    %cst_28 = arith.constant dense<0.000000e+00> : vector<256x128xf32>
    %50 = tpu.matmul %47, %49, %cst_28 {dimension_numbers = #tpu.dot_dimension_numbers<[1], [0], [0], [1], [0, 0, 1, 1], [], []>} : vector<256x128xbf16>, vector<128x128xbf16>, vector<256x128xf32> -> vector<256x128xf32>
    %51 = arith.addf %41, %50 : vector<256x128xf32>
    %c255_i32 = arith.constant 255 : i32
    %52 = tpu.dynamic_rotate %37 by %c255_i32 dim 0 : vector<256x128xf32>, i32 -> vector<256x128xf32>
    %c1_i32_29 = arith.constant 1 : i32
    %53 = vector.broadcast %c1_i32_29 : i32 to vector<256x128xi32>
    %54 = arith.addi %6, %53 : vector<256x128xi32>
    %c16_i32_30 = arith.constant 16 : i32
    %55 = vector.broadcast %c16_i32_30 : i32 to vector<256x128xi32>
    %56 = arith.cmpi slt, %54, %55 : vector<256x128xi32>
    %cst_31 = arith.constant 0.000000e+00 : f32
    %57 = vector.broadcast %cst_31 : f32 to vector<256x128xf32>
    %58 = arith.select %56, %52, %57 : vector<256x128xi1>, vector<256x128xf32>
    %59 = arith.truncf %58 : vector<256x128xf32> to vector<256x128xbf16>
    %c2_32 = arith.constant 2 : index
    %c0_33 = arith.constant 0 : index
    %c0_34 = arith.constant 0 : index
    %60 = vector.load %arg4[%c2_32, %c0_33, %c0_34] : memref<3x128x128xbf16, #tpu.memory_space<vmem>>, vector<1x128x128xbf16>
    %61 = vector.shape_cast %60 : vector<1x128x128xbf16> to vector<128x128xbf16>
    %cst_35 = arith.constant dense<0.000000e+00> : vector<256x128xf32>
    %62 = tpu.matmul %59, %61, %cst_35 {dimension_numbers = #tpu.dot_dimension_numbers<[1], [0], [0], [1], [0, 0, 1, 1], [], []>} : vector<256x128xbf16>, vector<128x128xbf16>, vector<256x128xf32> -> vector<256x128xf32>
    %63 = arith.addf %51, %62 : vector<256x128xf32>
    %c0_36 = arith.constant 0 : index
    %c0_37 = arith.constant 0 : index
    %64 = vector.load %arg5[%c0_36, %c0_37] : memref<1x128xf32, #tpu.memory_space<vmem>>, vector<1x128xf32>
    %65 = vector.broadcast %64 : vector<1x128xf32> to vector<256x128xf32>
    %66 = arith.addf %63, %65 : vector<256x128xf32>
    %cst_38 = arith.constant 0.000000e+00 : f32
    %67 = vector.broadcast %cst_38 : f32 to vector<256x128xf32>
    %68 = arith.maximumf %66, %67 : vector<256x128xf32>
    %69 = arith.truncf %68 : vector<256x128xf32> to vector<256x128xbf16>
    %70 = vector.shape_cast %69 : vector<256x128xbf16> to vector<16x16x128xbf16>
    %c0_39 = arith.constant 0 : index
    %c0_40 = arith.constant 0 : index
    %c0_41 = arith.constant 0 : index
    %c0_42 = arith.constant 0 : index
    %71 = vector.load %arg6[%c0_39, %c0_40, %c0_41, %c0_42] : memref<1x16x16x128xbf16, #tpu.memory_space<vmem>>, vector<1x16x16x128xbf16>
    %72 = vector.shape_cast %71 : vector<1x16x16x128xbf16> to vector<16x16x128xbf16>
    %73 = vector.shape_cast %70 : vector<16x16x128xbf16> to vector<1x16x16x128xbf16>
    tpu.vector_store %arg6[%c0_39, %c0_40, %c0_41, %c0_42], %73 {strides = array<i32>} : memref<1x16x16x128xbf16, #tpu.memory_space<vmem>>, vector<1x16x16x128xbf16>,
    return
  }
  func.func @transform_0(%arg0: i32) -> (i32, i32, i32, i32) {
    %c0_i32 = arith.constant 0 : i32
    %c0_i32_0 = arith.constant 0 : i32
    %c0_i32_1 = arith.constant 0 : i32
    %c0_i32_2 = arith.constant 0 : i32
    return %arg0, %c0_i32, %c0_i32_0, %c0_i32_1 : i32, i32, i32, i32
  }
  func.func @transform_1(%arg0: i32) -> (i32, i32, i32) {
    %c0_i32 = arith.constant 0 : i32
    %c0_i32_0 = arith.constant 0 : i32
    %c0_i32_1 = arith.constant 0 : i32
    %c0_i32_2 = arith.constant 0 : i32
    return %c0_i32, %c0_i32_0, %c0_i32_1 : i32, i32, i32
  }
  func.func @transform_2(%arg0: i32) -> (i32, i32) {
    %c0_i32 = arith.constant 0 : i32
    %c0_i32_0 = arith.constant 0 : i32
    %c0_i32_1 = arith.constant 0 : i32
    return %c0_i32, %c0_i32_0 : i32, i32
  }
  func.func @transform_3(%arg0: i32) -> (i32, i32, i32) {
    %c0_i32 = arith.constant 0 : i32
    %c0_i32_0 = arith.constant 0 : i32
    %c0_i32_1 = arith.constant 0 : i32
    %c0_i32_2 = arith.constant 0 : i32
    return %c0_i32, %c0_i32_0, %c0_i32_1 : i32, i32, i32
  }
  func.func @transform_4(%arg0: i32) -> (i32, i32) {
    %c0_i32 = arith.constant 0 : i32
    %c0_i32_0 = arith.constant 0 : i32
    %c0_i32_1 = arith.constant 0 : i32
    return %c0_i32, %c0_i32_0 : i32, i32
  }
  func.func @transform_5(%arg0: i32) -> (i32, i32, i32, i32) {
    %c0_i32 = arith.constant 0 : i32
    %c0_i32_0 = arith.constant 0 : i32
    %c0_i32_1 = arith.constant 0 : i32
    %c0_i32_2 = arith.constant 0 : i32
    return %arg0, %c0_i32, %c0_i32_0, %c0_i32_1 : i32, i32, i32, i32
  }
}

</mosaic_0001>

<bundles_post_ra>
// kernel: non_bottleneck_1d_forward.3
= control target key start
LH: loop header
LB: loop body
LE: loop exit
PB: predicated region body
PF: predicated region fallthrough
CT: control target
= control target key end

     0   :  { %s4159_s0 = inlined_call_operand.vmem [shape: bf16[2,16,16,128], index: 0, kind: input, shape index: {}]   ;;  %s4160_s1 = inlined_call_operand.hbm [shape: bf16[3,128,128], index: 1, kind: input, shape index: {}]   ;;  %s4161_s2 = inlined_call_operand.vmem [shape: f32[1,128], index: 2, kind: input, shape index: {}]   ;;  %s4162_s3 = inlined_call_operand.hbm [shape: bf16[3,128,128], index: 3, kind: input, shape index: {}]   ;;  %s4163_s4 = inlined_call_operand.vmem [shape: f32[1,128], index: 4, kind: input, shape index: {}]   ;;  %s4164_s5 = inlined_call_operand.hbm [shape: bf16[2,16,16,128], index: 5, kind: input, shape index: {}]   ;;  %s4165_s6 = inlined_call_operand.hbm [shape: bf16[2,16,16,128], index: 6, kind: output, shape index: {}]  }
   0x1   :  { %4169 = sst [smem:[#allocation13_spill]] %s4160_s1 }
   0x2   :  { %11 = vsyncpa [#allocation3], 0 }
   0x3   :  { %12 = vsyncpa [#allocation6], 0 }
   0x4   :  { %13 = vsyncpa [#allocation4], 0 }
   0x5   :  { %15 = vsyncpa [#allocation4 + $0x1], 0  ;;  %s3350_s21 = smov 0   ;;  %s3352_s22 = smov 0  }
   0x6   :  { %s3354_s23 = smov 0   ;;  %s3356_s24 = smov 0  }
   0x7 LB: > { %s3371_s25 = sadd.s32 4294967295, %s3305_s24   ;;  %s2357_s26 = sadd.s32 4294967294, %s3305_s24   ;;  %s3305_s24 = sphi %s3356_s24, %s4201_s24   ;;  %s3301_s23 = sphi %s3354_s23, %s4200_s23   ;;  %s3297_s22 = sphi %s3352_s22, %s4199_s22   ;;  %s3293_s21 = sphi %s3350_s21, %s4198_s21  }
   0x8   : > { %p151_p0 = scmp.ne.s32.totalorder %s3297_s22, %s3293_s21  ;;  %p152_p1 = scmp.eq.s32.totalorder %s3371_s25, 0 }
   0x9   : > { %p175_p2 = scmp.eq.s32.totalorder %s3371_s25, 1  ;;  %p181_p3 = scmp.eq.s32.totalorder %s2357_s26, 1 }
   0xa   : > { %p3380_p4 = por %p152_p1, %p151_p0  ;;  %p2358_p5 = scmp.ge.s32.totalorder %s3305_s24, 1 }
   0xb   : > { %p3385_p6 = por %p181_p3, %p151_p0  ;;  %p188_p7 = scmp.lt.s32.totalorder %s3305_s24, 3 }
   0xc   : > { %s4172_s1 = sld [smem:[#allocation13_spill]]  ;;  %s3307_s9 = smov [#allocation2]  }
   0xd   : > { %p3393_p8 = pnand %p2358_p5, %p188_p7  ;;  %s201_s10 = sshll.u32 %s3307_s9, 4  ;;  %s202_s10 = int_to_ptr.vmem [resolvable:$true] %s201_s10 }
   0xe   : > { %s216_s13 = sshll.u32 %s4162_s3, 4  ;;  %s4166_s14 = smov 64   ;;  %s217_s13 = int_to_ptr.hbm [resolvable:$true] %s216_s13 }
   0xf   : > { %p3078_p9 = pneg %p3393_p8  ;;  %s4167_s15 = smov 4  }
  0x10   : > { %s3310_s16 = smov [#allocation5]   ;;  %s3412_s18 = sadd.s32 1, %s3305_s24  }
  0x11   : > { %p3079_p10 = pnand %p3078_p9, %p152_p1  ;;  %s218_s17 = sshll.u32 %s3310_s16, 4  ;;  %s219_s17 = int_to_ptr.vmem [resolvable:$true] %s218_s17 }
  0x12   : > { %s199_s7 = sshll.u32 %s4172_s1, 4  ;;  %s138_s19 = sadd.s32 1, %s3301_s23  ;;  %s200_s7 = int_to_ptr.hbm [resolvable:$true] %s199_s7 }
  0x13   : > { %3081 = dma.hbm_to_vmem [thread:$0]  (!%p3079_p10), %s200_s7, 3072, %s202_s10, [#allocation3], %s4166_s14, %s4166_s14, %s4167_s15  }
  0x14   : > { %3084 = dma.hbm_to_vmem [thread:$0]  (!%p3079_p10), %s217_s13, 3072, %s219_s17, [#allocation6], %s4166_s14, %s4166_s14, %s4167_s15  }
  0x15   : > { %s135_s20 = ssub.s32 %s3305_s24, %s3412_s18  ;;  %p145_p12 = scmp.ne.s32.totalorder %s3301_s23, %s3297_s22 }
  0x16   : > { %p136_p13 = scmp.eq.s32.totalorder %s135_s20, 0  ;;  %p146_p0 = scmp.eq.s32.totalorder %s3305_s24, 0 }
  0x17   : > { %p3422_p3 = por %p175_p2, %p145_p12  ;;  %p3095_p7 = scmp.lt.s32.totalorder %s3305_s24, 2 }
  0x18   : > { %s3427_s29 = scalar_select %p136_p13, %s3301_s23, %s138_s19  }
  0x19   : > { %p147_p5 = por %p146_p0, %p145_p12  ;;  %s243_s30 = sand.u32 1, %s3305_s24  }
  0x1a   : > { %s245_s7 = sand.u32 1, %s3301_s23   ;;  %s2737_s10 = sshll.u32 %s3305_s24, 7 }
  0x1b   : > { %s2362_s9 = sshll.u32 %s245_s7, 7  ;;  %s252_s13 = scalar_lea.hbm %s4164_s5, %s2737_s10 }
  0x1c   : > { %s253_s16 = sshll.u32 %s252_s13, 4  ;;  %s247_s17 = scalar_lea.vmem [#allocation7], %s2362_s9  ;;  %s254_s16 = int_to_ptr.hbm [resolvable:$true] %s253_s16 }
  0x1d   : > { %s255_s20 = sshll.u32 %s247_s17, 4  ;;  %p3436_p2 = pnand %p3095_p7, %p147_p5  ;;  %s256_s20 = int_to_ptr.vmem [resolvable:$true] %s255_s20 }
  0x1e   : > { %s244_s19 = scalar_lea.sflag [#allocation3], %s243_s30  ;;  %s3201_s15 = sshra.s32 %s254_s16, 4  ;;  %s3202_s15 = int_to_ptr.hbm [resolvable:$true] %s3201_s15 }
  0x1f   : > { %s3203_s1 = scalar_lea.hbm %s3202_s15, 128  ;;  %p3205_p10 = pneg %p3436_p2 }
  0x20   : > { %p3204_p9 = scmp.ne.s32.totalorder %s3202_s15, %s3203_s1  ;;  %s3208_s9 = scalar_lea.hbm %s4164_s5, 256 }
  0x21   : > { %p3209_p0 = scmp.lt.s32.totalorder %s3202_s15, %s4164_s5  ;;  %p3210_p5 = scmp.lt.s32.totalorder %s3208_s9, %s3203_s1 }
  0x22   : > { %p3206_p12 = pnand %p3205_p10, %p3204_p9 }
  0x23   : > { %p3211_p7 = por %p3210_p5, %p3209_p0 }
  0x24   : > { %p3207_p13 = pneg %p3206_p12 }
  0x26   : > { %p3212_p11 = pnand %p3211_p7, %p3207_p13 }
  0x28   : > { %3215 = shalt.err (!%p3212_p11)
}
  0x29   : > { %s4176_s30 = smov 4   ;;  %s4177_s13 = smov 64  }
  0x2a   : > { %3088 = dma.hbm_to_vmem [thread:$0]  (!%p3436_p2), %s254_s16, 2048, %s256_s20, %s244_s19, %s4177_s13, %s4177_s13, %s4176_s30  }
  0x2b   : > { %267 = sbr.rel (%p3393_p8) target bundleno = 1002 (0x3ea), region = 44 }
  0x30   : > { %3276 = dma.done.wait (%p152_p1), [#allocation3], 3072  }
  0x31   : > { %3278 = vsyncadd (%p152_p1), [#allocation3], 4294964224 }
  0x32   : > { %3280 = dma.done.wait (%p152_p1), [#allocation6], 3072  }
  0x33   : > { %3282 = vsyncadd (%p152_p1), [#allocation6], 4294964224  ;;  %s279_s1 = sand.u32 1, %s3371_s25   ;;  %s281_s14 = sand.u32 1, %s3297_s22  }
  0x34   : > { %s3467_s8 = sshll.u32 %s281_s14, 7  ;;  %s280_s15 = scalar_lea.sflag [#allocation3], %s279_s1 }
  0x35   : > { %s3470_s16 = scalar_lea.vmem [#allocation7], %s3467_s8 }
  0x36   : > { %3284 = dma.done.wait (%p3380_p4), %s280_s15, 2048  }
  0x37   : > { %3286 = vsyncadd (%p3380_p4), %s280_s15, 4294965248  ;;  %v2780_v0 = vld [vmem:[#allocation2 + $0x38] sm:$0xff]  ;;  %v2779_v2 = vld [vmem:[#allocation2 + $0x30] sm:$0xff]  ;;  %p318_p1 = scmp.lt.s32.totalorder %s3371_s25, 1  ;;  %v3311_v39 = vmov 0.0|0.0   ;;  %vm3312_vm3 = vmmov 1  }
  0x38   : > { %v2764_v1 = vld [vmem:[#allocation2 + $0x78] sm:$0xff]  ;;  %3038 = vmatpush.bf16.msra.mxu2 %v2780_v0  ;;  %v2763_v3 = vld [vmem:[#allocation2 + $0x70] sm:$0xff]  ;;  %581 = vmatpush.bf16.msra.mxu0 %v2780_v0  ;;  %v2778_v4 = vld [vmem:[#allocation2 + $0x28] sm:$0xff]  ;;  %s4018_s30 = scalar_lea.vmem [#allocation8], %s3467_s8  ;;  %s2813_s13 = sshll.u32 %s3371_s25, 7 }
  0x39   : > { %3046 = vmatpush.bf16.msra.mxu3 %v2764_v1  ;;  %814 = vmatpush.bf16.msra.mxu1 %v2764_v1  ;;  %v2762_v5 = vld [vmem:[#allocation2 + $0x68] sm:$0xff]  ;;  %v2777_v6 = vld [vmem:[#allocation2 + $0x20] sm:$0xff]  ;;  %v2776_v8 = vld [vmem:[#allocation2 + $0x18] sm:$0xff]  ;;  %s319_s27 = scalar_select %p318_p1, %s3371_s25, 1 }
  0x3a   : > { %v2761_v7 = vld [vmem:[#allocation2 + $0x60] sm:$0xff]  ;;  %v2760_v9 = vld [vmem:[#allocation2 + $0x58] sm:$0xff]  ;;  %v2775_v10 = vld [vmem:[#allocation2 + $0x10] sm:$0xff]  ;;  %s2249_s15 = scalar_lea.hbm %s4165_s6, %s2813_s13  ;;  %s2238_s25 = scalar_lea.sflag [#allocation4], %s281_s14 }
  0x3b   : > { %v2759_v11 = vld [vmem:[#allocation2 + $0x50] sm:$0xff]  ;;  %v2774_v12 = vld [vmem:[#allocation2 + $0x8] sm:$0xff]  ;;  %s2738_s17 = sshll.u32 %s319_s27, 7  ;;  %v2773_v14 = vld [vmem:[#allocation2] sm:$0xff]  ;;  %s2252_s27 = sshll.u32 %s2249_s15, 4  ;;  %s2253_s27 = int_to_ptr.hbm [resolvable:$true] %s2252_s27 }
  0x3c   : > { %3039 = vmatpush.bf16.msra.mxu2 %v2779_v2  ;;  %582 = vmatpush.bf16.msra.mxu0 %v2779_v2  ;;  %v2758_v13 = vld [vmem:[#allocation2 + $0x48] sm:$0xff]  ;;  %v2757_v15 = vld [vmem:[#allocation2 + $0x40] sm:$0xff]  ;;  %s3481_s7 = scalar_lea.vmem %s4159_s0, %s2738_s17  ;;  %v2788_v16 = vld [vmem:[#allocation2 + $0xb8] sm:$0xff]  ;;  %s3245_s17 = sshra.s32 %s2253_s27, 4  ;;  %s3246_s17 = int_to_ptr.hbm [resolvable:$true] %s3245_s17 }
  0x3d   : > { %3047 = vmatpush.bf16.msra.mxu3 %v2763_v3  ;;  %815 = vmatpush.bf16.msra.mxu1 %v2763_v3  ;;  %v3484_v17 = vld [vmem:[%s3481_s7 + $0x30] sm:$0xff]  ;;  %v2747_v18 = vld [vmem:[%s3481_s7 + $0x40] sm:$0xff]  ;;  %v2786_v20 = vld [vmem:[#allocation2 + $0xa8] sm:$0xff]  ;;  %s3247_s20 = scalar_lea.hbm %s3246_s17, 128  ;;  %s3251_s10 = scalar_lea.hbm %s4165_s6, 256 }
  0x3e   : > { %v2787_v19 = vld [vmem:[#allocation2 + $0xb0] sm:$0xff]  ;;  %v3489_v21 = vld [vmem:[%s3481_s7 + $0x38] sm:$0xff]  ;;  %v2748_v22 = vld [vmem:[%s3481_s7 + $0x48] sm:$0xff]  ;;  %p3248_p4 = scmp.ne.s32.totalorder %s3246_s17, %s3247_s20  ;;  %p3252_p2 = scmp.lt.s32.totalorder %s3246_s17, %s4165_s6 }
  0x3f   : > { %v2785_v23 = vld [vmem:[#allocation2 + $0xa0] sm:$0xff]  ;;  %v2749_v25 = vld [vmem:[%s3481_s7 + $0x50] sm:$0xff]  ;;  %v2784_v26 = vld [vmem:[#allocation2 + $0x98] sm:$0xff]  ;;  %p3253_p9 = scmp.lt.s32.totalorder %s3251_s10, %s3247_s20 }
  0x40   : > { %3040 = vmatpush.bf16.msra.mxu2 %v2778_v4  ;;  %583 = vmatpush.bf16.msra.mxu0 %v2778_v4  ;;  %v3494_v24 = vld [vmem:[%s3481_s7 + $0x40] sm:$0xff]  ;;  %v3499_v27 = vld [vmem:[%s3481_s7 + $0x48] sm:$0xff]  ;;  %v2750_v28 = vld [vmem:[%s3481_s7 + $0x58] sm:$0xff]  ;;  %p3249_p8 = pnand %p3248_p4, %p3422_p3 }
  0x41   : > { %3048 = vmatpush.bf16.msra.mxu3 %v2762_v5  ;;  %816 = vmatpush.bf16.msra.mxu1 %v2762_v5  ;;  %v2783_v29 = vld [vmem:[#allocation2 + $0x90] sm:$0xff]  ;;  %v2751_v31 = vld [vmem:[%s3481_s7 + $0x60] sm:$0xff]  ;;  %v2782_v32 = vld [vmem:[#allocation2 + $0x88] sm:$0xff]  ;;  %p3254_p10 = por %p3253_p9, %p3252_p2 }
  0x42   : > { %v3504_v30 = vld [vmem:[%s3481_s7 + $0x50] sm:$0xff]  ;;  %v3509_v33 = vld [vmem:[%s3481_s7 + $0x58] sm:$0xff]  ;;  %v2752_v34 = vld [vmem:[%s3481_s7 + $0x68] sm:$0xff]  ;;  %p3250_p11 = pneg %p3249_p8 }
  0x43   : > { %v2781_v35 = vld [vmem:[#allocation2 + $0x80] sm:$0xff]  ;;  %v2754_v37 = vld [vmem:[%s3481_s7 + $0x70] sm:$0xff]  ;;  %v3521_v40 = vld [vmem:[%s3481_s7 + $0x68] sm:$0xff] }
  0x44   : > { %3041 = vmatpush.bf16.msra.mxu2 %v2777_v6  ;;  %584 = vmatpush.bf16.msra.mxu0 %v2777_v6  ;;  %v3514_v36 = vld [vmem:[%s3481_s7 + $0x60] sm:$0xff]  ;;  %v2756_v41 = vld [vmem:[%s3481_s7 + $0x78] sm:$0xff]  ;;  %v2740_v42 = vld [vmem:[%s3481_s7 + $0x8] sm:$0xff]  ;;  %p3255_p12 = pnand %p3254_p10, %p3250_p11 }
  0x45   : > { %3049 = vmatpush.bf16.msra.mxu3 %v2761_v7  ;;  %817 = vmatpush.bf16.msra.mxu1 %v2761_v7  ;;  %v2739_v38 = vld [vmem:[%s3481_s7] sm:$0xff]  ;;  %v3054_v43 = vld [vmem:[%s3481_s7 + $0x10] sm:$0xff]  ;;  %v3055_v48 = vld [vmem:[%s3481_s7 + $0x18] sm:$0xff] }
  0x46   : > { %v2958_v44 = vld [vmem:[%s3481_s7] sm:$0xff]  ;;  %v2741_v45 = vld [vmem:[%s3481_s7 + $0x10] sm:$0xff]  ;;  %v2959_v49 = vld [vmem:[%s3481_s7 + $0x8] sm:$0xff] }
  0x47   : > { %v2742_v50 = vld [vmem:[%s3481_s7 + $0x18] sm:$0xff]  ;;  %v3056_v53 = vld [vmem:[%s3481_s7 + $0x20] sm:$0xff]  ;;  %v3057_v57 = vld [vmem:[%s3481_s7 + $0x28] sm:$0xff] }
  0x48   : > { %3042 = vmatpush.bf16.msra.mxu2 %v2776_v8  ;;  %585 = vmatpush.bf16.msra.mxu0 %v2776_v8  ;;  %v2743_v54 = vld [vmem:[%s3481_s7 + $0x20] sm:$0xff]  ;;  %v2744_v58 = vld [vmem:[%s3481_s7 + $0x28] sm:$0xff]  ;;  %v2745_v61 = vld [vmem:[%s3481_s7 + $0x30] sm:$0xff] }
  0x49   : > { %3050 = vmatpush.bf16.msra.mxu3 %v2760_v9  ;;  %818 = vmatpush.bf16.msra.mxu1 %v2760_v9  ;;  %v2746_v0 = vld [vmem:[%s3481_s7 + $0x38] sm:$0xff]  ;;  %v2795_v3 = vld [vmem:[#allocation5 + $0x70] sm:$0xff]  ;;  %v2794_v5 = vld [vmem:[#allocation5 + $0x68] sm:$0xff] }
  0x4a   : > { %v2796_v2 = vld [vmem:[#allocation5 + $0x78] sm:$0xff]  ;;  %v2793_v7 = vld [vmem:[#allocation5 + $0x60] sm:$0xff] }
  0x4b   : > { %v2812_v6 = vld [vmem:[#allocation5 + $0xb8] sm:$0xff] }
  0x4c   : > { %3043 = vmatpush.bf16.msra.mxu2 %v2775_v10  ;;  %586 = vmatpush.bf16.msra.mxu0 %v2775_v10  ;;  %v2811_v10 = vld [vmem:[#allocation5 + $0xb0] sm:$0xff] }
  0x4d   : > { %3051 = vmatpush.bf16.msra.mxu3 %v2759_v11  ;;  %819 = vmatpush.bf16.msra.mxu1 %v2759_v11 }
  0x50   : > { %3044 = vmatpush.bf16.msra.mxu2 %v2774_v12  ;;  %587 = vmatpush.bf16.msra.mxu0 %v2774_v12  ;;  %v2792_v12 = vld [vmem:[#allocation5 + $0x58] sm:$0xff] }
  0x51   : > { %3052 = vmatpush.bf16.msra.mxu3 %v2758_v13  ;;  %820 = vmatpush.bf16.msra.mxu1 %v2758_v13  ;;  %v2810_v13 = vld [vmem:[#allocation5 + $0xa8] sm:$0xff] }
  0x54   : > { %3045 = vmatpush.bf16.msra.mxu2 %v2773_v14  ;;  %588 = vmatpush.bf16.msra.mxu0 %v2773_v14  ;;  %v2791_v14 = vld [vmem:[#allocation5 + $0x50] sm:$0xff] }
  0x55   : > { %3053 = vmatpush.bf16.msra.mxu3 %v2757_v15  ;;  %821 = vmatpush.bf16.msra.mxu1 %v2757_v15 }
  0x57   : > { %629 = vmatmul.bf16.vlgmr.msra.gmra.mxu2 %v3484_v17  ;;  %589 = vmatmul.bf16.vlgmr.msra.gmra.mxu0 %v3311_v39 }
  0x58   : > { %1079 = vmatpush.bf16.msrb.mxu2 %v2788_v16  ;;  %862 = vmatmul.bf16.vlgmr.msra.gmra.mxu3 %v2747_v18 }
  0x59   : > { %822 = vmatmul.bf16.vlgmr.msra.gmra.mxu1 %v2739_v38  ;;  %1617 = vmatpush.bf16.msrb.mxu0 %v2796_v2 }
  0x5a   : > { %1888 = vmatpush.bf16.msrb.mxu1 %v2812_v6 }
  0x5c   : > { %1080 = vmatpush.bf16.msrb.mxu2 %v2787_v19  ;;  %v2790_v19 = vld [vmem:[#allocation5 + $0x48] sm:$0xff] }
  0x5d   : > { %1618 = vmatpush.bf16.msrb.mxu0 %v2795_v3 }
  0x5e   : > { %1889 = vmatpush.bf16.msrb.mxu1 %v2811_v10 }
  0x60   : > { %1081 = vmatpush.bf16.msrb.mxu2 %v2786_v20  ;;  %v2808_v20 = vld [vmem:[#allocation5 + $0x98] sm:$0xff] }
  0x61   : > { %1619 = vmatpush.bf16.msrb.mxu0 %v2794_v5 }
  0x62   : > { %1890 = vmatpush.bf16.msrb.mxu1 %v2810_v13 }
  0x64   : > { %1082 = vmatpush.bf16.msrb.mxu2 %v2785_v23  ;;  %v2807_v23 = vld [vmem:[#allocation5 + $0x90] sm:$0xff] }
  0x65   : > { %1620 = vmatpush.bf16.msrb.mxu0 %v2793_v7 }
  0x67   : > { %634 = vmatmul.bf16.gmra.mxu2 %v3489_v21  ;;  %594 = vmatmul.bf16.gmra.mxu0 %v3311_v39 }
  0x68   : > { %867 = vmatmul.bf16.gmra.mxu3 %v2748_v22  ;;  %1083 = vmatpush.bf16.msrb.mxu2 %v2784_v26  ;;  %v2806_v26 = vld [vmem:[#allocation5 + $0x88] sm:$0xff] }
  0x69   : > { %827 = vmatmul.bf16.gmra.mxu1 %v2740_v42  ;;  %1621 = vmatpush.bf16.msrb.mxu0 %v2792_v12 }
  0x6c   : > { %1084 = vmatpush.bf16.msrb.mxu2 %v2783_v29 }
  0x6d   : > { %1622 = vmatpush.bf16.msrb.mxu0 %v2791_v14 }
  0x70   : > { %1085 = vmatpush.bf16.msrb.mxu2 %v2782_v32 }
  0x71   : > { %1623 = vmatpush.bf16.msrb.mxu0 %v2790_v19 }
  0x74   : > { %1086 = vmatpush.bf16.msrb.mxu2 %v2781_v35 }
  0x77   : > { %639 = vmatmul.bf16.gmra.mxu2 %v3494_v24  ;;  %599 = vmatmul.bf16.gmra.mxu0 %v2958_v44 }
  0x78   : > { %872 = vmatmul.bf16.gmra.mxu3 %v2749_v25 }
  0x79   : > { %832 = vmatmul.bf16.gmra.mxu1 %v2741_v45 }
  0x87   : > { %644 = vmatmul.bf16.gmra.mxu2 %v3499_v27  ;;  %604 = vmatmul.bf16.gmra.mxu0 %v2959_v49 }
  0x88   : > { %877 = vmatmul.bf16.gmra.mxu3 %v2750_v28  ;;  %v2805_v28 = vld [vmem:[#allocation5 + $0x80] sm:$0xff] }
  0x89   : > { %837 = vmatmul.bf16.gmra.mxu1 %v2742_v50 }
  0x97   : > { %649 = vmatmul.bf16.gmra.mxu2 %v3504_v30  ;;  %609 = vmatmul.bf16.gmra.mxu0 %v3054_v43 }
  0x98   : > { %882 = vmatmul.bf16.gmra.mxu3 %v2751_v31 }
  0x99   : > { %842 = vmatmul.bf16.gmra.mxu1 %v2743_v54 }
  0xa7   : > { %654 = vmatmul.bf16.gmra.mxu2 %v3509_v33  ;;  %614 = vmatmul.bf16.gmra.mxu0 %v3055_v48 }
  0xa8   : > { %887 = vmatmul.bf16.gmra.mxu3 %v2752_v34 }
  0xa9   : > { %847 = vmatmul.bf16.gmra.mxu1 %v2744_v58 }
  0xb7   : > { %659 = vmatmul.bf16.gmra.mxu2 %v3514_v36  ;;  %619 = vmatmul.bf16.gmra.mxu0 %v3056_v53 }
  0xb8   : > { %892 = vmatmul.bf16.gmra.mxu3 %v2754_v37  ;;  %v3579_v37 = vld [vmem:[%s4161_s2] ss:$0 sm:$0xff] }
  0xb9   : > { %852 = vmatmul.bf16.gmra.mxu1 %v2745_v61 }
  0xc7   : > { %664 = vmatmul.bf16.gmra.mxu2 %v3521_v40  ;;  %624 = vmatmul.bf16.gmra.mxu0 %v3057_v57 }
  0xc8   : > { %897 = vmatmul.bf16.gmra.mxu3 %v2756_v41 }
  0xc9   : > { %857 = vmatmul.bf16.gmra.mxu1 %v2746_v0 }
  0xd4   : > { %v590_v8 = vpop.f32.mrf.mxu0 }
  0xd6   : > { %v823_v9 = vpop.f32.mrf.mxu1 }
  0xd7   : > { %1087 = vmatmul.bf16.vlgmr.msrb.gmra.mxu2 %v3054_v43  ;;  %v824_v34 = vadd.f32 %v823_v9, %v590_v8  ;;  %v387_v43 = vlaneseq }
  0xd9   : > { %v3582_v49 = vshrl.u32 %v387_v43, 7 }
  0xda   : > { %v3530_v46 = vpop.f32.mrf.mxu2 }
  0xdb   : > { %v389_v58 = vadd.s32 8, %v3582_v49  ;;  %vm1333_vm0 = vcmp.lt.s32.totalorder %v3582_v49, 2  ;;  %vm1738_vm1 = vcmp.lt.s32.totalorder %v3582_v49, 6  ;;  %vm1366_vm5 = vcmp.ge.s32.totalorder %v3582_v49, 2 }
  0xdc   : > { %v592_v15 = vpop.f32.mrf.mxu0  ;;  %vm3930_vm6 = vmpackc.low %vm3312_vm3, %vm1366_vm5 }
  0xdd   : > { %v1772_v7 = vadd.s32 2, %v389_v58 }
  0xde   : > { %v825_v16 = vpop.f32.mrf.mxu1 }
  0xdf   : > { %v826_v42 = vadd.f32 %v825_v16, %v592_v15  ;;  %vm1774_vm2 = vcmp.lt.s32.totalorder %v1772_v7, 16 }
  0xe0   : > { %vm3608_vm4 = vmpackc.low %vm1774_vm2, %vm3312_vm3 }
  0xe2   : > { %v3532_v47 = vpop.f32.mrf.mxu2 }
  0xe4   : > { %v595_v22 = vpop.f32.mrf.mxu0 }
  0xe6   : > { %v828_v25 = vpop.f32.mrf.mxu1 }
  0xe7   : > { %1092 = vmatmul.bf16.gmra.mxu2 %v3055_v48  ;;  %v829_v54 = vadd.f32 %v828_v25, %v595_v22 }
  0xea   : > { %v3537_v51 = vpop.f32.mrf.mxu2 }
  0xec   : > { %v597_v31 = vpop.f32.mrf.mxu0 }
  0xee   : > { %v830_v32 = vpop.f32.mrf.mxu1 }
  0xef   : > { %v831_v12 = vadd.f32 %v830_v32, %v597_v31 }
  0xf2   : > { %v3539_v52 = vpop.f32.mrf.mxu2 }
  0xf4   : > { %v600_v38 = vpop.f32.mrf.mxu0 }
  0xf6   : > { %v833_v41 = vpop.f32.mrf.mxu1 }
  0xf7   : > { %1097 = vmatmul.bf16.gmra.mxu2 %v3056_v53  ;;  %v834_v32 = vadd.f32 %v833_v41, %v600_v38 }
  0xfa   : > { %v3543_v55 = vpop.f32.mrf.mxu2 }
  0xfe   : > { %v835_v61 = vpop.f32.mrf.mxu1 }
 0x102   : > { %v3545_v56 = vpop.f32.mrf.mxu2 }
 0x106   : > { %v838_v19 = vpop.f32.mrf.mxu1 }
 0x107   : > { %1102 = vmatmul.bf16.gmra.mxu2 %v3057_v57  ;;  %v602_v57 = vpop.f32.mrf.mxu0 }
 0x10a   : > { %v3549_v59 = vpop.f32.mrf.mxu2 }
 0x10f   : > { %v605_v16 = vpop.f32.mrf.mxu0 }
 0x112   : > { %v3551_v60 = vpop.f32.mrf.mxu2 }
 0x117   : > { %1107 = vmatmul.bf16.gmra.mxu2 %v3484_v17  ;;  %v2809_v17 = vld [vmem:[#allocation5 + $0xa0] sm:$0xff]  ;;  %v607_v43 = vpop.f32.mrf.mxu0 }
 0x118   : > { %1891 = vmatpush.bf16.msrb.mxu1 %v2809_v17 }
 0x11a   : > { %v3555_v62 = vpop.f32.mrf.mxu2 }
 0x11c   : > { %1892 = vmatpush.bf16.msrb.mxu1 %v2808_v20 }
 0x120   : > { %1893 = vmatpush.bf16.msrb.mxu1 %v2807_v23 }
 0x122   : > { %v3557_v63 = vpop.f32.mrf.mxu2 }
 0x124   : > { %1894 = vmatpush.bf16.msrb.mxu1 %v2806_v26 }
 0x127   : > { %1112 = vmatmul.bf16.gmra.mxu2 %v3489_v21  ;;  %v2789_v21 = vld [vmem:[#allocation5 + $0x40] sm:$0xff] }
 0x128   : > { %1624 = vmatpush.bf16.msrb.mxu0 %v2789_v21  ;;  %1895 = vmatpush.bf16.msrb.mxu1 %v2805_v28 }
 0x12a   : > { %v3561_v1 = vpop.f32.mrf.mxu2 }
 0x132   : > { %v3563_v4 = vpop.f32.mrf.mxu2 }
 0x137   : > { %1117 = vmatmul.bf16.gmra.mxu2 %v3494_v24 }
 0x13a   : > { %v3566_v11 = vpop.f32.mrf.mxu2 }
 0x142   : > { %v3568_v18 = vpop.f32.mrf.mxu2 }
 0x147   : > { %1122 = vmatmul.bf16.gmra.mxu2 %v3499_v27 }
 0x14a   : > { %v3571_v24 = vpop.f32.mrf.mxu2 }
 0x152   : > { %v3573_v29 = vpop.f32.mrf.mxu2 }
 0x157   : > { %1127 = vmatmul.bf16.gmra.mxu2 %v3504_v30 }
 0x15a   : > { %v1088_v27 = vpop.f32.mrf.mxu2 }
 0x15b   : > { %v1168_v35 = vadd.f32 %v1088_v27, %v824_v34 }
 0x15d   : > { %v1204_v44 = vadd.f32 %v3579_v37, %v1168_v35 }
 0x15f   : > { %v3584_v50 = vmax.f32 %v1204_v44, 0.0 }
 0x161   : > { %v1301_v0 = vrot.slane %v3584_v50, 6  ;;  %v4168_v13 = vrot.slane %v3584_v50, 2 }
 0x162   : > { %v1090_v45 = vpop.f32.mrf.mxu2 }
 0x163   : > { %v1169_v48 = vadd.f32 %v1090_v45, %v826_v42  ;;  %v840_v45 = vpop.f32.mrf.mxu1 }
 0x165   : > { %v1205_v30 = vadd.f32 %v3579_v37, %v1169_v48 }
 0x167   : > { %v1237_v53 = vmax.f32 %v1205_v30, 0.0  ;;  %1132 = vmatmul.bf16.gmra.mxu2 %v3509_v33 }
 0x169   : > { %v1302_v2 = vrot.slane %v1237_v53, 6  ;;  %v1268_v3 = vpack.c.bf16 %v1237_v53, %v3584_v50  ;;  %v1707_v9 = vrot.slane %v1237_v53, 2 }
 0x16a   : > { %v1093_v5 = vpop.f32.mrf.mxu2 }
 0x16b   : > { %v1170_v6 = vadd.f32 %v1093_v5, %v829_v54  ;;  %1625 = vmatmul.bf16.vlgmr.msrb.gmra.mxu0 %v1268_v3  ;;  %v3596_v33 = vsel %vm1333_vm0, %v1301_v0, %v1302_v2  ;;  %v1769_v22 = vsel %vm1738_vm1, %v4168_v13, %v1707_v9 }
 0x16d   : > { %v1206_v8 = vadd.f32 %v3579_v37, %v1170_v6 }
 0x16f   : > { %v1238_v10 = vmax.f32 %v1206_v8, 0.0 }
 0x171   : > { %v1303_v14 = vrot.slane %v1238_v10, 6  ;;  %v1708_v15 = vrot.slane %v1238_v10, 2 }
 0x172   : > { %v1095_v17 = vpop.f32.mrf.mxu2 }
 0x173   : > { %v1171_v20 = vadd.f32 %v1095_v17, %v831_v12  ;;  %v1768_v21 = vsel %vm1738_vm1, %v1707_v9, %v1708_v15  ;;  %v3614_v25 = vsel %vm1333_vm0, %v1302_v2, %v1303_v14  ;;  %v610_v9 = vpop.f32.mrf.mxu0 }
 0x174   : > { %v2685_v26 = vpack.c.bf16 %v1768_v21, %v1769_v22 }
 0x175   : > { %v1207_v28 = vadd.f32 %v3579_v37, %v1171_v20 }
 0x176   : > { %2686 = vmatmul.msk.bf16.vlgmr.msrb.gmra.mxu1 %vm3608_vm4, %v2685_v26 }
 0x177   : > { %v1239_v31 = vmax.f32 %v1207_v28, 0.0  ;;  %1137 = vmatmul.bf16.gmra.mxu2 %v3514_v36  ;;  %v836_v36 = vadd.f32 %v835_v61, %v602_v57  ;;  %v843_v57 = vpop.f32.mrf.mxu1 }
 0x179   : > { %v1304_v34 = vrot.slane %v1239_v31, 6  ;;  %v1269_v27 = vpack.c.bf16 %v1239_v31, %v1238_v10  ;;  %v1709_v53 = vrot.slane %v1239_v31, 2  ;;  %v839_v10 = vadd.f32 %v838_v19, %v605_v16 }
 0x17a   : > { %v1098_v35 = vpop.f32.mrf.mxu2  ;;  %v841_v31 = vadd.f32 %v840_v45, %v607_v43 }
 0x17b   : > { %v1172_v42 = vadd.f32 %v1098_v35, %v834_v32  ;;  %1630 = vmatmul.bf16.gmra.mxu0 %v1269_v27  ;;  %v3622_v44 = vsel %vm1333_vm0, %v1303_v14, %v1304_v34  ;;  %v1767_v5 = vsel %vm1738_vm1, %v1708_v15, %v1709_v53 }
 0x17c   : > { %v4183_v49 = vpack.c.bf16 %v3622_v44, %v3614_v25 }
 0x17d   : > { %v1208_v30 = vadd.f32 %v3579_v37, %v1172_v42 }
 0x17f   : > { %v1240_v54 = vmax.f32 %v1208_v30, 0.0  ;;  %v845_v16 = vpop.f32.mrf.mxu1  ;;  %v2753_v30 = vld [vmem:[%s3481_s7 + $0x70] sm:$0xff] }
 0x181   : > { %v1305_v38 = vrot.slane %v1240_v54, 6  ;;  %v1710_v41 = vrot.slane %v1240_v54, 2 }
 0x182   : > { %v1100_v58 = vpop.f32.mrf.mxu2 }
 0x183   : > { %v1173_v2 = vadd.f32 %v1100_v58, %v836_v36  ;;  %v1766_v3 = vsel %vm1738_vm1, %v1709_v53, %v1710_v41  ;;  %v3633_v6 = vsel %vm1333_vm0, %v1304_v34, %v1305_v38  ;;  %v844_v36 = vadd.f32 %v843_v57, %v610_v9 }
 0x184   : > { %v2688_v7 = vpack.c.bf16 %v1766_v3, %v1767_v5 }
 0x185   : > { %v1209_v8 = vadd.f32 %v3579_v37, %v1173_v2 }
 0x186   : > { %2689 = vmatmul.msk.bf16.gmra.mxu1 %vm3608_vm4, %v2688_v7 }
 0x187   : > { %v1241_v61 = vmax.f32 %v1209_v8, 0.0  ;;  %1142 = vmatmul.bf16.gmra.mxu2 %v3521_v40  ;;  %v612_v40 = vpop.f32.mrf.mxu0 }
 0x188   : > { %v846_v9 = vadd.f32 %v845_v16, %v612_v40 }
 0x189   : > { %v1306_v12 = vrot.slane %v1241_v61, 6  ;;  %v1270_v14 = vpack.c.bf16 %v1241_v61, %v1240_v54  ;;  %v1711_v26 = vrot.slane %v1241_v61, 2 }
 0x18a   : > { %v1103_v17 = vpop.f32.mrf.mxu2 }
 0x18b   : > { %v1174_v15 = vadd.f32 %v1103_v17, %v839_v10  ;;  %1635 = vmatmul.bf16.gmra.mxu0 %v1270_v14  ;;  %v3641_v20 = vsel %vm1333_vm0, %v1305_v38, %v1306_v12  ;;  %v1765_v42 = vsel %vm1738_vm1, %v1710_v41, %v1711_v26  ;;  %v848_v41 = vpop.f32.mrf.mxu1 }
 0x18d   : > { %v1210_v22 = vadd.f32 %v3579_v37, %v1174_v15 }
 0x18f   : > { %v1242_v28 = vmax.f32 %v1210_v22, 0.0  ;;  %v615_v2 = vpop.f32.mrf.mxu0 }
 0x191   : > { %v1307_v19 = vrot.slane %v1242_v28, 6  ;;  %v1712_v32 = vrot.slane %v1242_v28, 2 }
 0x192   : > { %v1105_v34 = vpop.f32.mrf.mxu2 }
 0x193   : > { %v1175_v27 = vadd.f32 %v1105_v34, %v841_v31  ;;  %v1764_v35 = vsel %vm1738_vm1, %v1711_v26, %v1712_v32  ;;  %v3653_v53 = vsel %vm1333_vm0, %v1306_v12, %v1307_v19 }
 0x194   : > { %v2691_v54 = vpack.c.bf16 %v1764_v35, %v1765_v42  ;;  %v849_v35 = vadd.f32 %v848_v41, %v615_v2 }
 0x195   : > { %v1211_v43 = vadd.f32 %v3579_v37, %v1175_v27  ;;  %v850_v27 = vpop.f32.mrf.mxu1 }
 0x196   : > { %2692 = vmatmul.msk.bf16.gmra.mxu1 %vm3608_vm4, %v2691_v54 }
 0x197   : > { %v1243_v45 = vmax.f32 %v1211_v43, 0.0  ;;  %1147 = vmatmul.bf16.gmra.mxu2 %v2753_v30  ;;  %v617_v31 = vpop.f32.mrf.mxu0 }
 0x199   : > { %v1308_v38 = vrot.slane %v1243_v45, 6  ;;  %v1271_v58 = vpack.c.bf16 %v1243_v45, %v1242_v28  ;;  %v1713_v10 = vrot.slane %v1243_v45, 2  ;;  %v2755_v28 = vld [vmem:[%s3481_s7 + $0x78] sm:$0xff] }
 0x19a   : > { %v1108_v3 = vpop.f32.mrf.mxu2 }
 0x19b   : > { %v1176_v5 = vadd.f32 %v1108_v3, %v844_v36  ;;  %1640 = vmatmul.bf16.gmra.mxu0 %v1271_v58  ;;  %v3660_v7 = vsel %vm1333_vm0, %v1307_v19, %v1308_v38  ;;  %v1763_v26 = vsel %vm1738_vm1, %v1712_v32, %v1713_v10 }
 0x19d   : > { %v1212_v61 = vadd.f32 %v3579_v37, %v1176_v5  ;;  %v853_v58 = vpop.f32.mrf.mxu1 }
 0x19f   : > { %v1244_v12 = vmax.f32 %v1212_v61, 0.0  ;;  %v851_v61 = vadd.f32 %v850_v27, %v617_v31 }
 0x1a1   : > { %v1309_v57 = vrot.slane %v1244_v12, 6  ;;  %v1714_v14 = vrot.slane %v1244_v12, 2 }
 0x1a2   : > { %v1110_v17 = vpop.f32.mrf.mxu2 }
 0x1a3   : > { %v1177_v15 = vadd.f32 %v1110_v17, %v846_v9  ;;  %v1762_v22 = vsel %vm1738_vm1, %v1713_v10, %v1714_v14  ;;  %v3672_v19 = vsel %vm1333_vm0, %v1308_v38, %v1309_v57  ;;  %v620_v38 = vpop.f32.mrf.mxu0 }
 0x1a4   : > { %v2694_v34 = vpack.c.bf16 %v1762_v22, %v1763_v26  ;;  %v3695_v26 = vpop.f32.mrf.mxu3  ;;  %v854_v31 = vadd.f32 %v853_v58, %v620_v38 }
 0x1a5   : > { %v1213_v40 = vadd.f32 %v3579_v37, %v1177_v15  ;;  %v855_v27 = vpop.f32.mrf.mxu1 }
 0x1a6   : > { %2695 = vmatmul.msk.bf16.gmra.mxu1 %vm3608_vm4, %v2694_v34 }
 0x1a7   : > { %v1245_v16 = vmax.f32 %v1213_v40, 0.0  ;;  %1152 = vmatmul.bf16.gmra.mxu2 %v2755_v28 }
 0x1a9   : > { %v1310_v42 = vrot.slane %v1245_v16, 6  ;;  %v1272_v30 = vpack.c.bf16 %v1245_v16, %v1244_v12  ;;  %v1715_v3 = vrot.slane %v1245_v16, 2 }
 0x1aa   : > { %v1113_v54 = vpop.f32.mrf.mxu2 }
 0x1ab   : > { %v1178_v32 = vadd.f32 %v1113_v54, %v849_v35  ;;  %1645 = vmatmul.bf16.gmra.mxu0 %v1272_v30  ;;  %v3679_v43 = vsel %vm1333_vm0, %v1309_v57, %v1310_v42  ;;  %v1761_v57 = vsel %vm1738_vm1, %v1714_v14, %v1715_v3  ;;  %v622_v34 = vpop.f32.mrf.mxu0 }
 0x1ac   : > { %v865_v38 = vpop.f32.mrf.mxu3  ;;  %v4186_v23 = vpack.c.bf16 %v3679_v43, %v3672_v19  ;;  %v4000_v43 = vld [vmem:[%s4163_s4] ss:$0 sm:$0xff] }
 0x1ad   : > { %v1214_v36 = vadd.f32 %v3579_v37, %v1178_v32 }
 0x1af   : > { %v1246_v5 = vmax.f32 %v1214_v36, 0.0 }
 0x1b1   : > { %v1311_v2 = vrot.slane %v1246_v5, 6  ;;  %v1716_v41 = vrot.slane %v1246_v5, 2 }
 0x1b2   : > { %v1115_v10 = vpop.f32.mrf.mxu2 }
 0x1b3   : > { %v1179_v12 = vadd.f32 %v1115_v10, %v851_v61  ;;  %v1760_v9 = vsel %vm1738_vm1, %v1715_v3, %v1716_v41  ;;  %v3690_v17 = vsel %vm1333_vm0, %v1310_v42, %v1311_v2  ;;  %v856_v3 = vadd.f32 %v855_v27, %v622_v34  ;;  %v625_v10 = vpop.f32.mrf.mxu0 }
 0x1b4   : > { %v2697_v15 = vpack.c.bf16 %v1760_v9, %v1761_v57  ;;  %v858_v9 = vpop.f32.mrf.mxu1 }
 0x1b5   : > { %v1215_v22 = vadd.f32 %v3579_v37, %v1179_v12  ;;  %v859_v27 = vadd.f32 %v858_v9, %v625_v10 }
 0x1b6   : > { %2698 = vmatmul.msk.bf16.gmra.mxu1 %vm3608_vm4, %v2697_v15 }
 0x1b7   : > { %v1247_v28 = vmax.f32 %v1215_v22, 0.0  ;;  %1157 = vmatmul.bf16.gmra.mxu2 %v3311_v39 }
 0x1b9   : > { %v1312_v40 = vrot.slane %v1247_v28, 6  ;;  %v1273_v14 = vpack.c.bf16 %v1247_v28, %v1246_v5  ;;  %v1717_v32 = vrot.slane %v1247_v28, 2  ;;  %v2804_v5 = vld [vmem:[#allocation5 + $0x38] sm:$0xff] }
 0x1ba   : > { %v1118_v16 = vpop.f32.mrf.mxu2  ;;  %1480 = vmatpush.bf16.msrb.mxu3 %v2804_v5 }
 0x1bb   : > { %v1180_v35 = vadd.f32 %v1118_v16, %v854_v31  ;;  %1650 = vmatmul.bf16.gmra.mxu0 %v1273_v14  ;;  %v3700_v42 = vsel %vm1333_vm0, %v1311_v2, %v1312_v40  ;;  %v1759_v15 = vsel %vm1738_vm1, %v1716_v41, %v1717_v32 }
 0x1bc   : > { %v4187_v25 = vpack.c.bf16 %v3700_v42, %v3690_v17  ;;  %v2815_v17 = vld [vmem:[%s3470_s16] sm:$0xff]  }
 0x1bd   : > { %v1216_v54 = vadd.f32 %v3579_v37, %v1180_v35 }
 0x1bf   : > { %v1248_v36 = vmax.f32 %v1216_v54, 0.0  ;;  %v868_v54 = vpop.f32.mrf.mxu3 }
 0x1c1   : > { %v1313_v58 = vrot.slane %v1248_v36, 6  ;;  %v1718_v61 = vrot.slane %v1248_v36, 2 }
 0x1c2   : > { %v1120_v12 = vpop.f32.mrf.mxu2 }
 0x1c3   : > { %v1181_v57 = vadd.f32 %v1120_v12, %v856_v3  ;;  %v1758_v2 = vsel %vm1738_vm1, %v1717_v32, %v1718_v61  ;;  %v3711_v22 = vsel %vm1333_vm0, %v1312_v40, %v1313_v58  ;;  %v627_v32 = vpop.f32.mrf.mxu0  ;;  %v860_v3 = vpop.f32.mrf.mxu1 }
 0x1c4   : > { %v2700_v28 = vpack.c.bf16 %v1758_v2, %v1759_v15  ;;  %v861_v10 = vadd.f32 %v860_v3, %v627_v32  ;;  %v2803_v2 = vld [vmem:[#allocation5 + $0x30] sm:$0xff]  ;;  %v864_v32 = vadd.f32 %v3695_v26, %v3530_v46 }
 0x1c5   : > { %v1217_v31 = vadd.f32 %v3579_v37, %v1181_v57  ;;  %1481 = vmatpush.bf16.msrb.mxu3 %v2803_v2 }
 0x1c6   : > { %2701 = vmatmul.msk.bf16.gmra.mxu1 %vm3608_vm4, %v2700_v28 }
 0x1c7   : > { %v1249_v34 = vmax.f32 %v1217_v31, 0.0  ;;  %1162 = vmatmul.bf16.gmra.mxu2 %v3311_v39 }
 0x1c9   : > { %v1314_v14 = vrot.slane %v1249_v34, 6  ;;  %v1274_v16 = vpack.c.bf16 %v1249_v34, %v1248_v36  ;;  %v1719_v57 = vrot.slane %v1249_v34, 2 }
 0x1ca   : > { %v1123_v35 = vpop.f32.mrf.mxu2 }
 0x1cb   : > { %v1182_v41 = vadd.f32 %v1123_v35, %v859_v27  ;;  %1655 = vmatmul.bf16.gmra.mxu0 %v1274_v16  ;;  %v3719_v40 = vsel %vm1333_vm0, %v1313_v58, %v1314_v14  ;;  %v1757_v58 = vsel %vm1738_vm1, %v1718_v61, %v1719_v57  ;;  %v870_v35 = vpop.f32.mrf.mxu3 }
 0x1cc   : > { %v4188_v44 = vpack.c.bf16 %v3719_v40, %v3711_v22  ;;  %v2816_v40 = vunpack.c.l.bf16 %v2815_v17 }
 0x1cd   : > { %v1218_v12 = vadd.f32 %v3579_v37, %v1182_v41 }
 0x1cf   : > { %v1250_v39 = vmax.f32 %v1218_v12, 0.0 }
 0x1d1   : > { %v1315_v9 = vrot.slane %v1250_v39, 6  ;;  %v1720_v36 = vrot.slane %v1250_v39, 2 }
 0x1d2   : > { %v1125_v15 = vpop.f32.mrf.mxu2 }
 0x1d3   : > { %v1183_v28 = vadd.f32 %v1125_v15, %v861_v10  ;;  %v1756_v31 = vsel %vm1738_vm1, %v1719_v57, %v1720_v36  ;;  %v3730_v27 = vsel %vm1333_vm0, %v1314_v14, %v1315_v9 }
 0x1d4   : > { %v2703_v16 = vpack.c.bf16 %v1756_v31, %v1757_v58  ;;  %v873_v31 = vpop.f32.mrf.mxu3  ;;  %v866_v58 = vadd.f32 %v865_v38, %v3532_v47  ;;  %v869_v38 = vadd.f32 %v868_v54, %v3537_v51  ;;  %v871_v54 = vadd.f32 %v870_v35, %v3539_v52 }
 0x1d5   : > { %v1219_v34 = vadd.f32 %v3579_v37, %v1183_v28  ;;  %v874_v35 = vadd.f32 %v873_v31, %v3543_v55 }
 0x1d6   : > { %2704 = vmatmul.msk.bf16.gmra.mxu1 %vm3608_vm4, %v2703_v16 }
 0x1d7   : > { %v1251_v41 = vmax.f32 %v1219_v34, 0.0 }
 0x1d9   : > { %v1316_v3 = vrot.slane %v1251_v41, 6  ;;  %v1275_v12 = vpack.c.bf16 %v1251_v41, %v1250_v39  ;;  %v1721_v15 = vrot.slane %v1251_v41, 2  ;;  %v2802_v39 = vld [vmem:[#allocation5 + $0x28] sm:$0xff] }
 0x1da   : > { %v1128_v10 = vpop.f32.mrf.mxu2  ;;  %1482 = vmatpush.bf16.msrb.mxu3 %v2802_v39 }
 0x1db   : > { %v1184_v61 = vadd.f32 %v1128_v10, %v864_v32  ;;  %1660 = vmatmul.bf16.gmra.mxu0 %v1275_v12  ;;  %v3739_v14 = vsel %vm1333_vm0, %v1315_v9, %v1316_v3  ;;  %v1755_v9 = vsel %vm1738_vm1, %v1720_v36, %v1721_v15 }
 0x1dd   : > { %v1220_v2 = vadd.f32 %v3579_v37, %v1184_v61 }
 0x1df   : > { %v1252_v28 = vmax.f32 %v1220_v2, 0.0 }
 0x1e1   : > { %v1317_v46 = vrot.slane %v1252_v28, 6  ;;  %v1722_v26 = vrot.slane %v1252_v28, 2 }
 0x1e2   : > { %v1130_v16 = vpop.f32.mrf.mxu2 }
 0x1e3   : > { %v1185_v34 = vadd.f32 %v1130_v16, %v866_v58  ;;  %v1754_v32 = vsel %vm1738_vm1, %v1721_v15, %v1722_v26  ;;  %v3751_v12 = vsel %vm1333_vm0, %v1316_v3, %v1317_v46  ;;  %v875_v16 = vpop.f32.mrf.mxu3 }
 0x1e4   : > { %v2706_v41 = vpack.c.bf16 %v1754_v32, %v1755_v9  ;;  %v2801_v9 = vld [vmem:[#allocation5 + $0x20] sm:$0xff]  ;;  %v876_v31 = vadd.f32 %v875_v16, %v3545_v56 }
 0x1e5   : > { %v1221_v10 = vadd.f32 %v3579_v37, %v1185_v34  ;;  %1483 = vmatpush.bf16.msrb.mxu3 %v2801_v9 }
 0x1e6   : > { %2707 = vmatmul.msk.bf16.gmra.mxu1 %vm3608_vm4, %v2706_v41 }
 0x1e7   : > { %v1253_v47 = vmax.f32 %v1221_v10, 0.0 }
 0x1e9   : > { %v1318_v61 = vrot.slane %v1253_v47, 6  ;;  %v1723_v2 = vrot.slane %v1253_v47, 2  ;;  %v1276_v58 = vpack.c.bf16 %v1253_v47, %v1252_v28 }
 0x1ea   : > { %v1133_v57 = vpop.f32.mrf.mxu2 }
 0x1eb   : > { %v1186_v36 = vadd.f32 %v1133_v57, %v869_v38  ;;  %1665 = vmatmul.bf16.gmra.mxu0 %v1276_v58  ;;  %v1753_v3 = vsel %vm1738_vm1, %v1722_v26, %v1723_v2  ;;  %v3761_v15 = vsel %vm1333_vm0, %v1317_v46, %v1318_v61  ;;  %v878_v10 = vpop.f32.mrf.mxu3 }
 0x1ed   : > { %v1222_v34 = vadd.f32 %v3579_v37, %v1186_v36 }
 0x1ef   : > { %v1254_v51 = vmax.f32 %v1222_v34, 0.0 }
 0x1f1   : > { %v1319_v28 = vrot.slane %v1254_v51, 6  ;;  %v1724_v32 = vrot.slane %v1254_v51, 2 }
 0x1f2   : > { %v1135_v57 = vpop.f32.mrf.mxu2 }
 0x1f3   : > { %v1187_v41 = vadd.f32 %v1135_v57, %v871_v54  ;;  %v1752_v26 = vsel %vm1738_vm1, %v1723_v2, %v1724_v32  ;;  %v3771_v46 = vsel %vm1333_vm0, %v1318_v61, %v1319_v28 }
 0x1f4   : > { %v2709_v47 = vpack.c.bf16 %v1752_v26, %v1753_v3 }
 0x1f5   : > { %v1223_v38 = vadd.f32 %v3579_v37, %v1187_v41  ;;  %v880_v41 = vpop.f32.mrf.mxu3 }
 0x1f6   : > { %2710 = vmatmul.msk.bf16.gmra.mxu1 %vm3608_vm4, %v2709_v47  ;;  %v2800_v47 = vld [vmem:[#allocation5 + $0x18] sm:$0xff] }
 0x1f7   : > { %v1255_v52 = vmax.f32 %v1223_v38, 0.0  ;;  %1484 = vmatpush.bf16.msrb.mxu3 %v2800_v47 }
 0x1f9   : > { %v1320_v58 = vrot.slane %v1255_v52, 6  ;;  %v1725_v36 = vrot.slane %v1255_v52, 2  ;;  %v1277_v34 = vpack.c.bf16 %v1255_v52, %v1254_v51 }
 0x1fa   : > { %v1138_v54 = vpop.f32.mrf.mxu2 }
 0x1fb   : > { %v1188_v2 = vadd.f32 %v1138_v54, %v874_v35  ;;  %1670 = vmatmul.bf16.gmra.mxu0 %v1277_v34  ;;  %v1751_v61 = vsel %vm1738_vm1, %v1724_v32, %v1725_v36  ;;  %v3781_v3 = vsel %vm1333_vm0, %v1319_v28, %v1320_v58  ;;  %v879_v54 = vadd.f32 %v878_v10, %v3549_v59 }
 0x1fc   : > { %v881_v59 = vadd.f32 %v880_v41, %v3551_v60 }
 0x1fd   : > { %v1224_v57 = vadd.f32 %v3579_v37, %v1188_v2  ;;  %v883_v16 = vpop.f32.mrf.mxu3 }
 0x1fe   : > { %v884_v41 = vadd.f32 %v883_v16, %v3555_v62 }
 0x1ff   : > { %v1256_v55 = vmax.f32 %v1224_v57, 0.0 }
 0x201   : > { %v1321_v51 = vrot.slane %v1256_v55, 6  ;;  %v1726_v26 = vrot.slane %v1256_v55, 2 }
 0x202   : > { %v1140_v38 = vpop.f32.mrf.mxu2 }
 0x203   : > { %v1189_v52 = vadd.f32 %v1140_v38, %v876_v31  ;;  %v1750_v32 = vsel %vm1738_vm1, %v1725_v36, %v1726_v26  ;;  %v3791_v28 = vsel %vm1333_vm0, %v1320_v58, %v1321_v51 }
 0x204   : > { %v2712_v35 = vpack.c.bf16 %v1750_v32, %v1751_v61 }
 0x205   : > { %v1225_v34 = vadd.f32 %v3579_v37, %v1189_v52 }
 0x206   : > { %2713 = vmatmul.msk.bf16.gmra.mxu1 %vm3608_vm4, %v2712_v35  ;;  %v2799_v35 = vld [vmem:[#allocation5 + $0x10] sm:$0xff] }
 0x207   : > { %v1257_v56 = vmax.f32 %v1225_v34, 0.0  ;;  %v885_v34 = vpop.f32.mrf.mxu3  ;;  %1485 = vmatpush.bf16.msrb.mxu3 %v2799_v35 }
 0x209   : > { %v1322_v2 = vrot.slane %v1257_v56, 6  ;;  %v1727_v57 = vrot.slane %v1257_v56, 2  ;;  %v1278_v31 = vpack.c.bf16 %v1257_v56, %v1256_v55 }
 0x20a   : > { %v1143_v38 = vpop.f32.mrf.mxu2 }
 0x20b   : > { %v1190_v36 = vadd.f32 %v1143_v38, %v879_v54  ;;  %1675 = vmatmul.bf16.gmra.mxu0 %v1278_v31  ;;  %v1749_v58 = vsel %vm1738_vm1, %v1726_v26, %v1727_v57  ;;  %v3801_v61 = vsel %vm1333_vm0, %v1321_v51, %v1322_v2  ;;  %v3813_v38 = vpop.f32.mrf.mxu0 }
 0x20d   : > { %v1226_v52 = vadd.f32 %v3579_v37, %v1190_v36 }
 0x20f   : > { %v1258_v32 = vmax.f32 %v1226_v52, 0.0 }
 0x211   : > { %v1323_v10 = vrot.slane %v1258_v32, 6  ;;  %v1728_v55 = vrot.slane %v1258_v32, 2 }
 0x212   : > { %v1145_v56 = vpop.f32.mrf.mxu2 }
 0x213   : > { %v1191_v54 = vadd.f32 %v1145_v56, %v881_v59  ;;  %v1748_v26 = vsel %vm1738_vm1, %v1727_v57, %v1728_v55  ;;  %v3811_v51 = vsel %vm1333_vm0, %v1322_v2, %v1323_v10  ;;  %v3828_v62 = vpop.f32.mrf.mxu0 }
 0x214   : > { %v2715_v31 = vpack.c.bf16 %v1748_v26, %v1749_v58 }
 0x215   : > { %v1227_v36 = vadd.f32 %v3579_v37, %v1191_v54  ;;  %v888_v54 = vpop.f32.mrf.mxu3 }
 0x216   : > { %2716 = vmatmul.msk.bf16.gmra.mxu1 %vm3608_vm4, %v2715_v31 }
 0x217   : > { %v1259_v60 = vmax.f32 %v1227_v36, 0.0  ;;  %v886_v36 = vadd.f32 %v885_v34, %v3557_v63  ;;  %v889_v34 = vadd.f32 %v888_v54, %v3561_v1 }
 0x219   : > { %v1324_v52 = vrot.slane %v1259_v60, 6  ;;  %v1729_v59 = vrot.slane %v1259_v60, 2  ;;  %v1279_v56 = vpack.c.bf16 %v1259_v60, %v1258_v32  ;;  %v3830_v32 = vpop.f32.mrf.mxu1 }
 0x21a   : > { %v1148_v57 = vpop.f32.mrf.mxu2 }
 0x21b   : > { %v1192_v35 = vadd.f32 %v1148_v57, %v884_v41  ;;  %1680 = vmatmul.bf16.gmra.mxu0 %v1279_v56  ;;  %v1747_v2 = vsel %vm1738_vm1, %v1728_v55, %v1729_v59  ;;  %v3823_v58 = vsel %vm1333_vm0, %v1323_v10, %v1324_v52  ;;  %v2798_v55 = vld [vmem:[#allocation5 + $0x8] sm:$0xff]  ;;  %v3843_v9 = vpop.f32.mrf.mxu0 }
 0x21c   : > { %1486 = vmatpush.bf16.msrb.mxu3 %v2798_v55 }
 0x21d   : > { %v1228_v31 = vadd.f32 %v3579_v37, %v1192_v35  ;;  %v890_v47 = vpop.f32.mrf.mxu3 }
 0x21f   : > { %v1260_v16 = vmax.f32 %v1228_v31, 0.0 }
 0x221   : > { %v1325_v60 = vrot.slane %v1260_v16, 6  ;;  %v1730_v41 = vrot.slane %v1260_v16, 2  ;;  %v3845_v55 = vpop.f32.mrf.mxu1 }
 0x222   : > { %v1150_v56 = vpop.f32.mrf.mxu2 }
 0x223   : > { %v1193_v57 = vadd.f32 %v1150_v56, %v886_v36  ;;  %v1746_v10 = vsel %vm1738_vm1, %v1729_v59, %v1730_v41  ;;  %v3837_v26 = vsel %vm1333_vm0, %v1324_v52, %v1325_v60 }
 0x224   : > { %v2718_v35 = vpack.c.bf16 %v1746_v10, %v1747_v2 }
 0x225   : > { %v1229_v31 = vadd.f32 %v3579_v37, %v1193_v57 }
 0x226   : > { %2719 = vmatmul.msk.bf16.gmra.mxu1 %vm3608_vm4, %v2718_v35  ;;  %v893_v35 = vpop.f32.mrf.mxu3 }
 0x227   : > { %v1261_v63 = vmax.f32 %v1229_v31, 0.0  ;;  %v894_v5 = vadd.f32 %v893_v35, %v3566_v11 }
 0x229   : > { %v1326_v36 = vrot.slane %v1261_v63, 6  ;;  %v1731_v56 = vrot.slane %v1261_v63, 2  ;;  %v1280_v59 = vpack.c.bf16 %v1261_v63, %v1260_v16  ;;  %v891_v16 = vadd.f32 %v890_v47, %v3563_v4 }
 0x22a   : > { %v1153_v39 = vpop.f32.mrf.mxu2 }
 0x22b   : > { %v1194_v52 = vadd.f32 %v1153_v39, %v889_v34  ;;  %1685 = vmatmul.bf16.gmra.mxu0 %v1280_v59  ;;  %v1745_v2 = vsel %vm1738_vm1, %v1730_v41, %v1731_v56  ;;  %v3851_v57 = vsel %vm1333_vm0, %v1325_v60, %v1326_v36  ;;  %v2797_v39 = vld [vmem:[#allocation5] sm:$0xff]  ;;  %v3857_v59 = vpop.f32.mrf.mxu0 }
 0x22c   : > { %1487 = vmatpush.bf16.msrb.mxu3 %v2797_v39 }
 0x22d   : > { %v1230_v54 = vadd.f32 %v3579_v37, %v1194_v52  ;;  %v3865_v52 = vpop.f32.mrf.mxu1 }
 0x22f   : > { %v1262_v10 = vmax.f32 %v1230_v54, 0.0 }
 0x231   : > { %v1327_v31 = vrot.slane %v1262_v10, 6  ;;  %v1732_v63 = vrot.slane %v1262_v10, 2 }
 0x232   : > { %v1155_v34 = vpop.f32.mrf.mxu2 }
 0x233   : > { %v1195_v41 = vadd.f32 %v1155_v34, %v891_v16  ;;  %v1744_v60 = vsel %vm1738_vm1, %v1731_v56, %v1732_v63  ;;  %v3863_v1 = vsel %vm1333_vm0, %v1326_v36, %v1327_v31  ;;  %v895_v56 = vpop.f32.mrf.mxu3 }
 0x234   : > { %v2721_v54 = vpack.c.bf16 %v1744_v60, %v1745_v2  ;;  %v3879_v60 = vpop.f32.mrf.mxu0 }
 0x235   : > { %v1231_v4 = vadd.f32 %v3579_v37, %v1195_v41  ;;  %v3882_v35 = vpop.f32.mrf.mxu1 }
 0x236   : > { %2722 = vmatmul.msk.bf16.gmra.mxu1 %vm3608_vm4, %v2721_v54 }
 0x237   : > { %v1263_v47 = vmax.f32 %v1231_v4, 0.0 }
 0x239   : > { %v1328_v16 = vrot.slane %v1263_v47, 6  ;;  %v1733_v34 = vrot.slane %v1263_v47, 2  ;;  %v1281_v30 = vpack.c.bf16 %v1263_v47, %v1262_v10 }
 0x23a   : > { %v1158_v39 = vpop.f32.mrf.mxu2 }
 0x23b   : > { %v1196_v45 = vadd.f32 %v1158_v39, %v894_v5  ;;  %1690 = vmatmul.bf16.gmra.mxu0 %v1281_v30  ;;  %v1743_v36 = vsel %vm1738_vm1, %v1732_v63, %v1733_v34  ;;  %v3875_v2 = vsel %vm1333_vm0, %v1327_v31, %v1328_v16  ;;  %v896_v5 = vadd.f32 %v895_v56, %v3568_v18  ;;  %v898_v39 = vpop.f32.mrf.mxu3 }
 0x23d   : > { %v1232_v11 = vadd.f32 %v3579_v37, %v1196_v45  ;;  %v3896_v56 = vpop.f32.mrf.mxu1 }
 0x23f   : > { %v1264_v10 = vmax.f32 %v1232_v11, 0.0  ;;  %v3894_v11 = vpop.f32.mrf.mxu0 }
 0x241   : > { %v1329_v30 = vrot.slane %v1264_v10, 6  ;;  %v1734_v54 = vrot.slane %v1264_v10, 2 }
 0x242   : > { %v1160_v4 = vpop.f32.mrf.mxu2 }
 0x243   : > { %v1197_v63 = vadd.f32 %v1160_v4, %v896_v5  ;;  %v1742_v31 = vsel %vm1738_vm1, %v1733_v34, %v1734_v54  ;;  %v3889_v47 = vsel %vm1333_vm0, %v1328_v16, %v1329_v30  ;;  %v899_v5 = vadd.f32 %v898_v39, %v3571_v24 }
 0x244   : > { %v2724_v41 = vpack.c.bf16 %v1742_v31, %v1743_v36 }
 0x245   : > { %v1233_v45 = vadd.f32 %v3579_v37, %v1197_v63 }
 0x246   : > { %2725 = vmatmul.msk.bf16.gmra.mxu1 %vm3608_vm4, %v2724_v41 }
 0x247   : > { %v1265_v18 = vmax.f32 %v1233_v45, 0.0  ;;  %v900_v45 = vpop.f32.mrf.mxu3 }
 0x248   : > { %v901_v39 = vadd.f32 %v900_v45, %v3573_v29 }
 0x249   : > { %v1330_v4 = vrot.slane %v1265_v18, 6  ;;  %v1735_v34 = vrot.slane %v1265_v18, 2  ;;  %v1282_v8 = vpack.c.bf16 %v1265_v18, %v1264_v10  ;;  %v3909_v10 = vpop.f32.mrf.mxu0  ;;  %v3911_v18 = vpop.f32.mrf.mxu1 }
 0x24a   : > { %v1163_v21 = vpop.f32.mrf.mxu2 }
 0x24b   : > { %v1198_v16 = vadd.f32 %v1163_v21, %v899_v5  ;;  %1695 = vmatmul.bf16.gmra.mxu0 %v1282_v8  ;;  %v1741_v36 = vsel %vm1738_vm1, %v1734_v54, %v1735_v34  ;;  %v3903_v63 = vsel %vm1333_vm0, %v1329_v30, %v1330_v4 }
 0x24d   : > { %v1234_v31 = vadd.f32 %v3579_v37, %v1198_v16 }
 0x24f   : > { %v1266_v24 = vmax.f32 %v1234_v31, 0.0 }
 0x251   : > { %v1331_v21 = vrot.slane %v1266_v24, 6  ;;  %v1736_v8 = vrot.slane %v1266_v24, 2 }
 0x252   : > { %v1165_v54 = vpop.f32.mrf.mxu2 }
 0x253   : > { %v1199_v5 = vadd.f32 %v1165_v54, %v901_v39  ;;  %v1740_v30 = vsel %vm1738_vm1, %v1735_v34, %v1736_v8  ;;  %v3917_v41 = vsel %vm1333_vm0, %v1330_v4, %v1331_v21  ;;  %v3923_v39 = vpop.f32.mrf.mxu0  ;;  %v3944_v54 = vpop.f32.mrf.mxu1 }
 0x254   : > { %v2727_v16 = vpack.c.bf16 %v1740_v30, %v1741_v36  ;;  %v4182_v36 = vrot.slane %v3584_v50, 2 }
 0x255   : > { %v1235_v31 = vadd.f32 %v3579_v37, %v1199_v5 }
 0x256   : > { %2728 = vmatmul.msk.bf16.gmra.mxu1 %vm3608_vm4, %v2727_v16 }
 0x257   : > { %v1267_v29 = vmax.f32 %v1235_v31, 0.0 }
 0x259   : > { %v1332_v45 = vrot.slane %v1267_v29, 6  ;;  %v1737_v48 = vrot.slane %v1267_v29, 2  ;;  %v1283_v13 = vpack.c.bf16 %v1267_v29, %v1266_v24 }
 0x25b   : > { %1700 = vmatmul.bf16.gmra.mxu0 %v1283_v13  ;;  %v1365_v4 = vsel %vm1333_vm0, %v1332_v45, %v1301_v0  ;;  %v1739_v34 = vsel %vm1738_vm1, %v1736_v8, %v1737_v48  ;;  %v1770_v24 = vsel %vm1738_vm1, %v1737_v48, %v4182_v36  ;;  %v3942_v13 = vsel %vm1333_vm0, %v1331_v21, %v1332_v45  ;;  %v3951_v50 = vpop.f32.mrf.mxu1 }
 0x25c   : > { %v2573_v0 = vpack.c.bf16 %v3596_v33, %v1365_v4  ;;  %v2730_v5 = vpack.c.bf16 %v1770_v24, %v1739_v34  ;;  %v2618_v30 = vpack.c.bf16 %v3942_v13, %v3917_v41  ;;  %v4184_v33 = vpack.c.bf16 %v3641_v20, %v3633_v6 }
 0x25d   : > { %v4185_v48 = vpack.c.bf16 %v3660_v7, %v3653_v53  ;;  %v4189_v6 = vpack.c.bf16 %v3739_v14, %v3730_v27  ;;  %v4190_v20 = vpack.c.bf16 %v3761_v15, %v3751_v12  ;;  %v2817_v12 = vunpack.c.h.bf16 %v2815_v17 }
 0x25e   : > { %2574 = vmatmul.msk.bf16.vlgmr.msrb.gmra.mxu3 %vm3930_vm6, %v2573_v0 }
 0x263   : > { %v4015_v45 = vpop.f32.mrf.mxu1 }
 0x266   : > { %2731 = vmatmul.msk.bf16.gmra.mxu1 %vm3608_vm4, %v2730_v5 }
 0x26e   : > { %2577 = vmatmul.msk.bf16.gmra.mxu3 %vm3930_vm6, %v4183_v49 }
 0x27e   : > { %2580 = vmatmul.msk.bf16.gmra.mxu3 %vm3930_vm6, %v4184_v33 }
 0x28e   : > { %2583 = vmatmul.msk.bf16.gmra.mxu3 %vm3930_vm6, %v4185_v48  ;;  %v4192_v48 = vpack.c.bf16 %v3801_v61, %v3791_v28 }
 0x29e   : > { %2586 = vmatmul.msk.bf16.gmra.mxu3 %vm3930_vm6, %v4186_v23 }
 0x2ae   : > { %2589 = vmatmul.msk.bf16.gmra.mxu3 %vm3930_vm6, %v4187_v25 }
 0x2be   : > { %2592 = vmatmul.msk.bf16.gmra.mxu3 %vm3930_vm6, %v4188_v44 }
 0x2ce   : > { %2595 = vmatmul.msk.bf16.gmra.mxu3 %vm3930_vm6, %v4189_v6 }
 0x2de   : > { %2598 = vmatmul.msk.bf16.gmra.mxu3 %vm3930_vm6, %v4190_v20 }
 0x2e1   : > { %v1489_v53 = vpop.f32.mrf.mxu3 }
 0x2e2   : > { %v1627_v7 = vadd.f32 %v3813_v38, %v1489_v53 }
 0x2e4   : > { %v1977_v19 = vadd.f32 %v3830_v32, %v1627_v7  ;;  %v4191_v32 = vpack.c.bf16 %v3781_v3, %v3771_v46  ;;  %v2960_v3 = vld [vmem:[%s3470_s16 + $0x8] sm:$0xff]   ;;  %v2961_v7 = vld [vmem:[%s3470_s16 + $0x10] sm:$0xff]  }
 0x2e5   : > { %v2820_v36 = vunpack.c.l.bf16 %v2960_v3  ;;  %v2821_v0 = vunpack.c.h.bf16 %v2960_v3  ;;  %v2824_v61 = vunpack.c.l.bf16 %v2961_v7 }
 0x2e6   : > { %v2013_v22 = vadd.f32 %v4000_v43, %v1977_v19 }
 0x2e8   : > { %v2109_v15 = vadd.f32 %v2816_v40, %v2013_v22  ;;  %v2825_v40 = vunpack.c.h.bf16 %v2961_v7 }
 0x2e9   : > { %v1491_v42 = vpop.f32.mrf.mxu3 }
 0x2ea   : > { %v1629_v27 = vadd.f32 %v3828_v62, %v1491_v42  ;;  %v2141_v16 = vmax.f32 %v2109_v15, 0.0  ;;  %v4013_v62 = vpop.f32.mrf.mxu0 }
 0x2ec   : > { %v1978_v14 = vadd.f32 %v3845_v55, %v1629_v27 }
 0x2ee   : > { %v2014_v38 = vadd.f32 %v4000_v43, %v1978_v14  ;;  %2601 = vmatmul.msk.bf16.gmra.mxu3 %vm3930_vm6, %v4191_v32 }
 0x2f0   : > { %v2110_v21 = vadd.f32 %v2817_v12, %v2014_v38 }
 0x2f1   : > { %v1494_v8 = vpop.f32.mrf.mxu3 }
 0x2f2   : > { %v2142_v31 = vmax.f32 %v2110_v21, 0.0  ;;  %v1632_v29 = vadd.f32 %v3843_v9, %v1494_v8  ;;  %v1648_v5 = vpop.f32.mrf.mxu0 }
 0x2f4   : > { %v2881_v55 = vpack.c.bf16 %v2142_v31, %v2141_v16  ;;  %v1979_v46 = vadd.f32 %v3865_v52, %v1632_v29  ;;  %v1919_v52 = vpop.f32.mrf.mxu1  ;;  %v2962_v16 = vld [vmem:[%s3470_s16 + $0x18] sm:$0xff]  }
 0x2f5   : > { %v2829_v3 = vunpack.c.h.bf16 %v2962_v16 }
 0x2f6   : > { %2882 = vst [vmem:[%s4018_s30] sm:$0xff] %v2881_v55   ;;  %v2015_v34 = vadd.f32 %v4000_v43, %v1979_v46 }
 0x2f8   : > { %v2111_v49 = vadd.f32 %v2820_v36, %v2015_v34 }
 0x2f9   : > { %v1496_v4 = vpop.f32.mrf.mxu3 }
 0x2fa   : > { %v1634_v24 = vadd.f32 %v3857_v59, %v1496_v4  ;;  %v2143_v44 = vmax.f32 %v2111_v49, 0.0  ;;  %v1651_v53 = vpop.f32.mrf.mxu0 }
 0x2fc   : > { %v1980_v9 = vadd.f32 %v3882_v35, %v1634_v24  ;;  %v1922_v19 = vpop.f32.mrf.mxu1 }
 0x2fe   : > { %v2016_v33 = vadd.f32 %v4000_v43, %v1980_v9  ;;  %2604 = vmatmul.msk.bf16.gmra.mxu3 %vm3930_vm6, %v4192_v48 }
 0x300   : > { %v2112_v23 = vadd.f32 %v2821_v0, %v2016_v33 }
 0x301   : > { %v1499_v25 = vpop.f32.mrf.mxu3 }
 0x302   : > { %v2144_v6 = vmax.f32 %v2112_v23, 0.0  ;;  %v1637_v59 = vadd.f32 %v3879_v60, %v1499_v25  ;;  %v1653_v12 = vpop.f32.mrf.mxu0  ;;  %v2963_v23 = vld [vmem:[%s3470_s16 + $0x20] sm:$0xff]  }
 0x304   : > { %v2886_v35 = vpack.c.bf16 %v2144_v6, %v2143_v44  ;;  %v1981_v20 = vadd.f32 %v3896_v56, %v1637_v59  ;;  %v4193_v56 = vpack.c.bf16 %v3823_v58, %v3811_v51  ;;  %v1924_v21 = vpop.f32.mrf.mxu1  ;;  %v2828_v51 = vunpack.c.l.bf16 %v2962_v16 }
 0x305   : > { %v2833_v59 = vunpack.c.h.bf16 %v2963_v23 }
 0x306   : > { %2975 = vst [vmem:[%s4018_s30 + $0x8] sm:$0xff] %v2886_v35   ;;  %v2017_v28 = vadd.f32 %v4000_v43, %v1981_v20 }
 0x308   : > { %v2113_v27 = vadd.f32 %v2824_v61, %v2017_v28 }
 0x309   : > { %v1501_v17 = vpop.f32.mrf.mxu3 }
 0x30a   : > { %v1639_v42 = vadd.f32 %v3894_v11, %v1501_v17  ;;  %v2145_v38 = vmax.f32 %v2113_v27, 0.0  ;;  %v1656_v55 = vpop.f32.mrf.mxu0 }
 0x30c   : > { %v1982_v22 = vadd.f32 %v3911_v18, %v1639_v42  ;;  %v1927_v4 = vpop.f32.mrf.mxu1 }
 0x30e   : > { %v2018_v60 = vadd.f32 %v4000_v43, %v1982_v22  ;;  %2607 = vmatmul.msk.bf16.gmra.mxu3 %vm3930_vm6, %v4193_v56 }
 0x310   : > { %v2114_v14 = vadd.f32 %v2825_v40, %v2018_v60  ;;  %v2964_v40 = vld [vmem:[%s3470_s16 + $0x28] sm:$0xff]  }
 0x311   : > { %v1504_v15 = vpop.f32.mrf.mxu3 }
 0x312   : > { %v2146_v32 = vmax.f32 %v2114_v14, 0.0  ;;  %v1642_v11 = vadd.f32 %v3909_v10, %v1504_v15  ;;  %v2836_v14 = vunpack.c.l.bf16 %v2964_v40 }
 0x314   : > { %v2891_v8 = vpack.c.bf16 %v2146_v32, %v2145_v38  ;;  %v1983_v18 = vadd.f32 %v3944_v54, %v1642_v11  ;;  %v4194_v54 = vpack.c.bf16 %v3851_v57, %v3837_v26  ;;  %v1929_v48 = vpop.f32.mrf.mxu1  ;;  %v2832_v26 = vunpack.c.l.bf16 %v2963_v23  ;;  %v2966_v23 = vld [vmem:[%s3470_s16 + $0x38] sm:$0xff]  }
 0x315   : > { %v2837_v38 = vunpack.c.h.bf16 %v2964_v40  ;;  %v2844_v41 = vunpack.c.l.bf16 %v2966_v23 }
 0x316   : > { %2976 = vst [vmem:[%s4018_s30 + $0x10] sm:$0xff] %v2891_v8   ;;  %v2019_v29 = vadd.f32 %v4000_v43, %v1983_v18 }
 0x318   : > { %v2115_v10 = vadd.f32 %v2828_v51, %v2019_v29 }
 0x319   : > { %v1506_v31 = vpop.f32.mrf.mxu3 }
 0x31a   : > { %v1644_v58 = vadd.f32 %v3923_v39, %v1506_v31  ;;  %v2147_v9 = vmax.f32 %v2115_v10, 0.0 }
 0x31c   : > { %v1984_v46 = vadd.f32 %v3951_v50, %v1644_v58  ;;  %v1658_v50 = vpop.f32.mrf.mxu0  ;;  %v1932_v17 = vpop.f32.mrf.mxu1  ;;  %v2965_v58 = vld [vmem:[%s3470_s16 + $0x30] sm:$0xff]  }
 0x31d   : > { %v2840_v10 = vunpack.c.l.bf16 %v2965_v58 }
 0x31e   : > { %v2020_v34 = vadd.f32 %v4000_v43, %v1984_v46  ;;  %2610 = vmatmul.msk.bf16.gmra.mxu3 %vm3930_vm6, %v4194_v54 }
 0x320   : > { %v2116_v36 = vadd.f32 %v2829_v3, %v2020_v34  ;;  %v2841_v34 = vunpack.c.h.bf16 %v2965_v58 }
 0x321   : > { %v1509_v24 = vpop.f32.mrf.mxu3 }
 0x322   : > { %v2148_v0 = vmax.f32 %v2116_v36, 0.0  ;;  %v1647_v39 = vadd.f32 %v4013_v62, %v1509_v24  ;;  %v4195_v62 = vpack.c.bf16 %v3875_v2, %v3863_v1 }
 0x324   : > { %v2896_v49 = vpack.c.bf16 %v2148_v0, %v2147_v9  ;;  %v1985_v33 = vadd.f32 %v4015_v45, %v1647_v39  ;;  %v1661_v45 = vpop.f32.mrf.mxu0  ;;  %v1934_v2 = vpop.f32.mrf.mxu1 }
 0x326   : > { %2977 = vst [vmem:[%s4018_s30 + $0x18] sm:$0xff] %v2896_v49   ;;  %v2021_v44 = vadd.f32 %v4000_v43, %v1985_v33 }
 0x328   : > { %v2117_v35 = vadd.f32 %v2832_v26, %v2021_v44 }
 0x329   : > { %v1511_v25 = vpop.f32.mrf.mxu3 }
 0x32a   : > { %v1649_v57 = vadd.f32 %v1648_v5, %v1511_v25  ;;  %v2149_v61 = vmax.f32 %v2117_v35, 0.0 }
 0x32c   : > { %v1986_v6 = vadd.f32 %v1919_v52, %v1649_v57  ;;  %v1663_v27 = vpop.f32.mrf.mxu0  ;;  %v1937_v51 = vpop.f32.mrf.mxu1 }
 0x32e   : > { %v2022_v20 = vadd.f32 %v4000_v43, %v1986_v6  ;;  %2613 = vmatmul.msk.bf16.gmra.mxu3 %vm3930_vm6, %v4195_v62 }
 0x330   : > { %v2118_v7 = vadd.f32 %v2833_v59, %v2022_v20 }
 0x331   : > { %v1514_v28 = vpop.f32.mrf.mxu3 }
 0x332   : > { %v2150_v42 = vmax.f32 %v2118_v7, 0.0  ;;  %v1652_v22 = vadd.f32 %v1651_v53, %v1514_v28  ;;  %v4196_v53 = vpack.c.bf16 %v3903_v63, %v3889_v47 }
 0x334   : > { %v2901_v5 = vpack.c.bf16 %v2150_v42, %v2149_v61  ;;  %v1987_v52 = vadd.f32 %v1922_v19, %v1652_v22  ;;  %v1666_v29 = vpop.f32.mrf.mxu0  ;;  %v2967_v42 = vld [vmem:[%s3470_s16 + $0x40] sm:$0xff]  }
 0x336   : > { %2978 = vst [vmem:[%s4018_s30 + $0x20] sm:$0xff] %v2901_v5   ;;  %v2023_v56 = vadd.f32 %v4000_v43, %v1987_v52  ;;  %v2848_v52 = vunpack.c.l.bf16 %v2967_v42 }
 0x338   : > { %v2119_v32 = vadd.f32 %v2836_v14, %v2023_v56  ;;  %v2849_v56 = vunpack.c.h.bf16 %v2967_v42 }
 0x339   : > { %v1516_v60 = vpop.f32.mrf.mxu3 }
 0x33a   : > { %v1654_v1 = vadd.f32 %v1653_v12, %v1516_v60  ;;  %v2151_v18 = vmax.f32 %v2119_v32, 0.0 }
 0x33c   : > { %v1988_v15 = vadd.f32 %v1924_v21, %v1654_v1  ;;  %v1668_v54 = vpop.f32.mrf.mxu0 }
 0x33e   : > { %v2024_v11 = vadd.f32 %v4000_v43, %v1988_v15  ;;  %2616 = vmatmul.msk.bf16.gmra.mxu3 %vm3930_vm6, %v4196_v53 }
 0x340   : > { %v2120_v19 = vadd.f32 %v2837_v38, %v2024_v11 }
 0x341   : > { %v1519_v8 = vpop.f32.mrf.mxu3 }
 0x342   : > { %v2152_v16 = vmax.f32 %v2120_v19, 0.0  ;;  %v1657_v31 = vadd.f32 %v1656_v55, %v1519_v8  ;;  %v1939_v55 = vpop.f32.mrf.mxu1 }
 0x344   : > { %v2906_v12 = vpack.c.bf16 %v2152_v16, %v2151_v18  ;;  %v1989_v21 = vadd.f32 %v1927_v4, %v1657_v31  ;;  %v2968_v31 = vld [vmem:[%s3470_s16 + $0x48] sm:$0xff]  }
 0x346   : > { %2979 = vst [vmem:[%s4018_s30 + $0x28] sm:$0xff] %v2906_v12   ;;  %v2025_v3 = vadd.f32 %v4000_v43, %v1989_v21 }
 0x348   : > { %v2121_v36 = vadd.f32 %v2840_v10, %v2025_v3 }
 0x349   : > { %v1521_v46 = vpop.f32.mrf.mxu3 }
 0x34a   : > { %v1659_v47 = vadd.f32 %v1658_v50, %v1521_v46  ;;  %v2153_v0 = vmax.f32 %v2121_v36, 0.0  ;;  %v1942_v25 = vpop.f32.mrf.mxu1  ;;  %v2853_v46 = vunpack.c.h.bf16 %v2968_v31 }
 0x34c   : > { %v1990_v63 = vadd.f32 %v1929_v48, %v1659_v47  ;;  %v1671_v48 = vpop.f32.mrf.mxu0 }
 0x34e   : > { %v2026_v24 = vadd.f32 %v4000_v43, %v1990_v63  ;;  %2619 = vmatmul.msk.bf16.gmra.mxu3 %vm3930_vm6, %v2618_v30  ;;  %v2845_v30 = vunpack.c.h.bf16 %v2966_v23 }
 0x350   : > { %v2122_v4 = vadd.f32 %v2841_v34, %v2026_v24 }
 0x351   : > { %v1524_v9 = vpop.f32.mrf.mxu3 }
 0x352   : > { %v2154_v39 = vmax.f32 %v2122_v4, 0.0  ;;  %v1662_v49 = vadd.f32 %v1661_v45, %v1524_v9 }
 0x354   : > { %v2911_v50 = vpack.c.bf16 %v2154_v39, %v2153_v0  ;;  %v1991_v33 = vadd.f32 %v1932_v17, %v1662_v49  ;;  %v1673_v35 = vpop.f32.mrf.mxu0  ;;  %v1944_v17 = vpop.f32.mrf.mxu1  ;;  %v2969_v0 = vld [vmem:[%s3470_s16 + $0x50] sm:$0xff]  }
 0x356   : > { %2980 = vst [vmem:[%s4018_s30 + $0x30] sm:$0xff] %v2911_v50   ;;  %v2027_v26 = vadd.f32 %v4000_v43, %v1991_v33  ;;  %v2856_v33 = vunpack.c.l.bf16 %v2969_v0 }
 0x358   : > { %v2123_v57 = vadd.f32 %v2844_v41, %v2027_v26 }
 0x359   : > { %v1526_v44 = vpop.f32.mrf.mxu3 }
 0x35a   : > { %v1664_v37 = vadd.f32 %v1663_v27, %v1526_v44  ;;  %v2155_v62 = vmax.f32 %v2123_v57, 0.0  ;;  %v2857_v44 = vunpack.c.h.bf16 %v2969_v0 }
 0x35c   : > { %v1992_v13 = vadd.f32 %v1934_v2, %v1664_v37  ;;  %v1676_v27 = vpop.f32.mrf.mxu0  ;;  %v1947_v14 = vpop.f32.mrf.mxu1 }
 0x35e   : > { %v2028_v6 = vadd.f32 %v4000_v43, %v1992_v13 }
 0x360   : > { %v2124_v59 = vadd.f32 %v2845_v30, %v2028_v6 }
 0x361   : > { %v1529_v20 = vpop.f32.mrf.mxu3 }
 0x362   : > { %v2156_v45 = vmax.f32 %v2124_v59, 0.0  ;;  %v1667_v7 = vadd.f32 %v1666_v29, %v1529_v20 }
 0x364   : > { %v2916_v28 = vpack.c.bf16 %v2156_v45, %v2155_v62  ;;  %v1993_v61 = vadd.f32 %v1937_v51, %v1667_v7  ;;  %v1678_v8 = vpop.f32.mrf.mxu0  ;;  %v1949_v16 = vpop.f32.mrf.mxu1  ;;  %v2852_v51 = vunpack.c.l.bf16 %v2968_v31  ;;  %v2970_v45 = vld [vmem:[%s3470_s16 + $0x58] sm:$0xff]  }
 0x366   : > { %2981 = vst [vmem:[%s4018_s30 + $0x38] sm:$0xff] %v2916_v28   ;;  %v2029_v5 = vadd.f32 %v4000_v43, %v1993_v61  ;;  %v2860_v28 = vunpack.c.l.bf16 %v2970_v45 }
 0x368   : > { %v2125_v1 = vadd.f32 %v2848_v52, %v2029_v5 }
 0x369   : > { %v1531_v22 = vpop.f32.mrf.mxu3 }
 0x36a   : > { %v1669_v40 = vadd.f32 %v1668_v54, %v1531_v22  ;;  %v2157_v32 = vmax.f32 %v2125_v1, 0.0  ;;  %v2861_v22 = vunpack.c.h.bf16 %v2970_v45 }
 0x36c   : > { %v1994_v60 = vadd.f32 %v1939_v55, %v1669_v40  ;;  %v1681_v47 = vpop.f32.mrf.mxu0  ;;  %v1952_v34 = vpop.f32.mrf.mxu1 }
 0x36e   : > { %v2030_v2 = vadd.f32 %v4000_v43, %v1994_v60 }
 0x370   : > { %v2126_v15 = vadd.f32 %v2849_v56, %v2030_v2 }
 0x371   : > { %v1534_v38 = vpop.f32.mrf.mxu3 }
 0x372   : > { %v2158_v11 = vmax.f32 %v2126_v15, 0.0  ;;  %v1672_v53 = vadd.f32 %v1671_v48, %v1534_v38 }
 0x374   : > { %v2921_v19 = vpack.c.bf16 %v2158_v11, %v2157_v32  ;;  %v1995_v18 = vadd.f32 %v1942_v25, %v1672_v53  ;;  %v1683_v39 = vpop.f32.mrf.mxu0  ;;  %v1954_v23 = vpop.f32.mrf.mxu1  ;;  %v2971_v11 = vld [vmem:[%s3470_s16 + $0x60] sm:$0xff]  }
 0x376   : > { %2982 = vst [vmem:[%s4018_s30 + $0x40] sm:$0xff] %v2921_v19   ;;  %v2031_v12 = vadd.f32 %v4000_v43, %v1995_v18  ;;  %v2864_v18 = vunpack.c.l.bf16 %v2971_v11 }
 0x378   : > { %v2127_v3 = vadd.f32 %v2852_v51, %v2031_v12 }
 0x379   : > { %v1536_v29 = vpop.f32.mrf.mxu3 }
 0x37a   : > { %v1674_v21 = vadd.f32 %v1673_v35, %v1536_v29  ;;  %v2159_v36 = vmax.f32 %v2127_v3, 0.0  ;;  %v2865_v29 = vunpack.c.h.bf16 %v2971_v11 }
 0x37c   : > { %v1996_v58 = vadd.f32 %v1944_v17, %v1674_v21  ;;  %v1686_v59 = vpop.f32.mrf.mxu0  ;;  %v1957_v20 = vpop.f32.mrf.mxu1 }
 0x37e   : > { %v2032_v10 = vadd.f32 %v4000_v43, %v1996_v58 }
 0x380   : > { %v2128_v63 = vadd.f32 %v2853_v46, %v2032_v10 }
 0x381   : > { %v1539_v54 = vpop.f32.mrf.mxu3 }
 0x382   : > { %v2160_v24 = vmax.f32 %v2128_v63, 0.0  ;;  %v1677_v55 = vadd.f32 %v1676_v27, %v1539_v54 }
 0x384   : > { %v2926_v4 = vpack.c.bf16 %v2160_v24, %v2159_v36  ;;  %v1997_v9 = vadd.f32 %v1947_v14, %v1677_v55  ;;  %v1688_v5 = vpop.f32.mrf.mxu0  ;;  %v1959_v27 = vpop.f32.mrf.mxu1  ;;  %v2972_v36 = vld [vmem:[%s3470_s16 + $0x68] sm:$0xff]  }
 0x386   : > { %2983 = vst [vmem:[%s4018_s30 + $0x48] sm:$0xff] %v2926_v4   ;;  %v2033_v50 = vadd.f32 %v4000_v43, %v1997_v9  ;;  %v2868_v4 = vunpack.c.l.bf16 %v2972_v36 }
 0x388   : > { %v2129_v26 = vadd.f32 %v2856_v33, %v2033_v50 }
 0x389   : > { %v1541_v49 = vpop.f32.mrf.mxu3 }
 0x38a   : > { %v1679_v48 = vadd.f32 %v1678_v8, %v1541_v49  ;;  %v2161_v30 = vmax.f32 %v2129_v26, 0.0  ;;  %v2869_v49 = vunpack.c.h.bf16 %v2972_v36 }
 0x38c   : > { %v1998_v25 = vadd.f32 %v1949_v16, %v1679_v48  ;;  %v1691_v32 = vpop.f32.mrf.mxu0  ;;  %v1962_v53 = vpop.f32.mrf.mxu1 }
 0x38e   : > { %v2034_v41 = vadd.f32 %v4000_v43, %v1998_v25 }
 0x390   : > { %v2130_v37 = vadd.f32 %v2857_v44, %v2034_v41 }
 0x391   : > { %v1544_v13 = vpop.f32.mrf.mxu3 }
 0x392   : > { %v2162_v57 = vmax.f32 %v2130_v37, 0.0  ;;  %v1682_v6 = vadd.f32 %v1681_v47, %v1544_v13 }
 0x394   : > { %v2931_v35 = vpack.c.bf16 %v2162_v57, %v2161_v30  ;;  %v1999_v62 = vadd.f32 %v1952_v34, %v1682_v6  ;;  %v1693_v58 = vpop.f32.mrf.mxu0  ;;  %v1964_v63 = vpop.f32.mrf.mxu1  ;;  %v2973_v6 = vld [vmem:[%s3470_s16 + $0x70] sm:$0xff]  }
 0x396   : > { %2984 = vst [vmem:[%s4018_s30 + $0x50] sm:$0xff] %v2931_v35   ;;  %v2035_v17 = vadd.f32 %v4000_v43, %v1999_v62 }
 0x398   : > { %v2131_v52 = vadd.f32 %v2860_v28, %v2035_v17 }
 0x399   : > { %v1546_v7 = vpop.f32.mrf.mxu3 }
 0x39a   : > { %v1684_v61 = vadd.f32 %v1683_v39, %v1546_v7  ;;  %v2163_v14 = vmax.f32 %v2131_v52, 0.0  ;;  %v2873_v7 = vunpack.c.h.bf16 %v2973_v6 }
 0x39c   : > { %v2000_v42 = vadd.f32 %v1954_v23, %v1684_v61  ;;  %v1696_v0 = vpop.f32.mrf.mxu0  ;;  %v1967_v50 = vpop.f32.mrf.mxu1 }
 0x39e   : > { %v2036_v40 = vadd.f32 %v4000_v43, %v2000_v42 }
 0x3a0   : > { %v2132_v60 = vadd.f32 %v2861_v22, %v2036_v40 }
 0x3a1   : > { %v1549_v56 = vpop.f32.mrf.mxu3 }
 0x3a2   : > { %v2164_v1 = vmax.f32 %v2132_v60, 0.0  ;;  %v1687_v2 = vadd.f32 %v1686_v59, %v1549_v56 }
 0x3a4   : > { %v2936_v15 = vpack.c.bf16 %v2164_v1, %v2163_v14  ;;  %v2001_v38 = vadd.f32 %v1957_v20, %v1687_v2  ;;  %v1698_v13 = vpop.f32.mrf.mxu0  ;;  %v1969_v57 = vpop.f32.mrf.mxu1  ;;  %v2872_v20 = vunpack.c.l.bf16 %v2973_v6  ;;  %v2974_v14 = vld [vmem:[%s3470_s16 + $0x78] sm:$0xff]   ;;  %s2250_s16 = sshll.u32 %s4018_s30, 4  ;;  %s2251_s16 = int_to_ptr.vmem [resolvable:$true] %s2250_s16 }
 0x3a6   : > { %2985 = vst [vmem:[%s4018_s30 + $0x58] sm:$0xff] %v2936_v15   ;;  %v2037_v8 = vadd.f32 %v4000_v43, %v2001_v38  ;;  %v2876_v38 = vunpack.c.l.bf16 %v2974_v14 }
 0x3a8   : > { %v2133_v12 = vadd.f32 %v2864_v18, %v2037_v8 }
 0x3a9   : > { %v1551_v19 = vpop.f32.mrf.mxu3 }
 0x3aa   : > { %v1689_v16 = vadd.f32 %v1688_v5, %v1551_v19  ;;  %v2165_v3 = vmax.f32 %v2133_v12, 0.0  ;;  %v2877_v19 = vunpack.c.h.bf16 %v2974_v14 }
 0x3ac   : > { %v2002_v31 = vadd.f32 %v1959_v27, %v1689_v16  ;;  %v1701_v61 = vpop.f32.mrf.mxu0  ;;  %v1972_v22 = vpop.f32.mrf.mxu1 }
 0x3ae   : > { %v2038_v51 = vadd.f32 %v4000_v43, %v2002_v31 }
 0x3b0   : > { %v2134_v21 = vadd.f32 %v2865_v29, %v2038_v51 }
 0x3b1   : > { %v1554_v46 = vpop.f32.mrf.mxu3 }
 0x3b2   : > { %v2166_v10 = vmax.f32 %v2134_v21, 0.0  ;;  %v1692_v47 = vadd.f32 %v1691_v32, %v1554_v46 }
 0x3b4   : > { %v2941_v34 = vpack.c.bf16 %v2166_v10, %v2165_v3  ;;  %v2003_v54 = vadd.f32 %v1962_v53, %v1692_v47  ;;  %v1703_v1 = vpop.f32.mrf.mxu0  ;;  %v1974_v11 = vpop.f32.mrf.mxu1 }
 0x3b6   : > { %2986 = vst [vmem:[%s4018_s30 + $0x60] sm:$0xff] %v2941_v34   ;;  %v2039_v55 = vadd.f32 %v4000_v43, %v2003_v54 }
 0x3b8   : > { %v2135_v33 = vadd.f32 %v2868_v4, %v2039_v55 }
 0x3b9   : > { %v1556_v24 = vpop.f32.mrf.mxu3 }
 0x3ba   : > { %v1694_v9 = vadd.f32 %v1693_v58, %v1556_v24  ;;  %v2167_v44 = vmax.f32 %v2135_v33, 0.0 }
 0x3bc   : > { %v2004_v39 = vadd.f32 %v1964_v63, %v1694_v9 }
 0x3be   : > { %v2040_v48 = vadd.f32 %v4000_v43, %v2004_v39 }
 0x3c0   : > { %v2136_v23 = vadd.f32 %v2869_v49, %v2040_v48 }
 0x3c1   : > { %v1559_v25 = vpop.f32.mrf.mxu3 }
 0x3c2   : > { %v2168_v26 = vmax.f32 %v2136_v23, 0.0  ;;  %v1697_v41 = vadd.f32 %v1696_v0, %v1559_v25 }
 0x3c4   : > { %v2946_v37 = vpack.c.bf16 %v2168_v26, %v2167_v44  ;;  %v2005_v30 = vadd.f32 %v1967_v50, %v1697_v41 }
 0x3c6   : > { %2987 = vst [vmem:[%s4018_s30 + $0x68] sm:$0xff] %v2946_v37   ;;  %v2041_v35 = vadd.f32 %v4000_v43, %v2005_v30 }
 0x3c8   : > { %v2137_v17 = vadd.f32 %v2872_v20, %v2041_v35 }
 0x3c9   : > { %v1561_v59 = vpop.f32.mrf.mxu3 }
 0x3ca   : > { %v1699_v62 = vadd.f32 %v1698_v13, %v1561_v59  ;;  %v2169_v52 = vmax.f32 %v2137_v17, 0.0 }
 0x3cc   : > { %v2006_v45 = vadd.f32 %v1969_v57, %v1699_v62 }
 0x3ce   : > { %v2042_v28 = vadd.f32 %v4000_v43, %v2006_v45 }
 0x3d0   : > { %v2138_v42 = vadd.f32 %v2873_v7, %v2042_v28 }
 0x3d1   : > { %v1564_v5 = vpop.f32.mrf.mxu3 }
 0x3d2   : > { %v2170_v40 = vmax.f32 %v2138_v42, 0.0  ;;  %v1702_v27 = vadd.f32 %v1701_v61, %v1564_v5 }
 0x3d4   : > { %v2951_v60 = vpack.c.bf16 %v2170_v40, %v2169_v52  ;;  %v2007_v56 = vadd.f32 %v1972_v22, %v1702_v27 }
 0x3d6   : > { %2988 = vst [vmem:[%s4018_s30 + $0x70] sm:$0xff] %v2951_v60   ;;  %v2043_v15 = vadd.f32 %v4000_v43, %v2007_v56 }
 0x3d8   : > { %v2139_v8 = vadd.f32 %v2876_v38, %v2043_v15 }
 0x3d9   : > { %v1566_v2 = vpop.f32.mrf.mxu3 }
 0x3da   : > { %v1704_v32 = vadd.f32 %v1703_v1, %v1566_v2  ;;  %v2171_v31 = vmax.f32 %v2139_v8, 0.0 }
 0x3dc   : > { %v2008_v53 = vadd.f32 %v1974_v11, %v1704_v32 }
 0x3de   : > { %v2044_v18 = vadd.f32 %v4000_v43, %v2008_v53 }
 0x3e0   : > { %v2140_v16 = vadd.f32 %v2877_v19, %v2044_v18 }
 0x3e2   : > { %v2172_v29 = vmax.f32 %v2140_v16, 0.0 }
 0x3e4   : > { %v2956_v12 = vpack.c.bf16 %v2172_v29, %v2171_v31 }
 0x3e6   : > { %2989 = vst [vmem:[%s4018_s30 + $0x78] sm:$0xff] %v2956_v12  }
 0x3e7   : > { %3258 = shalt.err (!%p3255_p12)
}
 0x3e8   : > { %s3313_s14 = smov 64   ;;  %s3314_s12 = smov 4  }
 0x3e9   : > { %3076 = dma.vmem_to_hbm [thread:$0]  (%p3422_p3), %s2251_s16, 2048, %s2253_s27, %s2238_s25, %s3313_s14, %s3313_s14, %s3314_s12  }
 0x3ea PF: > { %s2267_s30 = sand.u32 1, %s3293_s21   ;;  %p4197_p13 = scmp.ge.s32.totalorder %s3305_s24, 2 }
 0x3eb   : > { %s2268_s13 = scalar_lea.sflag [#allocation4], %s2267_s30 }
 0x3ec   : > { %p3090_p0 = pnand %p4197_p13, %p3385_p6 }
 0x3ee   : > { %p3091_p5 = pneg %p3090_p0 }
 0x3f0   : > { %3288 = dma.done.wait (%p3091_p5), %s2268_s13, 2048  }
 0x3f1   : > { %3290 = vsyncadd (%p3091_p5), %s2268_s13, 4294965248  ;;  %p18_p7 = scmp.ge.s32.totalorder %s3412_s18, 4   ;;  %s4198_s21 = smov %s3297_s22 }
 0x3f2   : > { %s4199_s22 = smov %s3301_s23  ;;  %s4200_s23 = smov %s3427_s29 }
 0x3f3   : > { %s4201_s24 = smov %s3412_s18  ;;  %20 = sbr.rel (!%p18_p7) target bundleno = 7 (0x7), region = 103 }
 0x3f8   :  { %2274 = vsyncpa [#allocation3], 1 }
 0x3f9   :  { %2276 = vsyncpa [#allocation3 + $0x1], 1 }
 0x3fa   :  { %2277 = vsyncpa [#allocation6], 1 }
 0x3fb   :  { %2278 = vsyncpa [#allocation4], 1 }
 0x3fc   :  { %2280 = vsyncpa [#allocation4 + $0x1], 1 }

// kernel: non_bottleneck_1d_forward.2
= control target key start
LH: loop header
LB: loop body
LE: loop exit
PB: predicated region body
PF: predicated region fallthrough
CT: control target
= control target key end

     0   :  { %10 = vsyncpa [#allocation3], 0  ;;  %s3860_s0 = inlined_call_operand.hbm [shape: bf16[2,16,16,128], index: 0, kind: input, shape index: {}]   ;;  %s3861_s1 = inlined_call_operand.hbm [shape: bf16[3,128,128], index: 1, kind: input, shape index: {}]   ;;  %s3862_s2 = inlined_call_operand.hbm [shape: f32[1,128], index: 2, kind: input, shape index: {}]   ;;  %s3863_s3 = inlined_call_operand.hbm [shape: bf16[3,128,128], index: 3, kind: input, shape index: {}]   ;;  %s3864_s4 = inlined_call_operand.vmem [shape: f32[1,128], index: 4, kind: input, shape index: {}]   ;;  %s3865_s5 = inlined_call_operand.vmem [shape: bf16[2,16,16,128], index: 5, kind: output, shape index: {}]  }
   0x1   :  { %12 = vsyncpa [#allocation3 + $0x1], 0 }
   0x2   :  { %13 = vsyncpa [#allocation5], 0 }
   0x3   :  { %14 = vsyncpa [#allocation8], 0  ;;  %s3113_s18 = smov 0   ;;  %s3115_s19 = smov 0  }
   0x4   :  { %s3117_s20 = smov 0   ;;  %s3119_s21 = smov 0  }
   0x5 LB: > { %s3132_s22 = sadd.s32 4294967295, %s3074_s21   ;;  %p40_p0 = scmp.ne.s32.totalorder %s3066_s19, %s3062_s18  ;;  %s3074_s21 = sphi %s3119_s21, %s3894_s21   ;;  %s3070_s20 = sphi %s3117_s20, %s3893_s20   ;;  %s3066_s19 = sphi %s3115_s19, %s3892_s19   ;;  %s3062_s18 = sphi %s3113_s18, %s3891_s18  }
   0x6   : > { %p41_p1 = scmp.eq.s32.totalorder %s3132_s22, 0  ;;  %p2210_p2 = scmp.ge.s32.totalorder %s3074_s21, 1 }
   0x7   : > { %p161_p3 = scmp.lt.s32.totalorder %s3074_s21, 3  ;;  %s172_s26 = sshll.u32 %s3861_s1, 4  ;;  %s173_s26 = int_to_ptr.hbm [resolvable:$true] %s172_s26 }
   0x8   : > { %p3140_p4 = por %p41_p1, %p40_p0  ;;  %s3076_s28 = smov [#allocation4]  }
   0x9   : > { %p3147_p5 = pnand %p2210_p2, %p161_p3  ;;  %s174_s29 = sshll.u32 %s3076_s28, 4  ;;  %s175_s29 = int_to_ptr.vmem [resolvable:$true] %s174_s29 }
   0xa   : > { %s187_s8 = sshll.u32 %s3862_s2, 4  ;;  %s3077_s9 = smov 64   ;;  %s188_s8 = int_to_ptr.hbm [resolvable:$true] %s187_s8 }
   0xb   : > { %p2850_p6 = pneg %p3147_p5  ;;  %s3078_s10 = smov 4  }
   0xc   : > { %s3079_s11 = smov [#allocation6]   ;;  %s198_s15 = sshll.u32 %s3863_s3, 4  ;;  %s199_s15 = int_to_ptr.hbm [resolvable:$true] %s198_s15 }
   0xd   : > { %p3155_p7 = pnand %p2850_p6, %p41_p1  ;;  %s189_s12 = sshll.u32 %s3079_s11, 4  ;;  %s190_s12 = int_to_ptr.vmem [resolvable:$true] %s189_s12 }
   0xe   : > { %s3080_s16 = smov [#allocation7]   ;;  %s3173_s18 = sadd.s32 1, %s3074_s21  }
   0xf   : > { %2853 = dma.hbm_to_vmem [thread:$0]  (!%p3155_p7), %s173_s26, 3072, %s175_s29, [#allocation5], %s3077_s9, %s3077_s9, %s3078_s10  }
  0x10   : > { %2856 = dma.hbm_to_vmem [thread:$0]  (!%p3155_p7), %s188_s8, 16, %s190_s12, [#allocation5]  }
  0x11   : > { %s200_s17 = sshll.u32 %s3080_s16, 4  ;;  %s24_s24 = ssub.s32 %s3074_s21, %s3173_s18  ;;  %s201_s17 = int_to_ptr.vmem [resolvable:$true] %s200_s17 }
  0x12   : > { %2859 = dma.hbm_to_vmem [thread:$0]  (!%p3155_p7), %s199_s15, 3072, %s201_s17, [#allocation8], %s3077_s9, %s3077_s9, %s3078_s10  }
  0x13   : > { %s27_s25 = sadd.s32 1, %s3070_s20  ;;  %p25_p8 = scmp.eq.s32.totalorder %s24_s24, 0 }
  0x14   : > { %p34_p9 = scmp.ne.s32.totalorder %s3070_s20, %s3066_s19  ;;  %p35_p10 = scmp.eq.s32.totalorder %s3074_s21, 0 }
  0x15   : > { %p2867_p11 = scmp.lt.s32.totalorder %s3074_s21, 2  ;;  %s217_s28 = sand.u32 1, %s3070_s20  }
  0x16   : > { %s3188_s26 = scalar_select %p25_p8, %s3070_s20, %s27_s25  }
  0x17   : > { %p36_p12 = por %p35_p10, %p34_p9  ;;  %s2215_s29 = sshll.u32 %s217_s28, 7 }
  0x18   : > { %s2583_s6 = sshll.u32 %s3074_s21, 7  ;;  %s221_s11 = scalar_lea.vmem [#allocation2], %s2215_s29 }
  0x19   : > { %s226_s30 = scalar_lea.hbm %s3860_s0, %s2583_s6  ;;  %s229_s12 = sshll.u32 %s221_s11, 4  ;;  %s230_s12 = int_to_ptr.vmem [resolvable:$true] %s229_s12 }
  0x1a   : > { %s227_s13 = sshll.u32 %s226_s30, 4  ;;  %p3195_p13 = pnand %p2867_p11, %p36_p12  ;;  %s228_s13 = int_to_ptr.hbm [resolvable:$true] %s227_s13 }
  0x1b   : > { %s218_s15 = scalar_lea.sflag [#allocation3], %s217_s28  ;;  %s3002_s16 = sshra.s32 %s228_s13, 4  ;;  %s3003_s16 = int_to_ptr.hbm [resolvable:$true] %s3002_s16 }
  0x1c   : > { %s3004_s17 = scalar_lea.hbm %s3003_s16, 128  ;;  %p3006_p2 = pneg %p3195_p13 }
  0x1d   : > { %p3005_p0 = scmp.ne.s32.totalorder %s3003_s16, %s3004_s17  ;;  %s3009_s25 = scalar_lea.hbm %s3860_s0, 256 }
  0x1e   : > { %p3010_p7 = scmp.lt.s32.totalorder %s3003_s16, %s3860_s0  ;;  %p3011_p8 = scmp.lt.s32.totalorder %s3009_s25, %s3004_s17 }
  0x1f   : > { %p3007_p3 = pnand %p3006_p2, %p3005_p0 }
  0x20   : > { %p3012_p9 = por %p3011_p8, %p3010_p7 }
  0x21   : > { %p3008_p6 = pneg %p3007_p3 }
  0x23   : > { %p3013_p10 = pnand %p3012_p9, %p3008_p6 }
  0x25   : > { %3016 = shalt.err (!%p3013_p10)
}
  0x26   : > { %2863 = dma.hbm_to_vmem [thread:$0]  (!%p3195_p13), %s228_s13, 2048, %s230_s12, %s218_s15, %s3077_s9, %s3077_s9, %s3078_s10  }
  0x27   : > { %241 = sbr.rel (%p3147_p5) target bundleno = 991 (0x3df), region = 40  ;;  %s243_s28 = sand.u32 (!%p3147_p5), 1, %s3066_s19  }
  0x28   : > { %s2219_s7 = sshll.u32 (!%p3147_p5), %s243_s28, 7  ;;  %s244_s8 = scalar_lea.sflag (!%p3147_p5), [#allocation3], %s243_s28 }
  0x29   : > { %s3215_s30 = scalar_lea.vmem (!%p3147_p5), [#allocation2], %s2219_s7 }
  0x2c   : > { %3049 = dma.done.wait (%p3140_p4), %s244_s8, 2048  }
  0x2d   : > { %3051 = vsyncadd (%p3140_p4), %s244_s8, 4294965248 }
  0x2e   : > { %3053 = dma.done.wait (%p41_p1), [#allocation5], 3088  }
  0x2f   : > { %3055 = vsyncadd (%p41_p1), [#allocation5], 4294964208 }
  0x30   : > { %3057 = dma.done.wait (%p41_p1), [#allocation8], 3072  }
  0x31   : > { %3059 = vsyncadd (%p41_p1), [#allocation8], 4294964224  ;;  %v2621_v0 = vld [vmem:[#allocation4 + $0x38] sm:$0xff]  ;;  %v2620_v2 = vld [vmem:[#allocation4 + $0x30] sm:$0xff]  ;;  %v3081_v39 = vmov 0.0|0.0   ;;  %vm3082_vm3 = vmmov 1  }
  0x32   : > { %v2609_v1 = vld [vmem:[#allocation4 + $0x78] sm:$0xff]  ;;  %2806 = vmatpush.bf16.msra.mxu2 %v2621_v0  ;;  %v2608_v3 = vld [vmem:[#allocation4 + $0x70] sm:$0xff]  ;;  %553 = vmatpush.bf16.msra.mxu0 %v2621_v0  ;;  %v2619_v4 = vld [vmem:[#allocation4 + $0x28] sm:$0xff]  ;;  %p290_p1 = scmp.lt.s32.totalorder %s3132_s22, 1 }
  0x33   : > { %2814 = vmatpush.bf16.msra.mxu3 %v2609_v1  ;;  %786 = vmatpush.bf16.msra.mxu1 %v2609_v1  ;;  %v2607_v5 = vld [vmem:[#allocation4 + $0x68] sm:$0xff]  ;;  %v2618_v6 = vld [vmem:[#allocation4 + $0x20] sm:$0xff]  ;;  %v2617_v8 = vld [vmem:[#allocation4 + $0x18] sm:$0xff] }
  0x34   : > { %v2606_v7 = vld [vmem:[#allocation4 + $0x60] sm:$0xff]  ;;  %v2605_v9 = vld [vmem:[#allocation4 + $0x58] sm:$0xff]  ;;  %v2616_v10 = vld [vmem:[#allocation4 + $0x10] sm:$0xff]  ;;  %s3896_s22 = smov (!%p290_p1, %s3132_s22), 1 }
  0x35   : > { %v2604_v11 = vld [vmem:[#allocation4 + $0x50] sm:$0xff]  ;;  %v2615_v12 = vld [vmem:[#allocation4 + $0x8] sm:$0xff]  ;;  %v2614_v14 = vld [vmem:[#allocation4] sm:$0xff]  ;;  %s2584_s9 = sshll.u32 %s3896_s22, 7 }
  0x36   : > { %2807 = vmatpush.bf16.msra.mxu2 %v2620_v2  ;;  %554 = vmatpush.bf16.msra.mxu0 %v2620_v2  ;;  %v2603_v13 = vld [vmem:[#allocation4 + $0x48] sm:$0xff]  ;;  %v2602_v15 = vld [vmem:[#allocation4 + $0x40] sm:$0xff]  ;;  %v2629_v16 = vld [vmem:[#allocation4 + $0xb8] sm:$0xff]  ;;  %s3757_s12 = scalar_lea.vmem %s3865_s5, %s2584_s9 }
  0x37   : > { %2815 = vmatpush.bf16.msra.mxu3 %v2608_v3  ;;  %787 = vmatpush.bf16.msra.mxu1 %v2608_v3  ;;  %v3230_v17 = vld [vmem:[%s3215_s30 + $0x38] sm:$0xff]  ;;  %v2593_v18 = vld [vmem:[%s3215_s30 + $0x40] sm:$0xff]  ;;  %v2628_v19 = vld [vmem:[#allocation4 + $0xb0] sm:$0xff] }
  0x38   : > { %v2627_v20 = vld [vmem:[#allocation4 + $0xa8] sm:$0xff]  ;;  %v3235_v21 = vld [vmem:[%s3215_s30 + $0x40] sm:$0xff]  ;;  %v2595_v25 = vld [vmem:[%s3215_s30 + $0x50] sm:$0xff] }
  0x39   : > { %v2594_v22 = vld [vmem:[%s3215_s30 + $0x48] sm:$0xff]  ;;  %v2626_v23 = vld [vmem:[#allocation4 + $0xa0] sm:$0xff]  ;;  %v2625_v26 = vld [vmem:[#allocation4 + $0x98] sm:$0xff] }
  0x3a   : > { %2808 = vmatpush.bf16.msra.mxu2 %v2619_v4  ;;  %555 = vmatpush.bf16.msra.mxu0 %v2619_v4  ;;  %v3240_v24 = vld [vmem:[%s3215_s30 + $0x48] sm:$0xff]  ;;  %v3245_v27 = vld [vmem:[%s3215_s30 + $0x50] sm:$0xff]  ;;  %v2596_v28 = vld [vmem:[%s3215_s30 + $0x58] sm:$0xff] }
  0x3b   : > { %2816 = vmatpush.bf16.msra.mxu3 %v2607_v5  ;;  %788 = vmatpush.bf16.msra.mxu1 %v2607_v5  ;;  %v2624_v29 = vld [vmem:[#allocation4 + $0x90] sm:$0xff]  ;;  %v3250_v30 = vld [vmem:[%s3215_s30 + $0x58] sm:$0xff]  ;;  %v2597_v31 = vld [vmem:[%s3215_s30 + $0x60] sm:$0xff] }
  0x3c   : > { %v2623_v32 = vld [vmem:[#allocation4 + $0x88] sm:$0xff]  ;;  %v3255_v33 = vld [vmem:[%s3215_s30 + $0x60] sm:$0xff]  ;;  %v2599_v37 = vld [vmem:[%s3215_s30 + $0x70] sm:$0xff] }
  0x3d   : > { %v2598_v34 = vld [vmem:[%s3215_s30 + $0x68] sm:$0xff]  ;;  %v2622_v35 = vld [vmem:[#allocation4 + $0x80] sm:$0xff]  ;;  %v3267_v40 = vld [vmem:[%s3215_s30 + $0x70] sm:$0xff] }
  0x3e   : > { %2809 = vmatpush.bf16.msra.mxu2 %v2618_v6  ;;  %556 = vmatpush.bf16.msra.mxu0 %v2618_v6  ;;  %v3260_v36 = vld [vmem:[%s3215_s30 + $0x68] sm:$0xff]  ;;  %v2585_v38 = vld [vmem:[%s3215_s30] sm:$0xff]  ;;  %v2601_v41 = vld [vmem:[%s3215_s30 + $0x78] sm:$0xff] }
  0x3f   : > { %2817 = vmatpush.bf16.msra.mxu3 %v2606_v7  ;;  %789 = vmatpush.bf16.msra.mxu1 %v2606_v7  ;;  %v2734_v42 = vld [vmem:[%s3215_s30] sm:$0xff]  ;;  %v2586_v43 = vld [vmem:[%s3215_s30 + $0x8] sm:$0xff]  ;;  %v2587_v45 = vld [vmem:[%s3215_s30 + $0x10] sm:$0xff] }
  0x40   : > { %v2822_v44 = vld [vmem:[%s3215_s30 + $0x8] sm:$0xff]  ;;  %v2823_v48 = vld [vmem:[%s3215_s30 + $0x10] sm:$0xff]  ;;  %v2588_v49 = vld [vmem:[%s3215_s30 + $0x18] sm:$0xff] }
  0x41   : > { %v2824_v52 = vld [vmem:[%s3215_s30 + $0x18] sm:$0xff]  ;;  %v2589_v53 = vld [vmem:[%s3215_s30 + $0x20] sm:$0xff]  ;;  %v2590_v57 = vld [vmem:[%s3215_s30 + $0x28] sm:$0xff] }
  0x42   : > { %2810 = vmatpush.bf16.msra.mxu2 %v2617_v8  ;;  %557 = vmatpush.bf16.msra.mxu0 %v2617_v8  ;;  %v2825_v56 = vld [vmem:[%s3215_s30 + $0x20] sm:$0xff]  ;;  %v2826_v60 = vld [vmem:[%s3215_s30 + $0x28] sm:$0xff]  ;;  %v2591_v61 = vld [vmem:[%s3215_s30 + $0x30] sm:$0xff] }
  0x43   : > { %2818 = vmatpush.bf16.msra.mxu3 %v2605_v9  ;;  %790 = vmatpush.bf16.msra.mxu1 %v2605_v9  ;;  %v2827_v0 = vld [vmem:[%s3215_s30 + $0x30] sm:$0xff]  ;;  %v2592_v1 = vld [vmem:[%s3215_s30 + $0x38] sm:$0xff]  ;;  %v2634_v8 = vld [vmem:[#allocation7 + $0x60] sm:$0xff] }
  0x44   : > { %v2637_v3 = vld [vmem:[#allocation7 + $0x78] sm:$0xff]  ;;  %v2636_v4 = vld [vmem:[#allocation7 + $0x70] sm:$0xff]  ;;  %v2635_v6 = vld [vmem:[#allocation7 + $0x68] sm:$0xff] }
  0x45   : > { %v2653_v7 = vld [vmem:[#allocation7 + $0xb8] sm:$0xff] }
  0x46   : > { %2811 = vmatpush.bf16.msra.mxu2 %v2616_v10  ;;  %558 = vmatpush.bf16.msra.mxu0 %v2616_v10 }
  0x47   : > { %2819 = vmatpush.bf16.msra.mxu3 %v2604_v11  ;;  %791 = vmatpush.bf16.msra.mxu1 %v2604_v11  ;;  %v2652_v11 = vld [vmem:[#allocation7 + $0xb0] sm:$0xff] }
  0x4a   : > { %2812 = vmatpush.bf16.msra.mxu2 %v2615_v12  ;;  %559 = vmatpush.bf16.msra.mxu0 %v2615_v12 }
  0x4b   : > { %2820 = vmatpush.bf16.msra.mxu3 %v2603_v13  ;;  %792 = vmatpush.bf16.msra.mxu1 %v2603_v13  ;;  %v2633_v13 = vld [vmem:[#allocation7 + $0x58] sm:$0xff] }
  0x4e   : > { %2813 = vmatpush.bf16.msra.mxu2 %v2614_v14  ;;  %560 = vmatpush.bf16.msra.mxu0 %v2614_v14  ;;  %v2651_v14 = vld [vmem:[#allocation7 + $0xa8] sm:$0xff] }
  0x4f   : > { %2821 = vmatpush.bf16.msra.mxu3 %v2602_v15  ;;  %793 = vmatpush.bf16.msra.mxu1 %v2602_v15  ;;  %v2632_v15 = vld [vmem:[#allocation7 + $0x50] sm:$0xff] }
  0x51   : > { %601 = vmatmul.bf16.vlgmr.msra.gmra.mxu2 %v3230_v17  ;;  %561 = vmatmul.bf16.vlgmr.msra.gmra.mxu0 %v3081_v39 }
  0x52   : > { %1051 = vmatpush.bf16.msrb.mxu2 %v2629_v16  ;;  %834 = vmatmul.bf16.vlgmr.msra.gmra.mxu3 %v2593_v18 }
  0x53   : > { %794 = vmatmul.bf16.vlgmr.msra.gmra.mxu1 %v2585_v38  ;;  %1589 = vmatpush.bf16.msrb.mxu0 %v2637_v3 }
  0x54   : > { %1860 = vmatpush.bf16.msrb.mxu1 %v2653_v7 }
  0x56   : > { %1052 = vmatpush.bf16.msrb.mxu2 %v2628_v19  ;;  %v2650_v19 = vld [vmem:[#allocation7 + $0xa0] sm:$0xff] }
  0x57   : > { %1590 = vmatpush.bf16.msrb.mxu0 %v2636_v4 }
  0x58   : > { %1861 = vmatpush.bf16.msrb.mxu1 %v2652_v11 }
  0x5a   : > { %1053 = vmatpush.bf16.msrb.mxu2 %v2627_v20 }
  0x5b   : > { %1591 = vmatpush.bf16.msrb.mxu0 %v2635_v6 }
  0x5c   : > { %1862 = vmatpush.bf16.msrb.mxu1 %v2651_v14 }
  0x5e   : > { %1054 = vmatpush.bf16.msrb.mxu2 %v2626_v23  ;;  %v2630_v23 = vld [vmem:[#allocation7 + $0x40] sm:$0xff] }
  0x5f   : > { %1592 = vmatpush.bf16.msrb.mxu0 %v2634_v8 }
  0x60   : > { %1863 = vmatpush.bf16.msrb.mxu1 %v2650_v19 }
  0x61   : > { %606 = vmatmul.bf16.gmra.mxu2 %v3235_v21  ;;  %566 = vmatmul.bf16.gmra.mxu0 %v2734_v42  ;;  %v3320_v42 = vld [vmem:[#allocation6] ss:$0 sm:$0xff] }
  0x62   : > { %839 = vmatmul.bf16.gmra.mxu3 %v2594_v22  ;;  %1055 = vmatpush.bf16.msrb.mxu2 %v2625_v26  ;;  %v2649_v22 = vld [vmem:[#allocation7 + $0x98] sm:$0xff]  ;;  %v2648_v26 = vld [vmem:[#allocation7 + $0x90] sm:$0xff] }
  0x63   : > { %799 = vmatmul.bf16.gmra.mxu1 %v2586_v43  ;;  %1593 = vmatpush.bf16.msrb.mxu0 %v2633_v13 }
  0x64   : > { %1864 = vmatpush.bf16.msrb.mxu1 %v2649_v22 }
  0x66   : > { %1056 = vmatpush.bf16.msrb.mxu2 %v2624_v29 }
  0x67   : > { %1594 = vmatpush.bf16.msrb.mxu0 %v2632_v15 }
  0x68   : > { %1865 = vmatpush.bf16.msrb.mxu1 %v2648_v26 }
  0x6a   : > { %1057 = vmatpush.bf16.msrb.mxu2 %v2623_v32  ;;  %v2646_v32 = vld [vmem:[#allocation7 + $0x80] sm:$0xff] }
  0x6e   : > { %1058 = vmatpush.bf16.msrb.mxu2 %v2622_v35 }
  0x71   : > { %611 = vmatmul.bf16.gmra.mxu2 %v3240_v24  ;;  %571 = vmatmul.bf16.gmra.mxu0 %v2822_v44 }
  0x72   : > { %844 = vmatmul.bf16.gmra.mxu3 %v2595_v25 }
  0x73   : > { %804 = vmatmul.bf16.gmra.mxu1 %v2587_v45 }
  0x81   : > { %616 = vmatmul.bf16.gmra.mxu2 %v3245_v27  ;;  %576 = vmatmul.bf16.gmra.mxu0 %v2823_v48 }
  0x82   : > { %849 = vmatmul.bf16.gmra.mxu3 %v2596_v28 }
  0x83   : > { %809 = vmatmul.bf16.gmra.mxu1 %v2588_v49 }
  0x91   : > { %621 = vmatmul.bf16.gmra.mxu2 %v3250_v30  ;;  %581 = vmatmul.bf16.gmra.mxu0 %v2824_v52 }
  0x92   : > { %854 = vmatmul.bf16.gmra.mxu3 %v2597_v31  ;;  %v2647_v31 = vld [vmem:[#allocation7 + $0x88] sm:$0xff] }
  0x93   : > { %814 = vmatmul.bf16.gmra.mxu1 %v2589_v53 }
  0x94   : > { %1866 = vmatpush.bf16.msrb.mxu1 %v2647_v31 }
  0x98   : > { %1867 = vmatpush.bf16.msrb.mxu1 %v2646_v32 }
  0xa1   : > { %626 = vmatmul.bf16.gmra.mxu2 %v3255_v33  ;;  %586 = vmatmul.bf16.gmra.mxu0 %v2825_v56 }
  0xa2   : > { %859 = vmatmul.bf16.gmra.mxu3 %v2598_v34 }
  0xa3   : > { %819 = vmatmul.bf16.gmra.mxu1 %v2590_v57 }
  0xb1   : > { %631 = vmatmul.bf16.gmra.mxu2 %v3260_v36  ;;  %591 = vmatmul.bf16.gmra.mxu0 %v2826_v60 }
  0xb2   : > { %864 = vmatmul.bf16.gmra.mxu3 %v2599_v37 }
  0xb3   : > { %824 = vmatmul.bf16.gmra.mxu1 %v2591_v61 }
  0xc1   : > { %636 = vmatmul.bf16.gmra.mxu2 %v3267_v40  ;;  %596 = vmatmul.bf16.gmra.mxu0 %v2827_v0 }
  0xc2   : > { %869 = vmatmul.bf16.gmra.mxu3 %v2601_v41 }
  0xc3   : > { %829 = vmatmul.bf16.gmra.mxu1 %v2592_v1 }
  0xce   : > { %v562_v9 = vpop.f32.mrf.mxu0 }
  0xd0   : > { %v795_v10 = vpop.f32.mrf.mxu1 }
  0xd1   : > { %1059 = vmatmul.bf16.vlgmr.msrb.gmra.mxu2 %v2822_v44  ;;  %v796_v38 = vadd.f32 %v795_v10, %v562_v9 }
  0xd4   : > { %v3275_v46 = vpop.f32.mrf.mxu2 }
  0xd6   : > { %v564_v16 = vpop.f32.mrf.mxu0 }
  0xd8   : > { %v797_v18 = vpop.f32.mrf.mxu1 }
  0xd9   : > { %v798_v45 = vadd.f32 %v797_v18, %v564_v16 }
  0xdc   : > { %v3277_v47 = vpop.f32.mrf.mxu2 }
  0xde   : > { %v567_v25 = vpop.f32.mrf.mxu0 }
  0xe0   : > { %v800_v29 = vpop.f32.mrf.mxu1 }
  0xe1   : > { %1064 = vmatmul.bf16.gmra.mxu2 %v2823_v48  ;;  %v359_v48 = vlaneseq  ;;  %v801_v61 = vadd.f32 %v800_v29, %v567_v25 }
  0xe4   : > { %v3281_v50 = vpop.f32.mrf.mxu2 }
  0xe6   : > { %v569_v35 = vpop.f32.mrf.mxu0 }
  0xe8   : > { %v802_v37 = vpop.f32.mrf.mxu1 }
  0xe9   : > { %v803_v15 = vadd.f32 %v802_v37, %v569_v35 }
  0xec   : > { %v3283_v51 = vpop.f32.mrf.mxu2 }
  0xee   : > { %v572_v43 = vpop.f32.mrf.mxu0 }
  0xf0   : > { %v805_v44 = vpop.f32.mrf.mxu1 }
  0xf1   : > { %1069 = vmatmul.bf16.gmra.mxu2 %v2824_v52 }
  0xf4   : > { %v3287_v54 = vpop.f32.mrf.mxu2 }
  0xf8   : > { %v807_v3 = vpop.f32.mrf.mxu1 }
  0xfc   : > { %v3289_v55 = vpop.f32.mrf.mxu2 }
 0x101   : > { %1074 = vmatmul.bf16.gmra.mxu2 %v2825_v56  ;;  %v3323_v56 = vshrl.u32 %v359_v48, 7 }
 0x103   : > { %v361_v1 = vadd.s32 8, %v3323_v56  ;;  %vm1305_vm0 = vcmp.lt.s32.totalorder %v3323_v56, 1  ;;  %vm1710_vm1 = vcmp.lt.s32.totalorder %v3323_v56, 7  ;;  %vm1338_vm5 = vcmp.ge.s32.totalorder %v3323_v56, 1 }
 0x104   : > { %v3293_v58 = vpop.f32.mrf.mxu2  ;;  %vm3671_vm6 = vmpackc.low %vm3082_vm3, %vm1338_vm5 }
 0x105   : > { %v1744_v10 = vadd.s32 1, %v361_v1 }
 0x107   : > { %vm1746_vm2 = vcmp.lt.s32.totalorder %v1744_v10, 16 }
 0x108   : > { %vm3349_vm4 = vmpackc.low %vm1746_vm2, %vm3082_vm3 }
 0x10c   : > { %v3295_v59 = vpop.f32.mrf.mxu2 }
 0x111   : > { %1079 = vmatmul.bf16.gmra.mxu2 %v2826_v60 }
 0x114   : > { %v3299_v62 = vpop.f32.mrf.mxu2 }
 0x11c   : > { %v3301_v63 = vpop.f32.mrf.mxu2 }
 0x121   : > { %1084 = vmatmul.bf16.gmra.mxu2 %v2827_v0  ;;  %v574_v0 = vpop.f32.mrf.mxu0 }
 0x124   : > { %v3305_v2 = vpop.f32.mrf.mxu2 }
 0x12c   : > { %v3307_v5 = vpop.f32.mrf.mxu2 }
 0x131   : > { %1089 = vmatmul.bf16.gmra.mxu2 %v3230_v17  ;;  %v2631_v17 = vld [vmem:[#allocation7 + $0x48] sm:$0xff] }
 0x132   : > { %1595 = vmatpush.bf16.msrb.mxu0 %v2631_v17  ;;  %v577_v17 = vpop.f32.mrf.mxu0 }
 0x134   : > { %v3310_v12 = vpop.f32.mrf.mxu2 }
 0x136   : > { %1596 = vmatpush.bf16.msrb.mxu0 %v2630_v23  ;;  %v810_v23 = vpop.f32.mrf.mxu1 }
 0x13c   : > { %v3312_v20 = vpop.f32.mrf.mxu2 }
 0x141   : > { %1094 = vmatmul.bf16.gmra.mxu2 %v3235_v21 }
 0x144   : > { %v3315_v28 = vpop.f32.mrf.mxu2 }
 0x14c   : > { %v3317_v34 = vpop.f32.mrf.mxu2 }
 0x151   : > { %1099 = vmatmul.bf16.gmra.mxu2 %v3240_v24 }
 0x154   : > { %v1060_v21 = vpop.f32.mrf.mxu2 }
 0x155   : > { %v1140_v41 = vadd.f32 %v1060_v21, %v796_v38  ;;  %v806_v21 = vadd.f32 %v805_v44, %v572_v43 }
 0x157   : > { %v1176_v49 = vadd.f32 %v3320_v42, %v1140_v41 }
 0x159   : > { %v3325_v57 = vmax.f32 %v1176_v49, 0.0 }
 0x15b   : > { %v1273_v4 = vrot.slane %v3325_v57, 7  ;;  %v3866_v16 = vrot.slane %v3325_v57, 1 }
 0x15c   : > { %v1062_v52 = vpop.f32.mrf.mxu2 }
 0x15d   : > { %v1141_v53 = vadd.f32 %v1062_v52, %v798_v45  ;;  %v579_v52 = vpop.f32.mrf.mxu0 }
 0x15f   : > { %v1177_v60 = vadd.f32 %v3320_v42, %v1141_v53 }
 0x161   : > { %v1209_v24 = vmax.f32 %v1177_v60, 0.0  ;;  %1104 = vmatmul.bf16.gmra.mxu2 %v3245_v27  ;;  %v812_v60 = vpop.f32.mrf.mxu1 }
 0x163   : > { %v1274_v6 = vrot.slane %v1209_v24, 7  ;;  %v1240_v7 = vpack.c.bf16 %v1209_v24, %v3325_v57  ;;  %v1679_v13 = vrot.slane %v1209_v24, 1 }
 0x164   : > { %v1065_v8 = vpop.f32.mrf.mxu2 }
 0x165   : > { %v1142_v9 = vadd.f32 %v1065_v8, %v801_v61  ;;  %1597 = vmatmul.bf16.vlgmr.msrb.gmra.mxu0 %v1240_v7  ;;  %v3337_v27 = vsel %vm1305_vm0, %v1273_v4, %v1274_v6  ;;  %v1741_v29 = vsel %vm1710_vm1, %v3866_v16, %v1679_v13 }
 0x167   : > { %v1178_v11 = vadd.f32 %v3320_v42, %v1142_v9 }
 0x169   : > { %v1210_v14 = vmax.f32 %v1178_v11, 0.0 }
 0x16b   : > { %v1275_v18 = vrot.slane %v1210_v14, 7  ;;  %v1680_v19 = vrot.slane %v1210_v14, 1 }
 0x16c   : > { %v1067_v22 = vpop.f32.mrf.mxu2 }
 0x16d   : > { %v1143_v25 = vadd.f32 %v1067_v22, %v803_v15  ;;  %v1740_v26 = vsel %vm1710_vm1, %v1679_v13, %v1680_v19  ;;  %v3355_v32 = vsel %vm1305_vm0, %v1274_v6, %v1275_v18  ;;  %v582_v15 = vpop.f32.mrf.mxu0 }
 0x16e   : > { %v2534_v35 = vpack.c.bf16 %v1740_v26, %v1741_v29 }
 0x16f   : > { %v1179_v37 = vadd.f32 %v3320_v42, %v1143_v25 }
 0x170   : > { %2535 = vmatmul.msk.bf16.vlgmr.msrb.gmra.mxu1 %vm3349_vm4, %v2534_v35 }
 0x171   : > { %v1211_v38 = vmax.f32 %v1179_v37, 0.0  ;;  %1109 = vmatmul.bf16.gmra.mxu2 %v3250_v30  ;;  %v808_v30 = vadd.f32 %v807_v3, %v574_v0  ;;  %v815_v0 = vpop.f32.mrf.mxu1 }
 0x173   : > { %v1276_v41 = vrot.slane %v1211_v38, 7  ;;  %v1241_v45 = vpack.c.bf16 %v1211_v38, %v1210_v14  ;;  %v1681_v1 = vrot.slane %v1211_v38, 1 }
 0x174   : > { %v1070_v48 = vpop.f32.mrf.mxu2 }
 0x175   : > { %v1144_v49 = vadd.f32 %v1070_v48, %v806_v21  ;;  %1602 = vmatmul.bf16.gmra.mxu0 %v1241_v45  ;;  %v3363_v53 = vsel %vm1305_vm0, %v1275_v18, %v1276_v41  ;;  %v1739_v10 = vsel %vm1710_vm1, %v1680_v19, %v1681_v1  ;;  %v811_v18 = vadd.f32 %v810_v23, %v577_v17  ;;  %v584_v45 = vpop.f32.mrf.mxu0 }
 0x176   : > { %v3876_v56 = vpack.c.bf16 %v3363_v53, %v3355_v32 }
 0x177   : > { %v1180_v61 = vadd.f32 %v3320_v42, %v1144_v49 }
 0x179   : > { %v1212_v6 = vmax.f32 %v1180_v61, 0.0 }
 0x17b   : > { %v1277_v43 = vrot.slane %v1212_v6, 7  ;;  %v1682_v44 = vrot.slane %v1212_v6, 1 }
 0x17c   : > { %v1072_v7 = vpop.f32.mrf.mxu2 }
 0x17d   : > { %v1145_v8 = vadd.f32 %v1072_v7, %v808_v30  ;;  %v1738_v9 = vsel %vm1710_vm1, %v1681_v1, %v1682_v44  ;;  %v3374_v11 = vsel %vm1305_vm0, %v1276_v41, %v1277_v43  ;;  %v813_v41 = vadd.f32 %v812_v60, %v579_v52 }
 0x17e   : > { %v2537_v13 = vpack.c.bf16 %v1738_v9, %v1739_v10  ;;  %v816_v60 = vadd.f32 %v815_v0, %v582_v15  ;;  %v587_v9 = vpop.f32.mrf.mxu0 }
 0x17f   : > { %v1181_v14 = vadd.f32 %v3320_v42, %v1145_v8 }
 0x180   : > { %2538 = vmatmul.msk.bf16.gmra.mxu1 %vm3349_vm4, %v2537_v13 }
 0x181   : > { %v1213_v3 = vmax.f32 %v1181_v14, 0.0  ;;  %1114 = vmatmul.bf16.gmra.mxu2 %v3255_v33  ;;  %v817_v33 = vpop.f32.mrf.mxu1 }
 0x183   : > { %v1278_v22 = vrot.slane %v1213_v3, 7  ;;  %v1242_v25 = vpack.c.bf16 %v1213_v3, %v1212_v6  ;;  %v1683_v38 = vrot.slane %v1213_v3, 1 }
 0x184   : > { %v1075_v26 = vpop.f32.mrf.mxu2 }
 0x185   : > { %v1146_v19 = vadd.f32 %v1075_v26, %v811_v18  ;;  %1607 = vmatmul.bf16.gmra.mxu0 %v1242_v25  ;;  %v3382_v29 = vsel %vm1305_vm0, %v1277_v43, %v1278_v22  ;;  %v1737_v1 = vsel %vm1710_vm1, %v1682_v44, %v1683_v38 }
 0x187   : > { %v1182_v37 = vadd.f32 %v3320_v42, %v1146_v19 }
 0x189   : > { %v1214_v21 = vmax.f32 %v1182_v37, 0.0  ;;  %v820_v13 = vpop.f32.mrf.mxu1 }
 0x18b   : > { %v1279_v17 = vrot.slane %v1214_v21, 7  ;;  %v1684_v23 = vrot.slane %v1214_v21, 1 }
 0x18c   : > { %v1077_v48 = vpop.f32.mrf.mxu2 }
 0x18d   : > { %v1147_v49 = vadd.f32 %v1077_v48, %v813_v41  ;;  %v1736_v61 = vsel %vm1710_vm1, %v1683_v38, %v1684_v23  ;;  %v3393_v6 = vsel %vm1305_vm0, %v1278_v22, %v1279_v17 }
 0x18e   : > { %v2540_v30 = vpack.c.bf16 %v1736_v61, %v1737_v1 }
 0x18f   : > { %v1183_v43 = vadd.f32 %v3320_v42, %v1147_v49 }
 0x190   : > { %2541 = vmatmul.msk.bf16.gmra.mxu1 %vm3349_vm4, %v2540_v30 }
 0x191   : > { %v1215_v52 = vmax.f32 %v1183_v43, 0.0  ;;  %1119 = vmatmul.bf16.gmra.mxu2 %v3260_v36  ;;  %v818_v36 = vadd.f32 %v817_v33, %v584_v45  ;;  %v822_v48 = vpop.f32.mrf.mxu1  ;;  %v821_v33 = vadd.f32 %v820_v13, %v587_v9 }
 0x193   : > { %v1280_v7 = vrot.slane %v1215_v52, 7  ;;  %v1243_v8 = vpack.c.bf16 %v1215_v52, %v1214_v21  ;;  %v1685_v22 = vrot.slane %v1215_v52, 1  ;;  %v589_v21 = vpop.f32.mrf.mxu0 }
 0x194   : > { %v1080_v10 = vpop.f32.mrf.mxu2  ;;  %v823_v9 = vadd.f32 %v822_v48, %v589_v21 }
 0x195   : > { %v1148_v44 = vadd.f32 %v1080_v10, %v816_v60  ;;  %1612 = vmatmul.bf16.gmra.mxu0 %v1243_v8  ;;  %v3401_v14 = vsel %vm1305_vm0, %v1279_v17, %v1280_v7  ;;  %v1735_v38 = vsel %vm1710_vm1, %v1684_v23, %v1685_v22 }
 0x197   : > { %v1184_v18 = vadd.f32 %v3320_v42, %v1148_v44 }
 0x199   : > { %v1216_v25 = vmax.f32 %v1184_v18, 0.0  ;;  %v825_v8 = vpop.f32.mrf.mxu1 }
 0x19b   : > { %v1281_v15 = vrot.slane %v1216_v25, 7  ;;  %v1686_v0 = vrot.slane %v1216_v25, 1 }
 0x19c   : > { %v1082_v26 = vpop.f32.mrf.mxu2 }
 0x19d   : > { %v1149_v19 = vadd.f32 %v1082_v26, %v818_v36  ;;  %v1734_v37 = vsel %vm1710_vm1, %v1685_v22, %v1686_v0  ;;  %v3412_v41 = vsel %vm1305_vm0, %v1280_v7, %v1281_v15  ;;  %v592_v7 = vpop.f32.mrf.mxu0 }
 0x19e   : > { %v2543_v17 = vpack.c.bf16 %v1734_v37, %v1735_v38  ;;  %v3437_v38 = vpop.f32.mrf.mxu3 }
 0x19f   : > { %v1185_v49 = vadd.f32 %v3320_v42, %v1149_v19 }
 0x1a0   : > { %2544 = vmatmul.msk.bf16.gmra.mxu1 %vm3349_vm4, %v2543_v17  ;;  %v826_v17 = vadd.f32 %v825_v8, %v592_v7 }
 0x1a1   : > { %v1217_v45 = vmax.f32 %v1185_v49, 0.0  ;;  %1124 = vmatmul.bf16.gmra.mxu2 %v3267_v40  ;;  %v827_v49 = vpop.f32.mrf.mxu1 }
 0x1a3   : > { %v1282_v61 = vrot.slane %v1217_v45, 7  ;;  %v1244_v1 = vpack.c.bf16 %v1217_v45, %v1216_v25  ;;  %v1687_v10 = vrot.slane %v1217_v45, 1 }
 0x1a4   : > { %v1085_v30 = vpop.f32.mrf.mxu2 }
 0x1a5   : > { %v1150_v23 = vadd.f32 %v1085_v30, %v821_v33  ;;  %1617 = vmatmul.bf16.gmra.mxu0 %v1244_v1  ;;  %v3420_v43 = vsel %vm1305_vm0, %v1281_v15, %v1282_v61  ;;  %v1733_v36 = vsel %vm1710_vm1, %v1686_v0, %v1687_v10  ;;  %v2600_v15 = vld [vmem:[%s3215_s30 + $0x78] sm:$0xff]  ;;  %v594_v48 = vpop.f32.mrf.mxu0 }
 0x1a6   : > { %v837_v7 = vpop.f32.mrf.mxu3  ;;  %v3879_v31 = vpack.c.bf16 %v3420_v43, %v3412_v41  ;;  %v3742_v43 = vld [vmem:[%s3864_s4] ss:$0 sm:$0xff] }
 0x1a7   : > { %v1186_v60 = vadd.f32 %v3320_v42, %v1150_v23 }
 0x1a9   : > { %v1218_v40 = vmax.f32 %v1186_v60, 0.0 }
 0x1ab   : > { %v1283_v13 = vrot.slane %v1218_v40, 7  ;;  %v1688_v44 = vrot.slane %v1218_v40, 1 }
 0x1ac   : > { %v1087_v18 = vpop.f32.mrf.mxu2 }
 0x1ad   : > { %v1151_v22 = vadd.f32 %v1087_v18, %v823_v9  ;;  %v1732_v25 = vsel %vm1710_vm1, %v1687_v10, %v1688_v44  ;;  %v3432_v26 = vsel %vm1305_vm0, %v1282_v61, %v1283_v13  ;;  %v828_v9 = vadd.f32 %v827_v49, %v594_v48 }
 0x1ae   : > { %v2546_v19 = vpack.c.bf16 %v1732_v25, %v1733_v36  ;;  %v830_v36 = vpop.f32.mrf.mxu1 }
 0x1af   : > { %v1187_v37 = vadd.f32 %v3320_v42, %v1151_v22  ;;  %v597_v22 = vpop.f32.mrf.mxu0 }
 0x1b0   : > { %2547 = vmatmul.msk.bf16.gmra.mxu1 %vm3349_vm4, %v2546_v19  ;;  %v831_v49 = vadd.f32 %v830_v36, %v597_v22 }
 0x1b1   : > { %v1219_v21 = vmax.f32 %v1187_v37, 0.0  ;;  %1129 = vmatmul.bf16.gmra.mxu2 %v2600_v15 }
 0x1b3   : > { %v1284_v45 = vrot.slane %v1219_v21, 7  ;;  %v1245_v0 = vpack.c.bf16 %v1219_v21, %v1218_v40  ;;  %v1689_v60 = vrot.slane %v1219_v21, 1  ;;  %v2645_v40 = vld [vmem:[#allocation7 + $0x38] sm:$0xff] }
 0x1b4   : > { %v1090_v33 = vpop.f32.mrf.mxu2  ;;  %1452 = vmatpush.bf16.msrb.mxu3 %v2645_v40 }
 0x1b5   : > { %v1152_v1 = vadd.f32 %v1090_v33, %v826_v17  ;;  %1622 = vmatmul.bf16.gmra.mxu0 %v1245_v0  ;;  %v3441_v61 = vsel %vm1305_vm0, %v1283_v13, %v1284_v45  ;;  %v1731_v19 = vsel %vm1710_vm1, %v1688_v44, %v1689_v60 }
 0x1b6   : > { %v3880_v32 = vpack.c.bf16 %v3441_v61, %v3432_v26 }
 0x1b7   : > { %v1188_v23 = vadd.f32 %v3320_v42, %v1152_v1 }
 0x1b9   : > { %v1220_v10 = vmax.f32 %v1188_v23, 0.0  ;;  %v840_v23 = vpop.f32.mrf.mxu3 }
 0x1bb   : > { %v1285_v8 = vrot.slane %v1220_v10, 7  ;;  %v1690_v18 = vrot.slane %v1220_v10, 1 }
 0x1bc   : > { %v1092_v25 = vpop.f32.mrf.mxu2 }
 0x1bd   : > { %v1153_v15 = vadd.f32 %v1092_v25, %v828_v9  ;;  %v1730_v13 = vsel %vm1710_vm1, %v1689_v60, %v1690_v18  ;;  %v3452_v37 = vsel %vm1305_vm0, %v1284_v45, %v1285_v8  ;;  %v599_v60 = vpop.f32.mrf.mxu0  ;;  %v832_v9 = vpop.f32.mrf.mxu1 }
 0x1be   : > { %v2549_v21 = vpack.c.bf16 %v1730_v13, %v1731_v19  ;;  %v833_v22 = vadd.f32 %v832_v9, %v599_v60  ;;  %v2644_v13 = vld [vmem:[#allocation7 + $0x30] sm:$0xff]  ;;  %v836_v60 = vadd.f32 %v3437_v38, %v3275_v46 }
 0x1bf   : > { %v1189_v17 = vadd.f32 %v3320_v42, %v1153_v15  ;;  %1453 = vmatpush.bf16.msrb.mxu3 %v2644_v13 }
 0x1c0   : > { %2550 = vmatmul.msk.bf16.gmra.mxu1 %vm3349_vm4, %v2549_v21 }
 0x1c1   : > { %v1221_v48 = vmax.f32 %v1189_v17, 0.0  ;;  %1134 = vmatmul.bf16.gmra.mxu2 %v3081_v39 }
 0x1c3   : > { %v1286_v0 = vrot.slane %v1221_v48, 7  ;;  %v1246_v33 = vpack.c.bf16 %v1221_v48, %v1220_v10  ;;  %v1691_v15 = vrot.slane %v1221_v48, 1 }
 0x1c4   : > { %v1095_v1 = vpop.f32.mrf.mxu2 }
 0x1c5   : > { %v1154_v44 = vadd.f32 %v1095_v1, %v831_v49  ;;  %1627 = vmatmul.bf16.gmra.mxu0 %v1246_v33  ;;  %v3460_v45 = vsel %vm1305_vm0, %v1285_v8, %v1286_v0  ;;  %v1729_v8 = vsel %vm1710_vm1, %v1690_v18, %v1691_v15  ;;  %v842_v1 = vpop.f32.mrf.mxu3 }
 0x1c6   : > { %v3881_v53 = vpack.c.bf16 %v3460_v45, %v3452_v37 }
 0x1c7   : > { %v1190_v25 = vadd.f32 %v3320_v42, %v1154_v44 }
 0x1c9   : > { %v1222_v39 = vmax.f32 %v1190_v25, 0.0 }
 0x1cb   : > { %v1287_v36 = vrot.slane %v1222_v39, 7  ;;  %v1692_v10 = vrot.slane %v1222_v39, 1 }
 0x1cc   : > { %v1097_v19 = vpop.f32.mrf.mxu2 }
 0x1cd   : > { %v1155_v21 = vadd.f32 %v1097_v19, %v833_v22  ;;  %v1728_v17 = vsel %vm1710_vm1, %v1691_v15, %v1692_v10  ;;  %v3471_v49 = vsel %vm1305_vm0, %v1286_v0, %v1287_v36 }
 0x1ce   : > { %v2552_v33 = vpack.c.bf16 %v1728_v17, %v1729_v8  ;;  %v845_v17 = vpop.f32.mrf.mxu3  ;;  %v838_v8 = vadd.f32 %v837_v7, %v3277_v47  ;;  %v841_v7 = vadd.f32 %v840_v23, %v3281_v50  ;;  %v843_v23 = vadd.f32 %v842_v1, %v3283_v51 }
 0x1cf   : > { %v1191_v48 = vadd.f32 %v3320_v42, %v1155_v21  ;;  %v846_v1 = vadd.f32 %v845_v17, %v3287_v54 }
 0x1d0   : > { %2553 = vmatmul.msk.bf16.gmra.mxu1 %vm3349_vm4, %v2552_v33 }
 0x1d1   : > { %v1223_v44 = vmax.f32 %v1191_v48, 0.0 }
 0x1d3   : > { %v1288_v9 = vrot.slane %v1223_v44, 7  ;;  %v1247_v25 = vpack.c.bf16 %v1223_v44, %v1222_v39  ;;  %v1693_v19 = vrot.slane %v1223_v44, 1  ;;  %v2643_v39 = vld [vmem:[#allocation7 + $0x28] sm:$0xff] }
 0x1d4   : > { %v1100_v22 = vpop.f32.mrf.mxu2  ;;  %1454 = vmatpush.bf16.msrb.mxu3 %v2643_v39 }
 0x1d5   : > { %v1156_v18 = vadd.f32 %v1100_v22, %v836_v60  ;;  %1632 = vmatmul.bf16.gmra.mxu0 %v1247_v25  ;;  %v3480_v0 = vsel %vm1305_vm0, %v1287_v36, %v1288_v9  ;;  %v1727_v36 = vsel %vm1710_vm1, %v1692_v10, %v1693_v19 }
 0x1d7   : > { %v1192_v13 = vadd.f32 %v3320_v42, %v1156_v18 }
 0x1d9   : > { %v1224_v21 = vmax.f32 %v1192_v13, 0.0 }
 0x1db   : > { %v1289_v46 = vrot.slane %v1224_v21, 7  ;;  %v1694_v38 = vrot.slane %v1224_v21, 1 }
 0x1dc   : > { %v1102_v33 = vpop.f32.mrf.mxu2 }
 0x1dd   : > { %v1157_v48 = vadd.f32 %v1102_v33, %v838_v8  ;;  %v1726_v60 = vsel %vm1710_vm1, %v1693_v19, %v1694_v38  ;;  %v3492_v25 = vsel %vm1305_vm0, %v1288_v9, %v1289_v46  ;;  %v847_v33 = vpop.f32.mrf.mxu3 }
 0x1de   : > { %v2555_v44 = vpack.c.bf16 %v1726_v60, %v1727_v36  ;;  %v2642_v36 = vld [vmem:[#allocation7 + $0x20] sm:$0xff]  ;;  %v848_v17 = vadd.f32 %v847_v33, %v3289_v55 }
 0x1df   : > { %v1193_v22 = vadd.f32 %v3320_v42, %v1157_v48  ;;  %1455 = vmatpush.bf16.msrb.mxu3 %v2642_v36 }
 0x1e0   : > { %2556 = vmatmul.msk.bf16.gmra.mxu1 %vm3349_vm4, %v2555_v44 }
 0x1e1   : > { %v1225_v47 = vmax.f32 %v1193_v22, 0.0 }
 0x1e3   : > { %v1290_v18 = vrot.slane %v1225_v47, 7  ;;  %v1695_v13 = vrot.slane %v1225_v47, 1  ;;  %v1248_v8 = vpack.c.bf16 %v1225_v47, %v1224_v21 }
 0x1e4   : > { %v1105_v15 = vpop.f32.mrf.mxu2 }
 0x1e5   : > { %v1158_v10 = vadd.f32 %v1105_v15, %v841_v7  ;;  %1637 = vmatmul.bf16.gmra.mxu0 %v1248_v8  ;;  %v1725_v9 = vsel %vm1710_vm1, %v1694_v38, %v1695_v13  ;;  %v3502_v19 = vsel %vm1305_vm0, %v1289_v46, %v1290_v18  ;;  %v850_v22 = vpop.f32.mrf.mxu3 }
 0x1e7   : > { %v1194_v48 = vadd.f32 %v3320_v42, %v1158_v10 }
 0x1e9   : > { %v1226_v50 = vmax.f32 %v1194_v48, 0.0 }
 0x1eb   : > { %v1291_v21 = vrot.slane %v1226_v50, 7  ;;  %v1696_v60 = vrot.slane %v1226_v50, 1 }
 0x1ec   : > { %v1107_v15 = vpop.f32.mrf.mxu2 }
 0x1ed   : > { %v1159_v44 = vadd.f32 %v1107_v15, %v843_v23  ;;  %v1724_v38 = vsel %vm1710_vm1, %v1695_v13, %v1696_v60  ;;  %v3512_v46 = vsel %vm1305_vm0, %v1290_v18, %v1291_v21 }
 0x1ee   : > { %v2558_v47 = vpack.c.bf16 %v1724_v38, %v1725_v9 }
 0x1ef   : > { %v1195_v7 = vadd.f32 %v3320_v42, %v1159_v44  ;;  %v852_v44 = vpop.f32.mrf.mxu3 }
 0x1f0   : > { %2559 = vmatmul.msk.bf16.gmra.mxu1 %vm3349_vm4, %v2558_v47  ;;  %v2641_v47 = vld [vmem:[#allocation7 + $0x18] sm:$0xff] }
 0x1f1   : > { %v1227_v51 = vmax.f32 %v1195_v7, 0.0  ;;  %1456 = vmatpush.bf16.msrb.mxu3 %v2641_v47 }
 0x1f3   : > { %v1292_v8 = vrot.slane %v1227_v51, 7  ;;  %v1697_v10 = vrot.slane %v1227_v51, 1  ;;  %v1249_v48 = vpack.c.bf16 %v1227_v51, %v1226_v50 }
 0x1f4   : > { %v1110_v23 = vpop.f32.mrf.mxu2 }
 0x1f5   : > { %v1160_v13 = vadd.f32 %v1110_v23, %v846_v1  ;;  %1642 = vmatmul.bf16.gmra.mxu0 %v1249_v48  ;;  %v1723_v18 = vsel %vm1710_vm1, %v1696_v60, %v1697_v10  ;;  %v3522_v9 = vsel %vm1305_vm0, %v1291_v21, %v1292_v8  ;;  %v851_v23 = vadd.f32 %v850_v22, %v3293_v58 }
 0x1f6   : > { %v853_v58 = vadd.f32 %v852_v44, %v3295_v59 }
 0x1f7   : > { %v1196_v15 = vadd.f32 %v3320_v42, %v1160_v13  ;;  %v855_v33 = vpop.f32.mrf.mxu3 }
 0x1f8   : > { %v856_v44 = vadd.f32 %v855_v33, %v3299_v62 }
 0x1f9   : > { %v1228_v54 = vmax.f32 %v1196_v15, 0.0 }
 0x1fb   : > { %v1293_v50 = vrot.slane %v1228_v54, 7  ;;  %v1698_v38 = vrot.slane %v1228_v54, 1 }
 0x1fc   : > { %v1112_v7 = vpop.f32.mrf.mxu2 }
 0x1fd   : > { %v1161_v51 = vadd.f32 %v1112_v7, %v848_v17  ;;  %v1722_v60 = vsel %vm1710_vm1, %v1697_v10, %v1698_v38  ;;  %v3532_v21 = vsel %vm1305_vm0, %v1292_v8, %v1293_v50 }
 0x1fe   : > { %v2561_v1 = vpack.c.bf16 %v1722_v60, %v1723_v18 }
 0x1ff   : > { %v1197_v48 = vadd.f32 %v3320_v42, %v1161_v51 }
 0x200   : > { %2562 = vmatmul.msk.bf16.gmra.mxu1 %vm3349_vm4, %v2561_v1  ;;  %v2640_v1 = vld [vmem:[#allocation7 + $0x10] sm:$0xff] }
 0x201   : > { %v1229_v55 = vmax.f32 %v1197_v48, 0.0  ;;  %v857_v48 = vpop.f32.mrf.mxu3  ;;  %1457 = vmatpush.bf16.msrb.mxu3 %v2640_v1 }
 0x203   : > { %v1294_v13 = vrot.slane %v1229_v55, 7  ;;  %v1699_v15 = vrot.slane %v1229_v55, 1  ;;  %v1250_v17 = vpack.c.bf16 %v1229_v55, %v1228_v54 }
 0x204   : > { %v1115_v7 = vpop.f32.mrf.mxu2 }
 0x205   : > { %v1162_v10 = vadd.f32 %v1115_v7, %v851_v23  ;;  %1647 = vmatmul.bf16.gmra.mxu0 %v1250_v17  ;;  %v1721_v8 = vsel %vm1710_vm1, %v1698_v38, %v1699_v15  ;;  %v3542_v18 = vsel %vm1305_vm0, %v1293_v50, %v1294_v13  ;;  %v3554_v7 = vpop.f32.mrf.mxu0 }
 0x207   : > { %v1198_v51 = vadd.f32 %v3320_v42, %v1162_v10 }
 0x209   : > { %v1230_v60 = vmax.f32 %v1198_v51, 0.0 }
 0x20b   : > { %v1295_v22 = vrot.slane %v1230_v60, 7  ;;  %v1700_v54 = vrot.slane %v1230_v60, 1 }
 0x20c   : > { %v1117_v55 = vpop.f32.mrf.mxu2 }
 0x20d   : > { %v1163_v23 = vadd.f32 %v1117_v55, %v853_v58  ;;  %v1720_v38 = vsel %vm1710_vm1, %v1699_v15, %v1700_v54  ;;  %v3552_v50 = vsel %vm1305_vm0, %v1294_v13, %v1295_v22  ;;  %v3569_v62 = vpop.f32.mrf.mxu0 }
 0x20e   : > { %v2564_v17 = vpack.c.bf16 %v1720_v38, %v1721_v8 }
 0x20f   : > { %v1199_v10 = vadd.f32 %v3320_v42, %v1163_v23  ;;  %v860_v23 = vpop.f32.mrf.mxu3 }
 0x210   : > { %2565 = vmatmul.msk.bf16.gmra.mxu1 %vm3349_vm4, %v2564_v17 }
 0x211   : > { %v1231_v59 = vmax.f32 %v1199_v10, 0.0  ;;  %v858_v10 = vadd.f32 %v857_v48, %v3301_v63  ;;  %v861_v48 = vadd.f32 %v860_v23, %v3305_v2 }
 0x213   : > { %v1296_v51 = vrot.slane %v1231_v59, 7  ;;  %v1701_v58 = vrot.slane %v1231_v59, 1  ;;  %v1251_v55 = vpack.c.bf16 %v1231_v59, %v1230_v60  ;;  %v3571_v60 = vpop.f32.mrf.mxu1 }
 0x214   : > { %v1120_v15 = vpop.f32.mrf.mxu2 }
 0x215   : > { %v1164_v1 = vadd.f32 %v1120_v15, %v856_v44  ;;  %1652 = vmatmul.bf16.gmra.mxu0 %v1251_v55  ;;  %v1719_v13 = vsel %vm1710_vm1, %v1700_v54, %v1701_v58  ;;  %v3564_v8 = vsel %vm1305_vm0, %v1295_v22, %v1296_v51  ;;  %v2639_v54 = vld [vmem:[#allocation7 + $0x8] sm:$0xff]  ;;  %v3584_v36 = vpop.f32.mrf.mxu0 }
 0x216   : > { %1458 = vmatpush.bf16.msrb.mxu3 %v2639_v54 }
 0x217   : > { %v1200_v17 = vadd.f32 %v3320_v42, %v1164_v1  ;;  %v862_v47 = vpop.f32.mrf.mxu3 }
 0x219   : > { %v1232_v33 = vmax.f32 %v1200_v17, 0.0 }
 0x21b   : > { %v1297_v59 = vrot.slane %v1232_v33, 7  ;;  %v1702_v44 = vrot.slane %v1232_v33, 1  ;;  %v3586_v54 = vpop.f32.mrf.mxu1 }
 0x21c   : > { %v1122_v55 = vpop.f32.mrf.mxu2 }
 0x21d   : > { %v1165_v15 = vadd.f32 %v1122_v55, %v858_v10  ;;  %v1718_v22 = vsel %vm1710_vm1, %v1701_v58, %v1702_v44  ;;  %v3578_v38 = vsel %vm1305_vm0, %v1296_v51, %v1297_v59 }
 0x21e   : > { %v2567_v1 = vpack.c.bf16 %v1718_v22, %v1719_v13 }
 0x21f   : > { %v1201_v17 = vadd.f32 %v3320_v42, %v1165_v15 }
 0x220   : > { %2568 = vmatmul.msk.bf16.gmra.mxu1 %vm3349_vm4, %v2567_v1  ;;  %v865_v1 = vpop.f32.mrf.mxu3 }
 0x221   : > { %v1233_v63 = vmax.f32 %v1201_v17, 0.0  ;;  %v866_v40 = vadd.f32 %v865_v1, %v3310_v12 }
 0x223   : > { %v1298_v10 = vrot.slane %v1233_v63, 7  ;;  %v1703_v55 = vrot.slane %v1233_v63, 1  ;;  %v1252_v58 = vpack.c.bf16 %v1233_v63, %v1232_v33  ;;  %v863_v33 = vadd.f32 %v862_v47, %v3307_v5 }
 0x224   : > { %v1125_v39 = vpop.f32.mrf.mxu2 }
 0x225   : > { %v1166_v51 = vadd.f32 %v1125_v39, %v861_v48  ;;  %1657 = vmatmul.bf16.gmra.mxu0 %v1252_v58  ;;  %v1717_v13 = vsel %vm1710_vm1, %v1702_v44, %v1703_v55  ;;  %v3592_v15 = vsel %vm1305_vm0, %v1297_v59, %v1298_v10  ;;  %v2638_v39 = vld [vmem:[#allocation7] sm:$0xff]  ;;  %v3598_v58 = vpop.f32.mrf.mxu0 }
 0x226   : > { %1459 = vmatpush.bf16.msrb.mxu3 %v2638_v39 }
 0x227   : > { %v1202_v23 = vadd.f32 %v3320_v42, %v1166_v51  ;;  %v3606_v51 = vpop.f32.mrf.mxu1 }
 0x229   : > { %v1234_v22 = vmax.f32 %v1202_v23, 0.0 }
 0x22b   : > { %v1299_v17 = vrot.slane %v1234_v22, 7  ;;  %v1704_v63 = vrot.slane %v1234_v22, 1 }
 0x22c   : > { %v1127_v48 = vpop.f32.mrf.mxu2 }
 0x22d   : > { %v1167_v44 = vadd.f32 %v1127_v48, %v863_v33  ;;  %v1716_v59 = vsel %vm1710_vm1, %v1703_v55, %v1704_v63  ;;  %v3604_v2 = vsel %vm1305_vm0, %v1298_v10, %v1299_v17  ;;  %v867_v55 = vpop.f32.mrf.mxu3 }
 0x22e   : > { %v2570_v23 = vpack.c.bf16 %v1716_v59, %v1717_v13  ;;  %v3620_v59 = vpop.f32.mrf.mxu0 }
 0x22f   : > { %v1203_v5 = vadd.f32 %v3320_v42, %v1167_v44  ;;  %v3623_v1 = vpop.f32.mrf.mxu1 }
 0x230   : > { %2571 = vmatmul.msk.bf16.gmra.mxu1 %vm3349_vm4, %v2570_v23 }
 0x231   : > { %v1235_v47 = vmax.f32 %v1203_v5, 0.0 }
 0x233   : > { %v1300_v33 = vrot.slane %v1235_v47, 7  ;;  %v1705_v48 = vrot.slane %v1235_v47, 1  ;;  %v1253_v30 = vpack.c.bf16 %v1235_v47, %v1234_v22 }
 0x234   : > { %v1130_v39 = vpop.f32.mrf.mxu2 }
 0x235   : > { %v1168_v52 = vadd.f32 %v1130_v39, %v866_v40  ;;  %1662 = vmatmul.bf16.gmra.mxu0 %v1253_v30  ;;  %v1715_v10 = vsel %vm1710_vm1, %v1704_v63, %v1705_v48  ;;  %v3616_v13 = vsel %vm1305_vm0, %v1299_v17, %v1300_v33  ;;  %v868_v40 = vadd.f32 %v867_v55, %v3312_v20  ;;  %v870_v39 = vpop.f32.mrf.mxu3 }
 0x237   : > { %v1204_v12 = vadd.f32 %v3320_v42, %v1168_v52  ;;  %v3637_v55 = vpop.f32.mrf.mxu1 }
 0x239   : > { %v1236_v22 = vmax.f32 %v1204_v12, 0.0  ;;  %v3635_v12 = vpop.f32.mrf.mxu0 }
 0x23b   : > { %v1301_v30 = vrot.slane %v1236_v22, 7  ;;  %v1706_v23 = vrot.slane %v1236_v22, 1 }
 0x23c   : > { %v1132_v5 = vpop.f32.mrf.mxu2 }
 0x23d   : > { %v1169_v63 = vadd.f32 %v1132_v5, %v868_v40  ;;  %v1714_v17 = vsel %vm1710_vm1, %v1705_v48, %v1706_v23  ;;  %v3630_v47 = vsel %vm1305_vm0, %v1300_v33, %v1301_v30  ;;  %v871_v40 = vadd.f32 %v870_v39, %v3315_v28 }
 0x23e   : > { %v2573_v44 = vpack.c.bf16 %v1714_v17, %v1715_v10 }
 0x23f   : > { %v1205_v52 = vadd.f32 %v3320_v42, %v1169_v63 }
 0x240   : > { %2574 = vmatmul.msk.bf16.gmra.mxu1 %vm3349_vm4, %v2573_v44 }
 0x241   : > { %v1237_v20 = vmax.f32 %v1205_v52, 0.0  ;;  %v872_v52 = vpop.f32.mrf.mxu3 }
 0x242   : > { %v873_v39 = vadd.f32 %v872_v52, %v3317_v34 }
 0x243   : > { %v1302_v5 = vrot.slane %v1237_v20, 7  ;;  %v1707_v48 = vrot.slane %v1237_v20, 1  ;;  %v1254_v3 = vpack.c.bf16 %v1237_v20, %v1236_v22  ;;  %v3650_v22 = vpop.f32.mrf.mxu0  ;;  %v3652_v20 = vpop.f32.mrf.mxu1 }
 0x244   : > { %v1135_v35 = vpop.f32.mrf.mxu2 }
 0x245   : > { %v1170_v33 = vadd.f32 %v1135_v35, %v871_v40  ;;  %1667 = vmatmul.bf16.gmra.mxu0 %v1254_v3  ;;  %v1713_v10 = vsel %vm1710_vm1, %v1706_v23, %v1707_v48  ;;  %v3644_v63 = vsel %vm1305_vm0, %v1301_v30, %v1302_v5 }
 0x247   : > { %v1206_v17 = vadd.f32 %v3320_v42, %v1170_v33 }
 0x249   : > { %v1238_v28 = vmax.f32 %v1206_v17, 0.0 }
 0x24b   : > { %v1303_v35 = vrot.slane %v1238_v28, 7  ;;  %v1708_v3 = vrot.slane %v1238_v28, 1 }
 0x24c   : > { %v1137_v23 = vpop.f32.mrf.mxu2 }
 0x24d   : > { %v1171_v40 = vadd.f32 %v1137_v23, %v873_v39  ;;  %v1712_v30 = vsel %vm1710_vm1, %v1707_v48, %v1708_v3  ;;  %v3658_v44 = vsel %vm1305_vm0, %v1302_v5, %v1303_v35  ;;  %v3664_v39 = vpop.f32.mrf.mxu0  ;;  %v3685_v23 = vpop.f32.mrf.mxu1 }
 0x24e   : > { %v2576_v33 = vpack.c.bf16 %v1712_v30, %v1713_v10  ;;  %v3875_v10 = vrot.slane %v3325_v57, 1 }
 0x24f   : > { %v1207_v17 = vadd.f32 %v3320_v42, %v1171_v40 }
 0x250   : > { %2577 = vmatmul.msk.bf16.gmra.mxu1 %vm3349_vm4, %v2576_v33 }
 0x251   : > { %v1239_v34 = vmax.f32 %v1207_v17, 0.0 }
 0x253   : > { %v1304_v52 = vrot.slane %v1239_v34, 7  ;;  %v1709_v24 = vrot.slane %v1239_v34, 1  ;;  %v1255_v16 = vpack.c.bf16 %v1239_v34, %v1238_v28 }
 0x255   : > { %1672 = vmatmul.bf16.gmra.mxu0 %v1255_v16  ;;  %v1337_v5 = vsel %vm1305_vm0, %v1304_v52, %v1273_v4  ;;  %v1711_v48 = vsel %vm1710_vm1, %v1708_v3, %v1709_v24  ;;  %v1742_v28 = vsel %vm1710_vm1, %v1709_v24, %v3875_v10  ;;  %v3683_v16 = vsel %vm1305_vm0, %v1303_v35, %v1304_v52  ;;  %v3692_v57 = vpop.f32.mrf.mxu1 }
 0x256   : > { %v2422_v4 = vpack.c.bf16 %v3337_v27, %v1337_v5  ;;  %v2579_v40 = vpack.c.bf16 %v1742_v28, %v1711_v48  ;;  %v2467_v30 = vpack.c.bf16 %v3683_v16, %v3658_v44  ;;  %v3877_v27 = vpack.c.bf16 %v3382_v29, %v3374_v11 }
 0x257   : > { %v3878_v24 = vpack.c.bf16 %v3401_v14, %v3393_v6  ;;  %v3882_v11 = vpack.c.bf16 %v3480_v0, %v3471_v49  ;;  %v3883_v29 = vpack.c.bf16 %v3502_v19, %v3492_v25  ;;  %v3884_v0 = vpack.c.bf16 %v3522_v9, %v3512_v46 }
 0x258   : > { %2423 = vmatmul.msk.bf16.vlgmr.msrb.gmra.mxu3 %vm3671_vm6, %v2422_v4  ;;  %v3885_v5 = vpack.c.bf16 %v3542_v18, %v3532_v21 }
 0x25d   : > { %v1889_v35 = vpop.f32.mrf.mxu1 }
 0x260   : > { %2580 = vmatmul.msk.bf16.gmra.mxu1 %vm3349_vm4, %v2579_v40 }
 0x268   : > { %2426 = vmatmul.msk.bf16.gmra.mxu3 %vm3671_vm6, %v3876_v56 }
 0x278   : > { %2429 = vmatmul.msk.bf16.gmra.mxu3 %vm3671_vm6, %v3877_v27 }
 0x288   : > { %2432 = vmatmul.msk.bf16.gmra.mxu3 %vm3671_vm6, %v3878_v24 }
 0x298   : > { %2435 = vmatmul.msk.bf16.gmra.mxu3 %vm3671_vm6, %v3879_v31  ;;  %v3886_v31 = vpack.c.bf16 %v3564_v8, %v3552_v50 }
 0x2a8   : > { %2438 = vmatmul.msk.bf16.gmra.mxu3 %vm3671_vm6, %v3880_v32 }
 0x2b8   : > { %2441 = vmatmul.msk.bf16.gmra.mxu3 %vm3671_vm6, %v3881_v53 }
 0x2c8   : > { %2444 = vmatmul.msk.bf16.gmra.mxu3 %vm3671_vm6, %v3882_v11 }
 0x2d8   : > { %2447 = vmatmul.msk.bf16.gmra.mxu3 %vm3671_vm6, %v3883_v29 }
 0x2db   : > { %v1461_v6 = vpop.f32.mrf.mxu3 }
 0x2dc   : > { %v1599_v14 = vadd.f32 %v3554_v7, %v1461_v6 }
 0x2de   : > { %v1949_v41 = vadd.f32 %v3571_v60, %v1599_v14  ;;  %v1618_v60 = vpop.f32.mrf.mxu0 }
 0x2e0   : > { %v1985_v37 = vadd.f32 %v3742_v43, %v1949_v41 }
 0x2e2   : > { %v2017_v25 = vmax.f32 %v1985_v37, 0.0  ;;  %v3887_v37 = vpack.c.bf16 %v3592_v15, %v3578_v38  ;;  %v3888_v15 = vpack.c.bf16 %v3616_v13, %v3604_v2 }
 0x2e3   : > { %v1463_v26 = vpop.f32.mrf.mxu3 }
 0x2e4   : > { %v1601_v61 = vadd.f32 %v3569_v62, %v1463_v26 }
 0x2e6   : > { %v1950_v45 = vadd.f32 %v3586_v54, %v1601_v61  ;;  %v1620_v34 = vpop.f32.mrf.mxu0 }
 0x2e8   : > { %v1986_v49 = vadd.f32 %v3742_v43, %v1950_v45  ;;  %2450 = vmatmul.msk.bf16.gmra.mxu3 %vm3671_vm6, %v3884_v0 }
 0x2ea   : > { %v2018_v19 = vmax.f32 %v1986_v49, 0.0 }
 0x2eb   : > { %v1466_v7 = vpop.f32.mrf.mxu3 }
 0x2ec   : > { %v2657_v62 = vpack.c.bf16 %v2018_v19, %v2017_v25  ;;  %v1604_v54 = vadd.f32 %v3584_v36, %v1466_v7  ;;  %v1891_v36 = vpop.f32.mrf.mxu1 }
 0x2ee   : > { %2658 = vst [vmem:[%s3757_s12] sm:$0xff] %v2657_v62   ;;  %v1951_v46 = vadd.f32 %v3606_v51, %v1604_v54  ;;  %v1623_v4 = vpop.f32.mrf.mxu0 }
 0x2f0   : > { %v1987_v33 = vadd.f32 %v3742_v43, %v1951_v46 }
 0x2f2   : > { %v2019_v48 = vmax.f32 %v1987_v33, 0.0 }
 0x2f3   : > { %v1468_v9 = vpop.f32.mrf.mxu3 }
 0x2f4   : > { %v1606_v3 = vadd.f32 %v3598_v58, %v1468_v9  ;;  %v1894_v40 = vpop.f32.mrf.mxu1 }
 0x2f6   : > { %v1952_v17 = vadd.f32 %v3623_v1, %v1606_v3  ;;  %v1625_v53 = vpop.f32.mrf.mxu0 }
 0x2f8   : > { %v1988_v52 = vadd.f32 %v3742_v43, %v1952_v17  ;;  %2453 = vmatmul.msk.bf16.gmra.mxu3 %vm3671_vm6, %v3885_v5 }
 0x2fa   : > { %v2020_v10 = vmax.f32 %v1988_v52, 0.0 }
 0x2fb   : > { %v1471_v51 = vpop.f32.mrf.mxu3 }
 0x2fc   : > { %v2662_v28 = vpack.c.bf16 %v2020_v10, %v2019_v48  ;;  %v1609_v58 = vadd.f32 %v3620_v59, %v1471_v51  ;;  %v1896_v29 = vpop.f32.mrf.mxu1  ;;  %v3889_v51 = vpack.c.bf16 %v3644_v63, %v3630_v47 }
 0x2fe   : > { %2735 = vst [vmem:[%s3757_s12 + $0x8] sm:$0xff] %v2662_v28   ;;  %v1953_v1 = vadd.f32 %v3637_v55, %v1609_v58  ;;  %v1628_v41 = vpop.f32.mrf.mxu0 }
 0x300   : > { %v1989_v21 = vadd.f32 %v3742_v43, %v1953_v1 }
 0x302   : > { %v2021_v59 = vmax.f32 %v1989_v21, 0.0 }
 0x303   : > { %v1473_v56 = vpop.f32.mrf.mxu3 }
 0x304   : > { %v1611_v27 = vadd.f32 %v3635_v12, %v1473_v56  ;;  %v1899_v26 = vpop.f32.mrf.mxu1 }
 0x306   : > { %v1954_v18 = vadd.f32 %v3652_v20, %v1611_v27  ;;  %v1630_v0 = vpop.f32.mrf.mxu0 }
 0x308   : > { %v1990_v24 = vadd.f32 %v3742_v43, %v1954_v18  ;;  %2456 = vmatmul.msk.bf16.gmra.mxu3 %vm3671_vm6, %v3886_v31 }
 0x30a   : > { %v2022_v32 = vmax.f32 %v1990_v24, 0.0 }
 0x30b   : > { %v1476_v55 = vpop.f32.mrf.mxu3 }
 0x30c   : > { %v2667_v11 = vpack.c.bf16 %v2022_v32, %v2021_v59  ;;  %v1614_v12 = vadd.f32 %v3650_v22, %v1476_v55  ;;  %v1901_v25 = vpop.f32.mrf.mxu1 }
 0x30e   : > { %2736 = vst [vmem:[%s3757_s12 + $0x10] sm:$0xff] %v2667_v11   ;;  %v1955_v20 = vadd.f32 %v3685_v23, %v1614_v12  ;;  %v1633_v46 = vpop.f32.mrf.mxu0 }
 0x310   : > { %v1991_v50 = vadd.f32 %v3742_v43, %v1955_v20 }
 0x312   : > { %v2023_v22 = vmax.f32 %v1991_v50, 0.0 }
 0x313   : > { %v1478_v6 = vpop.f32.mrf.mxu3 }
 0x314   : > { %v1616_v14 = vadd.f32 %v3664_v39, %v1478_v6  ;;  %v1904_v3 = vpop.f32.mrf.mxu1 }
 0x316   : > { %v1956_v8 = vadd.f32 %v3692_v57, %v1616_v14  ;;  %v1635_v52 = vpop.f32.mrf.mxu0 }
 0x318   : > { %v1992_v61 = vadd.f32 %v3742_v43, %v1956_v8  ;;  %2459 = vmatmul.msk.bf16.gmra.mxu3 %vm3671_vm6, %v3887_v37 }
 0x31a   : > { %v2024_v45 = vmax.f32 %v1992_v61, 0.0 }
 0x31b   : > { %v1481_v23 = vpop.f32.mrf.mxu3 }
 0x31c   : > { %v2672_v49 = vpack.c.bf16 %v2024_v45, %v2023_v22  ;;  %v1619_v39 = vadd.f32 %v1618_v60, %v1481_v23  ;;  %v1906_v48 = vpop.f32.mrf.mxu1 }
 0x31e   : > { %2737 = vst [vmem:[%s3757_s12 + $0x18] sm:$0xff] %v2672_v49   ;;  %v1957_v19 = vadd.f32 %v1889_v35, %v1619_v39 }
 0x320   : > { %v1993_v62 = vadd.f32 %v3742_v43, %v1957_v19 }
 0x322   : > { %v2025_v9 = vmax.f32 %v1993_v62, 0.0 }
 0x323   : > { %v1483_v57 = vpop.f32.mrf.mxu3 }
 0x324   : > { %v1621_v7 = vadd.f32 %v1620_v34, %v1483_v57  ;;  %v1909_v27 = vpop.f32.mrf.mxu1 }
 0x326   : > { %v1958_v54 = vadd.f32 %v1891_v36, %v1621_v7 }
 0x328   : > { %v1994_v38 = vadd.f32 %v3742_v43, %v1958_v54  ;;  %2462 = vmatmul.msk.bf16.gmra.mxu3 %vm3671_vm6, %v3888_v15 }
 0x32a   : > { %v2026_v60 = vmax.f32 %v1994_v38, 0.0 }
 0x32b   : > { %v1486_v33 = vpop.f32.mrf.mxu3 }
 0x32c   : > { %v2677_v17 = vpack.c.bf16 %v2026_v60, %v2025_v9  ;;  %v1624_v35 = vadd.f32 %v1623_v4, %v1486_v33  ;;  %v1911_v63 = vpop.f32.mrf.mxu1 }
 0x32e   : > { %2738 = vst [vmem:[%s3757_s12 + $0x20] sm:$0xff] %v2677_v17   ;;  %v1959_v34 = vadd.f32 %v1894_v40, %v1624_v35  ;;  %v1638_v40 = vpop.f32.mrf.mxu0 }
 0x330   : > { %v1995_v10 = vadd.f32 %v3742_v43, %v1959_v34 }
 0x332   : > { %v2027_v28 = vmax.f32 %v1995_v10, 0.0 }
 0x333   : > { %v1488_v5 = vpop.f32.mrf.mxu3 }
 0x334   : > { %v1626_v36 = vadd.f32 %v1625_v53, %v1488_v5  ;;  %v1914_v14 = vpop.f32.mrf.mxu1 }
 0x336   : > { %v1960_v2 = vadd.f32 %v1896_v29, %v1626_v36  ;;  %v1640_v32 = vpop.f32.mrf.mxu0 }
 0x338   : > { %v1996_v13 = vadd.f32 %v3742_v43, %v1960_v2  ;;  %2465 = vmatmul.msk.bf16.gmra.mxu3 %vm3671_vm6, %v3889_v51 }
 0x33a   : > { %v2028_v58 = vmax.f32 %v1996_v13, 0.0 }
 0x33b   : > { %v1491_v1 = vpop.f32.mrf.mxu3 }
 0x33c   : > { %v2682_v4 = vpack.c.bf16 %v2028_v58, %v2027_v28  ;;  %v1629_v56 = vadd.f32 %v1628_v41, %v1491_v1  ;;  %v1916_v22 = vpop.f32.mrf.mxu1 }
 0x33e   : > { %2739 = vst [vmem:[%s3757_s12 + $0x28] sm:$0xff] %v2682_v4   ;;  %v1961_v21 = vadd.f32 %v1899_v26, %v1629_v56  ;;  %v1643_v20 = vpop.f32.mrf.mxu0 }
 0x340   : > { %v1997_v31 = vadd.f32 %v3742_v43, %v1961_v21 }
 0x342   : > { %v2029_v53 = vmax.f32 %v1997_v31, 0.0 }
 0x343   : > { %v1493_v18 = vpop.f32.mrf.mxu3 }
 0x344   : > { %v1631_v24 = vadd.f32 %v1630_v0, %v1493_v18  ;;  %v1919_v57 = vpop.f32.mrf.mxu1 }
 0x346   : > { %v1962_v59 = vadd.f32 %v1901_v25, %v1631_v24 }
 0x348   : > { %v1998_v47 = vadd.f32 %v3742_v43, %v1962_v59  ;;  %2468 = vmatmul.msk.bf16.gmra.mxu3 %vm3671_vm6, %v2467_v30  ;;  %v1645_v30 = vpop.f32.mrf.mxu0 }
 0x34a   : > { %v2030_v55 = vmax.f32 %v1998_v47, 0.0 }
 0x34b   : > { %v1496_v11 = vpop.f32.mrf.mxu3 }
 0x34c   : > { %v2687_v29 = vpack.c.bf16 %v2030_v55, %v2029_v53  ;;  %v1634_v12 = vadd.f32 %v1633_v46, %v1496_v11  ;;  %v1921_v60 = vpop.f32.mrf.mxu1 }
 0x34e   : > { %2740 = vst [vmem:[%s3757_s12 + $0x30] sm:$0xff] %v2687_v29   ;;  %v1963_v6 = vadd.f32 %v1904_v3, %v1634_v12 }
 0x350   : > { %v1999_v8 = vadd.f32 %v3742_v43, %v1963_v6  ;;  %v1648_v0 = vpop.f32.mrf.mxu0 }
 0x352   : > { %v2031_v42 = vmax.f32 %v1999_v8, 0.0 }
 0x353   : > { %v1498_v41 = vpop.f32.mrf.mxu3 }
 0x354   : > { %v1636_v50 = vadd.f32 %v1635_v52, %v1498_v41  ;;  %v1924_v10 = vpop.f32.mrf.mxu1 }
 0x356   : > { %v1964_v26 = vadd.f32 %v1906_v48, %v1636_v50 }
 0x358   : > { %v2000_v44 = vadd.f32 %v3742_v43, %v1964_v26  ;;  %v1650_v9 = vpop.f32.mrf.mxu0 }
 0x35a   : > { %v2032_v16 = vmax.f32 %v2000_v44, 0.0 }
 0x35b   : > { %v1501_v61 = vpop.f32.mrf.mxu3 }
 0x35c   : > { %v2692_v37 = vpack.c.bf16 %v2032_v16, %v2031_v42  ;;  %v1639_v45 = vadd.f32 %v1638_v40, %v1501_v61  ;;  %v1926_v40 = vpop.f32.mrf.mxu1 }
 0x35e   : > { %2741 = vst [vmem:[%s3757_s12 + $0x38] sm:$0xff] %v2692_v37   ;;  %v1965_v23 = vadd.f32 %v1909_v27, %v1639_v45 }
 0x360   : > { %v2001_v25 = vadd.f32 %v3742_v43, %v1965_v23  ;;  %v1653_v5 = vpop.f32.mrf.mxu0 }
 0x362   : > { %v2033_v62 = vmax.f32 %v2001_v25, 0.0 }
 0x363   : > { %v1503_v49 = vpop.f32.mrf.mxu3 }
 0x364   : > { %v1641_v39 = vadd.f32 %v1640_v32, %v1503_v49 }
 0x366   : > { %v1966_v19 = vadd.f32 %v1911_v63, %v1641_v39  ;;  %v1929_v63 = vpop.f32.mrf.mxu1 }
 0x368   : > { %v2002_v7 = vadd.f32 %v3742_v43, %v1966_v19  ;;  %v1655_v58 = vpop.f32.mrf.mxu0 }
 0x36a   : > { %v2034_v54 = vmax.f32 %v2002_v7, 0.0 }
 0x36b   : > { %v1506_v38 = vpop.f32.mrf.mxu3 }
 0x36c   : > { %v2697_v15 = vpack.c.bf16 %v2034_v54, %v2033_v62  ;;  %v1644_v46 = vadd.f32 %v1643_v20, %v1506_v38 }
 0x36e   : > { %2742 = vst [vmem:[%s3757_s12 + $0x40] sm:$0xff] %v2697_v15   ;;  %v1967_v3 = vadd.f32 %v1914_v14, %v1644_v46  ;;  %v1931_v14 = vpop.f32.mrf.mxu1 }
 0x370   : > { %v2003_v35 = vadd.f32 %v3742_v43, %v1967_v3  ;;  %v1658_v32 = vpop.f32.mrf.mxu0 }
 0x372   : > { %v2035_v36 = vmax.f32 %v2003_v35, 0.0 }
 0x373   : > { %v1508_v33 = vpop.f32.mrf.mxu3 }
 0x374   : > { %v1646_v17 = vadd.f32 %v1645_v30, %v1508_v33 }
 0x376   : > { %v1968_v34 = vadd.f32 %v1916_v22, %v1646_v17  ;;  %v1934_v30 = vpop.f32.mrf.mxu1 }
 0x378   : > { %v2004_v52 = vadd.f32 %v3742_v43, %v1968_v34  ;;  %v1660_v20 = vpop.f32.mrf.mxu0 }
 0x37a   : > { %v2036_v48 = vmax.f32 %v2004_v52, 0.0 }
 0x37b   : > { %v1511_v2 = vpop.f32.mrf.mxu3 }
 0x37c   : > { %v2702_v13 = vpack.c.bf16 %v2036_v48, %v2035_v36  ;;  %v1649_v51 = vadd.f32 %v1648_v0, %v1511_v2 }
 0x37e   : > { %2743 = vst [vmem:[%s3757_s12 + $0x48] sm:$0xff] %v2702_v13   ;;  %v1969_v28 = vadd.f32 %v1919_v57, %v1649_v51  ;;  %v1936_v57 = vpop.f32.mrf.mxu1 }
 0x380   : > { %v2005_v56 = vadd.f32 %v3742_v43, %v1969_v28  ;;  %v1663_v42 = vpop.f32.mrf.mxu0 }
 0x382   : > { %v2037_v18 = vmax.f32 %v2005_v56, 0.0 }
 0x383   : > { %v1513_v1 = vpop.f32.mrf.mxu3 }
 0x384   : > { %v1651_v4 = vadd.f32 %v1650_v9, %v1513_v1 }
 0x386   : > { %v1970_v27 = vadd.f32 %v1921_v60, %v1651_v4  ;;  %v1939_v60 = vpop.f32.mrf.mxu1 }
 0x388   : > { %v2006_v21 = vadd.f32 %v3742_v43, %v1970_v27  ;;  %v1665_v0 = vpop.f32.mrf.mxu0 }
 0x38a   : > { %v2038_v24 = vmax.f32 %v2006_v21, 0.0 }
 0x38b   : > { %v1516_v31 = vpop.f32.mrf.mxu3 }
 0x38c   : > { %v2707_v59 = vpack.c.bf16 %v2038_v24, %v2037_v18  ;;  %v1654_v47 = vadd.f32 %v1653_v5, %v1516_v31 }
 0x38e   : > { %2744 = vst [vmem:[%s3757_s12 + $0x50] sm:$0xff] %v2707_v59   ;;  %v1971_v53 = vadd.f32 %v1924_v10, %v1654_v47  ;;  %v1941_v36 = vpop.f32.mrf.mxu1 }
 0x390   : > { %v2007_v29 = vadd.f32 %v3742_v43, %v1971_v53  ;;  %v1668_v15 = vpop.f32.mrf.mxu0 }
 0x392   : > { %v2039_v41 = vmax.f32 %v2007_v29, 0.0 }
 0x393   : > { %v1518_v55 = vpop.f32.mrf.mxu3 }
 0x394   : > { %v1656_v11 = vadd.f32 %v1655_v58, %v1518_v55 }
 0x396   : > { %v1972_v12 = vadd.f32 %v1926_v40, %v1656_v11  ;;  %v1944_v40 = vpop.f32.mrf.mxu1 }
 0x398   : > { %v2008_v6 = vadd.f32 %v3742_v43, %v1972_v12  ;;  %v1670_v5 = vpop.f32.mrf.mxu0 }
 0x39a   : > { %v2040_v50 = vmax.f32 %v2008_v6, 0.0 }
 0x39b   : > { %v1521_v8 = vpop.f32.mrf.mxu3 }
 0x39c   : > { %v2712_v26 = vpack.c.bf16 %v2040_v50, %v2039_v41  ;;  %v1659_v44 = vadd.f32 %v1658_v32, %v1521_v8 }
 0x39e   : > { %2745 = vst [vmem:[%s3757_s12 + $0x58] sm:$0xff] %v2712_v26   ;;  %v1973_v16 = vadd.f32 %v1929_v63, %v1659_v44  ;;  %v1946_v32 = vpop.f32.mrf.mxu1 }
 0x3a0   : > { %v2009_v22 = vadd.f32 %v3742_v43, %v1973_v16  ;;  %v1673_v58 = vpop.f32.mrf.mxu0 }
 0x3a2   : > { %v2041_v49 = vmax.f32 %v2009_v22, 0.0 }
 0x3a3   : > { %v1523_v61 = vpop.f32.mrf.mxu3 }
 0x3a4   : > { %v1661_v37 = vadd.f32 %v1660_v20, %v1523_v61 }
 0x3a6   : > { %v1974_v45 = vadd.f32 %v1931_v14, %v1661_v37 }
 0x3a8   : > { %v2010_v23 = vadd.f32 %v3742_v43, %v1974_v45  ;;  %v1675_v24 = vpop.f32.mrf.mxu0 }
 0x3aa   : > { %v2042_v39 = vmax.f32 %v2010_v23, 0.0 }
 0x3ab   : > { %v1526_v25 = vpop.f32.mrf.mxu3 }
 0x3ac   : > { %v2717_v19 = vpack.c.bf16 %v2042_v39, %v2041_v49  ;;  %v1664_v7 = vadd.f32 %v1663_v42, %v1526_v25 }
 0x3ae   : > { %2746 = vst [vmem:[%s3757_s12 + $0x60] sm:$0xff] %v2717_v19   ;;  %v1975_v62 = vadd.f32 %v1934_v30, %v1664_v7 }
 0x3b0   : > { %v2011_v46 = vadd.f32 %v3742_v43, %v1975_v62 }
 0x3b2   : > { %v2043_v33 = vmax.f32 %v2011_v46, 0.0 }
 0x3b3   : > { %v1528_v54 = vpop.f32.mrf.mxu3 }
 0x3b4   : > { %v1666_v38 = vadd.f32 %v1665_v0, %v1528_v54 }
 0x3b6   : > { %v1976_v9 = vadd.f32 %v1936_v57, %v1666_v38 }
 0x3b8   : > { %v2012_v3 = vadd.f32 %v3742_v43, %v1976_v9 }
 0x3ba   : > { %v2044_v17 = vmax.f32 %v2012_v3, 0.0 }
 0x3bb   : > { %v1531_v35 = vpop.f32.mrf.mxu3 }
 0x3bc   : > { %v2722_v34 = vpack.c.bf16 %v2044_v17, %v2043_v33  ;;  %v1669_v52 = vadd.f32 %v1668_v15, %v1531_v35 }
 0x3be   : > { %2747 = vst [vmem:[%s3757_s12 + $0x68] sm:$0xff] %v2722_v34   ;;  %v1977_v48 = vadd.f32 %v1939_v60, %v1669_v52 }
 0x3c0   : > { %v2013_v13 = vadd.f32 %v3742_v43, %v1977_v48 }
 0x3c2   : > { %v2045_v1 = vmax.f32 %v2013_v13, 0.0 }
 0x3c3   : > { %v1533_v10 = vpop.f32.mrf.mxu3 }
 0x3c4   : > { %v1671_v2 = vadd.f32 %v1670_v5, %v1533_v10 }
 0x3c6   : > { %v1978_v51 = vadd.f32 %v1941_v36, %v1671_v2 }
 0x3c8   : > { %v2014_v28 = vadd.f32 %v3742_v43, %v1978_v51 }
 0x3ca   : > { %v2046_v4 = vmax.f32 %v2014_v28, 0.0 }
 0x3cb   : > { %v1536_v56 = vpop.f32.mrf.mxu3 }
 0x3cc   : > { %v2727_v27 = vpack.c.bf16 %v2046_v4, %v2045_v1  ;;  %v1674_v21 = vadd.f32 %v1673_v58, %v1536_v56 }
 0x3ce   : > { %2748 = vst [vmem:[%s3757_s12 + $0x70] sm:$0xff] %v2727_v27   ;;  %v1979_v18 = vadd.f32 %v1944_v40, %v1674_v21 }
 0x3d0   : > { %v2015_v47 = vadd.f32 %v3742_v43, %v1979_v18 }
 0x3d2   : > { %v2047_v55 = vmax.f32 %v2015_v47, 0.0 }
 0x3d3   : > { %v1538_v31 = vpop.f32.mrf.mxu3 }
 0x3d4   : > { %v1676_v59 = vadd.f32 %v1675_v24, %v1538_v31 }
 0x3d6   : > { %v1980_v63 = vadd.f32 %v1946_v32, %v1676_v59 }
 0x3d8   : > { %v2016_v53 = vadd.f32 %v3742_v43, %v1980_v63 }
 0x3da   : > { %v2048_v11 = vmax.f32 %v2016_v53, 0.0 }
 0x3dc   : > { %v2732_v29 = vpack.c.bf16 %v2048_v11, %v2047_v55 }
 0x3de   : > { %2749 = vst [vmem:[%s3757_s12 + $0x78] sm:$0xff] %v2732_v29  }
 0x3df PF: > { %s3890_s22 = smov %s3173_s18  ;;  %p17_p4 = scmp.ge.s32.totalorder %s3173_s18, 4  }
 0x3e0   : > { %s3891_s18 = smov %s3066_s19  ;;  %s3892_s19 = smov %s3070_s20 }
 0x3e1   : > { %s3893_s20 = smov %s3188_s26  ;;  %s3894_s21 = smov %s3890_s22 }
 0x3e2   :  { %19 = sbr.rel (!%p17_p4) target bundleno = 5 (0x5), region = 96 }
 0x3e7   :  { %2134 = vsyncpa [#allocation3], 1 }
 0x3e8   :  { %2136 = vsyncpa [#allocation3 + $0x1], 1 }
 0x3e9   :  { %2137 = vsyncpa [#allocation5], 1 }
 0x3ea   :  { %2138 = vsyncpa [#allocation8], 1 }

</bundles_post_ra>
